<compile_context>
chip_gen: v6e
topology: v6e:2x2x1
jax: 0.10.0
libtpu: 0.0.40
codegen_flags: <defaults>
</compile_context>

<pallas_src>
import functools

import jax
import jax.numpy as jnp
from jax import lax
from jax.experimental import pallas as pl
from jax.experimental.pallas import tpu as pltpu

VMEM_LIMIT = 64 * 1024 * 1024  # fits v7x physical VMEM; raises v6e/v5e default
NEG_INF = -1e9


def _tile(dim, target, align):
    """Largest block <= target that is a multiple of `align` and divides dim."""
    if dim <= target:
        return dim
    t = (min(target, dim) // align) * align
    while t >= align:
        if dim % t == 0:
            return t
        t -= align
    return dim


# ---------------------------------------------------------------------------
# Tiled matmul (+bias, +gelu) — bf16 MXU inputs, f32 accumulation
# ---------------------------------------------------------------------------
def _linear_kernel(x_ref, w_ref, b_ref, o_ref, acc_ref, *, activation):
    @pl.when(pl.program_id(2) == 0)
    def _():
        acc_ref[...] = jnp.zeros_like(acc_ref)

    acc_ref[...] += jnp.dot(x_ref[...], w_ref[...],
                            preferred_element_type=jnp.float32)

    @pl.when(pl.program_id(2) == pl.num_programs(2) - 1)
    def _():
        y = acc_ref[...] + b_ref[...].astype(jnp.float32)
        if activation == "gelu":
            # TODO(synk): HF BERT uses exact erf GELU; tanh approx kept for lowering safety.
            y = jax.nn.gelu(y, approximate=True)
        o_ref[...] = y.astype(o_ref.dtype)


def linear(x, w, b, activation=None, out_dtype=None,
           tm_target=256, tn_target=512, tk_target=512):
    M, K = x.shape
    Kw, N = w.shape
    assert K == Kw
    out_dtype = out_dtype if out_dtype is not None else x.dtype
    tm = _tile(M, tm_target, 8)
    tn = _tile(N, tn_target, 128)
    tk = _tile(K, tk_target, 128)
    grid = (M // tm, N // tn, K // tk)
    return pl.pallas_call(
        functools.partial(_linear_kernel, activation=activation),
        out_shape=jax.ShapeDtypeStruct((M, N), out_dtype),
        grid=grid,
        in_specs=[
            pl.BlockSpec((tm, tk), lambda i, j, k: (i, k)),
            pl.BlockSpec((tk, tn), lambda i, j, k: (k, j)),
            pl.BlockSpec((1, tn), lambda i, j, k: (0, j)),
        ],
        out_specs=pl.BlockSpec((tm, tn), lambda i, j, k: (i, j)),
        scratch_shapes=[pltpu.VMEM((tm, tn), jnp.float32)],
        compiler_params=pltpu.CompilerParams(
            dimension_semantics=("parallel", "parallel", "arbitrary"),
            vmem_limit_bytes=VMEM_LIMIT),
    )(x, w, b.reshape(1, N))


# ---------------------------------------------------------------------------
# Row-tiled LayerNorm with fused residual add
# ---------------------------------------------------------------------------
def _ln_kernel(*refs, eps, has_res):
    if has_res:
        x_ref, r_ref, g_ref, b_ref, o_ref = refs
        x = x_ref[...].astype(jnp.float32) + r_ref[...].astype(jnp.float32)
    else:
        x_ref, g_ref, b_ref, o_ref = refs
        x = x_ref[...].astype(jnp.float32)
    mean = jnp.mean(x, axis=-1, keepdims=True)
    xc = x - mean
    var = jnp.mean(xc * xc, axis=-1, keepdims=True)
    y = xc * lax.rsqrt(var + eps)
    y = y * g_ref[...].astype(jnp.float32) + b_ref[...].astype(jnp.float32)
    o_ref[...] = y.astype(o_ref.dtype)


def layernorm(x, g, b, residual=None, eps=1e-12, out_dtype=None, tm_target=512):
    M, D = x.shape
    out_dtype = out_dtype if out_dtype is not None else x.dtype
    tm = _tile(M, tm_target, 8)
    grid = (M // tm,)
    x_spec = pl.BlockSpec((tm, D), lambda i: (i, 0))
    p_spec = pl.BlockSpec((1, D), lambda i: (0, 0))
    has_res = residual is not None
    in_specs = [x_spec] + ([x_spec] if has_res else []) + [p_spec, p_spec]
    args = (x,) + ((residual,) if has_res else ()) + (g.reshape(1, D), b.reshape(1, D))
    return pl.pallas_call(
        functools.partial(_ln_kernel, eps=eps, has_res=has_res),
        out_shape=jax.ShapeDtypeStruct((M, D), out_dtype),
        grid=grid,
        in_specs=in_specs,
        out_specs=x_spec,
        compiler_params=pltpu.CompilerParams(
            dimension_semantics=("parallel",), vmem_limit_bytes=VMEM_LIMIT),
    )(*args)


# ---------------------------------------------------------------------------
# Attention: per-batch grid, all heads per block, qkv sliced via index maps
# ---------------------------------------------------------------------------
def _attention_kernel(q_ref, k_ref, v_ref, bias_ref, o_ref, *, num_heads):
    bias = bias_ref[0].astype(jnp.float32)                    # (1, S) additive key bias
    for h in range(num_heads):                                 # static unroll over heads
        q = q_ref[0, :, 0, h, :]                               # (S, Dh) bf16 (scale folded in)
        k = k_ref[0, :, 0, h, :]                               # (S, Dh)
        v = v_ref[0, :, 0, h, :]                               # (S, Dh)
        s = lax.dot_general(q, k, (((1,), (1,)), ((), ())),
                            preferred_element_type=jnp.float32)  # (S, S) f32
        s = s + bias
        m = jnp.max(s, axis=-1, keepdims=True)
        p = jnp.exp(s - m)
        p = p * pl.reciprocal(jnp.sum(p, axis=-1, keepdims=True), approx=True)
        o = jnp.dot(p.astype(v.dtype), v, preferred_element_type=jnp.float32)
        o_ref[0, :, h, :] = o.astype(o_ref.dtype)


def attention(qkv, mask_bias, num_heads):
    B, S, _three, H, Dh = qkv.shape

    def qkv_spec(sel):
        return pl.BlockSpec((1, S, 1, H, Dh), lambda b, s=sel: (b, 0, s, 0, 0))

    return pl.pallas_call(
        functools.partial(_attention_kernel, num_heads=num_heads),
        out_shape=jax.ShapeDtypeStruct((B, S, H, Dh), qkv.dtype),
        grid=(B,),
        in_specs=[qkv_spec(0), qkv_spec(1), qkv_spec(2),
                  pl.BlockSpec((1, 1, S), lambda b: (b, 0, 0))],
        out_specs=pl.BlockSpec((1, S, H, Dh), lambda b: (b, 0, 0, 0)),
        compiler_params=pltpu.CompilerParams(
            dimension_semantics=("parallel",), vmem_limit_bytes=VMEM_LIMIT),
    )(qkv, qkv, qkv, mask_bias)


# ---------------------------------------------------------------------------
# Cross entropy: row-tiled, scalar accumulation, ignore_index=-100 honored
# ---------------------------------------------------------------------------
def _xent_kernel(logits_ref, labels_ref, sum_ref, cnt_ref):
    @pl.when(pl.program_id(0) == 0)
    def _():
        sum_ref[...] = jnp.zeros_like(sum_ref)
        cnt_ref[...] = jnp.zeros_like(cnt_ref)

    logits = logits_ref[...].astype(jnp.float32)               # (n, C_pad)
    labels = labels_ref[...]                                   # (n, 1) int32
    n, c = logits.shape
    valid = (labels >= 0).astype(jnp.float32)                  # (n, 1)
    m = jnp.max(logits, axis=-1, keepdims=True)
    z = logits - m
    lse = jnp.log(jnp.sum(jnp.exp(z), axis=-1, keepdims=True))
    cls = lax.broadcasted_iota(jnp.int32, (n, c), 1)
    onehot = (cls == labels).astype(jnp.float32)
    gathered = jnp.sum(z * onehot, axis=-1, keepdims=True)
    nll = (lse - gathered) * valid                             # (n, 1)
    sum_ref[...] += jnp.sum(nll, axis=0, keepdims=True)
    cnt_ref[...] += jnp.sum(valid, axis=0, keepdims=True)


def cross_entropy(logits, labels):
    M, C = logits.shape
    tm = _tile(M, 1024, 8)
    grid = (M // tm,)
    s, cnt = pl.pallas_call(
        _xent_kernel,
        out_shape=(jax.ShapeDtypeStruct((1, 1), jnp.float32),
                   jax.ShapeDtypeStruct((1, 1), jnp.float32)),
        grid=grid,
        in_specs=[pl.BlockSpec((tm, C), lambda i: (i, 0)),
                  pl.BlockSpec((tm, 1), lambda i: (i, 0))],
        out_specs=(pl.BlockSpec((1, 1), lambda i: (0, 0)),
                   pl.BlockSpec((1, 1), lambda i: (0, 0))),
        compiler_params=pltpu.CompilerParams(
            dimension_semantics=("arbitrary",), vmem_limit_bytes=VMEM_LIMIT),
    )(logits, labels.reshape(M, 1).astype(jnp.int32))
    return s[0, 0] / jnp.maximum(cnt[0, 0], 1.0)


# ---------------------------------------------------------------------------
# Model glue (gathers / reshapes in plain JAX, compute in Pallas)
# ---------------------------------------------------------------------------
def bert_encoder(params, input_ids, attention_mask, num_heads):
    B, S = input_ids.shape
    D = params["word_emb"].shape[1]
    H = num_heads
    Dh = D // H

    emb = (params["word_emb"][input_ids]
           + params["pos_emb"][jnp.arange(S)][None, :, :]
           + params["type_emb"][0][None, None, :])             # (B, S, D) f32
    x = layernorm(emb.reshape(B * S, D), params["emb_ln_g"], params["emb_ln_b"],
                  out_dtype=jnp.bfloat16)                       # (M, D) bf16

    mask_bias = ((1.0 - attention_mask.astype(jnp.float32)) * NEG_INF
                 ).reshape(B, 1, S)

    for lp in params["layers"]:
        qkv = linear(x, lp["w_qkv"], lp["b_qkv"])               # (M, 3D) bf16
        qkv = qkv.reshape(B, S, 3, H, Dh)                       # free reshape
        ctx = attention(qkv, mask_bias, H)                      # (B, S, H, Dh)
        attn_out = linear(ctx.reshape(B * S, D), lp["wo"], lp["bo"])
        x = layernorm(attn_out, lp["ln1_g"], lp["ln1_b"], residual=x)   # post-LN
        h = linear(x, lp["w_ff1"], lp["b_ff1"], activation="gelu")
        h = linear(h, lp["w_ff2"], lp["b_ff2"])
        x = layernorm(h, lp["ln2_g"], lp["ln2_b"], residual=x)          # post-LN
    return x                                                    # (B*S, D) bf16


def bert_for_token_classification(params, input_ids, attention_mask, labels,
                                  *, num_heads, num_classes):
    B, S = input_ids.shape
    x = bert_encoder(params, input_ids, attention_mask, num_heads)
    # ClassificationHead: LayerNorm + Linear(D, num_classes) (output padded to 128 lanes)
    h = layernorm(x, params["cls_ln_g"], params["cls_ln_b"])
    logits_pad = linear(h, params["cls_w"], params["cls_b"], out_dtype=jnp.float32)
    loss = cross_entropy(logits_pad, labels.reshape(-1))        # mean over valid labels
    logits = logits_pad[:, :num_classes].reshape(B, S, num_classes)
    return loss, logits


# ---------------------------------------------------------------------------
# Deterministic parameter init (synthetic; shapes follow the module config)
# ---------------------------------------------------------------------------
def init_params(key, *, vocab, max_pos, type_vocab, D, H, FF, L, C, std=0.02):
    Dh = D // H
    scale = 1.0 / float(Dh) ** 0.5
    C_pad = max(128, ((C + 127) // 128) * 128)
    keys = iter(jax.random.split(key, 8 + 8 * L))

    def w(shape):
        return jax.random.normal(next(keys), shape, jnp.float32) * std

    params = {
        "word_emb": w((vocab, D)),
        "pos_emb": w((max_pos, D)),
        "type_emb": w((type_vocab, D)),
        "emb_ln_g": jnp.ones((D,), jnp.float32),
        "emb_ln_b": jnp.zeros((D,), jnp.float32),
        "layers": [],
        "cls_ln_g": jnp.ones((D,), jnp.float32),
        "cls_ln_b": jnp.zeros((D,), jnp.float32),
    }
    cls_w = w((D, C))
    params["cls_w"] = (jnp.zeros((D, C_pad), jnp.float32)
                       .at[:, :C].set(cls_w).astype(jnp.bfloat16))
    # padded bias = -1e9 so padded classes never win softmax / affect CE
    params["cls_b"] = jnp.full((C_pad,), NEG_INF, jnp.float32).at[:C].set(0.0)

    for _ in range(L):
        wq, wk, wv = w((D, D)), w((D, D)), w((D, D))
        layer = {
            # fused QKV, with 1/sqrt(Dh) folded into the Q columns
            "w_qkv": jnp.concatenate([wq * scale, wk, wv], axis=1).astype(jnp.bfloat16),
            "b_qkv": jnp.zeros((3 * D,), jnp.float32),
            "wo": w((D, D)).astype(jnp.bfloat16), "bo": jnp.zeros((D,), jnp.float32),
            "ln1_g": jnp.ones((D,), jnp.float32), "ln1_b": jnp.zeros((D,), jnp.float32),
            "w_ff1": w((D, FF)).astype(jnp.bfloat16), "b_ff1": jnp.zeros((FF,), jnp.float32),
            "w_ff2": w((FF, D)).astype(jnp.bfloat16), "b_ff2": jnp.zeros((D,), jnp.float32),
            "ln2_g": jnp.ones((D,), jnp.float32), "ln2_b": jnp.zeros((D,), jnp.float32),
        }
        params["layers"].append(layer)
    return params


# ---------------------------------------------------------------------------
if __name__ == "__main__":
    B, S = 2, 8
    D, H, FF, L = 32, 4, 64, 2
    VOCAB, MAX_POS, TYPE_VOCAB, C = 128, 32, 2, 5

    key = jax.random.PRNGKey(0)
    k_param, k_ids, k_lab = jax.random.split(key, 3)

    params = init_params(k_param, vocab=VOCAB, max_pos=MAX_POS,
                         type_vocab=TYPE_VOCAB, D=D, H=H, FF=FF, L=L, C=C)

    input_ids = jax.random.randint(k_ids, (B, S), 0, VOCAB, dtype=jnp.int32)
    attention_mask = jnp.ones((B, S), jnp.float32).at[1, 6:].set(0.0)
    labels = jax.random.randint(k_lab, (B, S), 0, C, dtype=jnp.int32)
    labels = labels.at[1, 6:].set(-100)   # exercise CrossEntropyLoss ignore_index=-100

    fwd = jax.jit(bert_for_token_classification,
                  static_argnames=("num_heads", "num_classes"))
    loss, logits = fwd(params, input_ids, attention_mask, labels,
                       num_heads=H, num_classes=C)
    jax.block_until_ready((loss, logits))
    assert logits.shape == (B, S, C)
    assert jnp.isfinite(loss)
    print("KERNEL_OK")
</pallas_src>

<mosaic_0001>
module attributes {stable_mosaic.version = 11 : i64} {
  func.func @_attention_kernel(%arg0: i32, %arg1: memref<1x8x1x4x8xbf16, #tpu.memory_space<vmem>>, %arg2: memref<1x8x1x4x8xbf16, #tpu.memory_space<vmem>>, %arg3: memref<1x8x1x4x8xbf16, #tpu.memory_space<vmem>>, %arg4: memref<1x1x8xf32, #tpu.memory_space<vmem>>, %arg5: memref<1x8x4x8xbf16, #tpu.memory_space<vmem>>) attributes {dimension_semantics = [#tpu.dimension_semantics<parallel>], iteration_bounds = array<i64: 2>, scalar_prefetch = 0 : i64, scratch_operands = 0 : i64, tpu.core_type = #tpu.core_type<tc>, window_params = [{transform_indices = @transform_0, window_bounds = array<i64: 1, 8, 1, 4, 8>}, {transform_indices = @transform_1, window_bounds = array<i64: 1, 8, 1, 4, 8>}, {transform_indices = @transform_2, window_bounds = array<i64: 1, 8, 1, 4, 8>}, {transform_indices = @transform_3, window_bounds = array<i64: 1, 1, 8>}, {transform_indices = @transform_4, window_bounds = array<i64: 1, 8, 4, 8>}]} {
    %c0 = arith.constant 0 : index
    %c0_0 = arith.constant 0 : index
    %c0_1 = arith.constant 0 : index
    %0 = vector.load %arg4[%c0, %c0_0, %c0_1] : memref<1x1x8xf32, #tpu.memory_space<vmem>>, vector<1x1x8xf32>
    %1 = vector.shape_cast %0 : vector<1x1x8xf32> to vector<1x8xf32>
    %c0_2 = arith.constant 0 : index
    %c0_3 = arith.constant 0 : index
    %c0_4 = arith.constant 0 : index
    %c0_5 = arith.constant 0 : index
    %c0_6 = arith.constant 0 : index
    %2 = vector.load %arg1[%c0_2, %c0_3, %c0_4, %c0_5, %c0_6] : memref<1x8x1x4x8xbf16, #tpu.memory_space<vmem>>, vector<1x8x1x1x8xbf16>
    %3 = vector.shape_cast %2 : vector<1x8x1x1x8xbf16> to vector<8x8xbf16>
    %c0_7 = arith.constant 0 : index
    %c0_8 = arith.constant 0 : index
    %c0_9 = arith.constant 0 : index
    %c0_10 = arith.constant 0 : index
    %c0_11 = arith.constant 0 : index
    %4 = vector.load %arg2[%c0_7, %c0_8, %c0_9, %c0_10, %c0_11] : memref<1x8x1x4x8xbf16, #tpu.memory_space<vmem>>, vector<1x8x1x1x8xbf16>
    %5 = vector.shape_cast %4 : vector<1x8x1x1x8xbf16> to vector<8x8xbf16>
    %c0_12 = arith.constant 0 : index
    %c0_13 = arith.constant 0 : index
    %c0_14 = arith.constant 0 : index
    %c0_15 = arith.constant 0 : index
    %c0_16 = arith.constant 0 : index
    %6 = vector.load %arg3[%c0_12, %c0_13, %c0_14, %c0_15, %c0_16] : memref<1x8x1x4x8xbf16, #tpu.memory_space<vmem>>, vector<1x8x1x1x8xbf16>
    %7 = vector.shape_cast %6 : vector<1x8x1x1x8xbf16> to vector<8x8xbf16>
    %cst = arith.constant dense<0.000000e+00> : vector<8x8xf32>
    %8 = tpu.matmul %3, %5, %cst {dimension_numbers = #tpu.dot_dimension_numbers<[1], [1], [0], [0], [0, 0, 1, 0], [], []>} : vector<8x8xbf16>, vector<8x8xbf16>, vector<8x8xf32> -> vector<8x8xf32>
    %9 = vector.broadcast %1 : vector<1x8xf32> to vector<8x8xf32>
    %10 = arith.addf %8, %9 : vector<8x8xf32>
    %cst_17 = arith.constant dense<0xFF800000> : vector<8xf32>
    %11 = vector.multi_reduction <maximumf>, %10, %cst_17 [1] : vector<8x8xf32> to vector<8xf32>
    %12 = vector.shape_cast %11 : vector<8xf32> to vector<8x1xf32>
    %13 = vector.broadcast %12 : vector<8x1xf32> to vector<8x8xf32>
    %14 = arith.subf %10, %13 : vector<8x8xf32>
    %15 = math.exp %14 : vector<8x8xf32>
    %cst_18 = arith.constant dense<0.000000e+00> : vector<8xf32>
    %16 = vector.multi_reduction <add>, %15, %cst_18 [1] : vector<8x8xf32> to vector<8xf32>
    %17 = vector.shape_cast %16 : vector<8xf32> to vector<8x1xf32>
    %18 = tpu.reciprocal %17 {approx = true} : vector<8x1xf32> -> vector<8x1xf32>
    %19 = vector.broadcast %18 : vector<8x1xf32> to vector<8x8xf32>
    %20 = arith.mulf %15, %19 : vector<8x8xf32>
    %21 = arith.truncf %20 : vector<8x8xf32> to vector<8x8xbf16>
    %cst_19 = arith.constant dense<0.000000e+00> : vector<8x8xf32>
    %22 = tpu.matmul %21, %7, %cst_19 {dimension_numbers = #tpu.dot_dimension_numbers<[1], [0], [0], [1], [0, 0, 1, 1], [], []>} : vector<8x8xbf16>, vector<8x8xbf16>, vector<8x8xf32> -> vector<8x8xf32>
    %23 = arith.truncf %22 : vector<8x8xf32> to vector<8x8xbf16>
    %c0_20 = arith.constant 0 : index
    %c0_21 = arith.constant 0 : index
    %c0_22 = arith.constant 0 : index
    %c0_23 = arith.constant 0 : index
    %24 = vector.load %arg5[%c0_20, %c0_21, %c0_22, %c0_23] : memref<1x8x4x8xbf16, #tpu.memory_space<vmem>>, vector<1x8x1x8xbf16>
    %25 = vector.shape_cast %24 : vector<1x8x1x8xbf16> to vector<8x8xbf16>
    %26 = vector.shape_cast %23 : vector<8x8xbf16> to vector<1x8x1x8xbf16>
    tpu.vector_store %arg5[%c0_20, %c0_21, %c0_22, %c0_23], %26 {strides = array<i32>} : memref<1x8x4x8xbf16, #tpu.memory_space<vmem>>, vector<1x8x1x8xbf16>,
    %c0_24 = arith.constant 0 : index
    %c0_25 = arith.constant 0 : index
    %c0_26 = arith.constant 0 : index
    %c1 = arith.constant 1 : index
    %c0_27 = arith.constant 0 : index
    %27 = vector.load %arg1[%c0_24, %c0_25, %c0_26, %c1, %c0_27] : memref<1x8x1x4x8xbf16, #tpu.memory_space<vmem>>, vector<1x8x1x1x8xbf16>
    %28 = vector.shape_cast %27 : vector<1x8x1x1x8xbf16> to vector<8x8xbf16>
    %c0_28 = arith.constant 0 : index
    %c0_29 = arith.constant 0 : index
    %c0_30 = arith.constant 0 : index
    %c1_31 = arith.constant 1 : index
    %c0_32 = arith.constant 0 : index
    %29 = vector.load %arg2[%c0_28, %c0_29, %c0_30, %c1_31, %c0_32] : memref<1x8x1x4x8xbf16, #tpu.memory_space<vmem>>, vector<1x8x1x1x8xbf16>
    %30 = vector.shape_cast %29 : vector<1x8x1x1x8xbf16> to vector<8x8xbf16>
    %c0_33 = arith.constant 0 : index
    %c0_34 = arith.constant 0 : index
    %c0_35 = arith.constant 0 : index
    %c1_36 = arith.constant 1 : index
    %c0_37 = arith.constant 0 : index
    %31 = vector.load %arg3[%c0_33, %c0_34, %c0_35, %c1_36, %c0_37] : memref<1x8x1x4x8xbf16, #tpu.memory_space<vmem>>, vector<1x8x1x1x8xbf16>
    %32 = vector.shape_cast %31 : vector<1x8x1x1x8xbf16> to vector<8x8xbf16>
    %cst_38 = arith.constant dense<0.000000e+00> : vector<8x8xf32>
    %33 = tpu.matmul %28, %30, %cst_38 {dimension_numbers = #tpu.dot_dimension_numbers<[1], [1], [0], [0], [0, 0, 1, 0], [], []>} : vector<8x8xbf16>, vector<8x8xbf16>, vector<8x8xf32> -> vector<8x8xf32>
    %34 = vector.broadcast %1 : vector<1x8xf32> to vector<8x8xf32>
    %35 = arith.addf %33, %34 : vector<8x8xf32>
    %cst_39 = arith.constant dense<0xFF800000> : vector<8xf32>
    %36 = vector.multi_reduction <maximumf>, %35, %cst_39 [1] : vector<8x8xf32> to vector<8xf32>
    %37 = vector.shape_cast %36 : vector<8xf32> to vector<8x1xf32>
    %38 = vector.broadcast %37 : vector<8x1xf32> to vector<8x8xf32>
    %39 = arith.subf %35, %38 : vector<8x8xf32>
    %40 = math.exp %39 : vector<8x8xf32>
    %cst_40 = arith.constant dense<0.000000e+00> : vector<8xf32>
    %41 = vector.multi_reduction <add>, %40, %cst_40 [1] : vector<8x8xf32> to vector<8xf32>
    %42 = vector.shape_cast %41 : vector<8xf32> to vector<8x1xf32>
    %43 = tpu.reciprocal %42 {approx = true} : vector<8x1xf32> -> vector<8x1xf32>
    %44 = vector.broadcast %43 : vector<8x1xf32> to vector<8x8xf32>
    %45 = arith.mulf %40, %44 : vector<8x8xf32>
    %46 = arith.truncf %45 : vector<8x8xf32> to vector<8x8xbf16>
    %cst_41 = arith.constant dense<0.000000e+00> : vector<8x8xf32>
    %47 = tpu.matmul %46, %32, %cst_41 {dimension_numbers = #tpu.dot_dimension_numbers<[1], [0], [0], [1], [0, 0, 1, 1], [], []>} : vector<8x8xbf16>, vector<8x8xbf16>, vector<8x8xf32> -> vector<8x8xf32>
    %48 = arith.truncf %47 : vector<8x8xf32> to vector<8x8xbf16>
    %c0_42 = arith.constant 0 : index
    %c0_43 = arith.constant 0 : index
    %c1_44 = arith.constant 1 : index
    %c0_45 = arith.constant 0 : index
    %49 = vector.load %arg5[%c0_42, %c0_43, %c1_44, %c0_45] : memref<1x8x4x8xbf16, #tpu.memory_space<vmem>>, vector<1x8x1x8xbf16>
    %50 = vector.shape_cast %49 : vector<1x8x1x8xbf16> to vector<8x8xbf16>
    %51 = vector.shape_cast %48 : vector<8x8xbf16> to vector<1x8x1x8xbf16>
    tpu.vector_store %arg5[%c0_42, %c0_43, %c1_44, %c0_45], %51 {strides = array<i32>} : memref<1x8x4x8xbf16, #tpu.memory_space<vmem>>, vector<1x8x1x8xbf16>,
    %c0_46 = arith.constant 0 : index
    %c0_47 = arith.constant 0 : index
    %c0_48 = arith.constant 0 : index
    %c2 = arith.constant 2 : index
    %c0_49 = arith.constant 0 : index
    %52 = vector.load %arg1[%c0_46, %c0_47, %c0_48, %c2, %c0_49] : memref<1x8x1x4x8xbf16, #tpu.memory_space<vmem>>, vector<1x8x1x1x8xbf16>
    %53 = vector.shape_cast %52 : vector<1x8x1x1x8xbf16> to vector<8x8xbf16>
    %c0_50 = arith.constant 0 : index
    %c0_51 = arith.constant 0 : index
    %c0_52 = arith.constant 0 : index
    %c2_53 = arith.constant 2 : index
    %c0_54 = arith.constant 0 : index
    %54 = vector.load %arg2[%c0_50, %c0_51, %c0_52, %c2_53, %c0_54] : memref<1x8x1x4x8xbf16, #tpu.memory_space<vmem>>, vector<1x8x1x1x8xbf16>
    %55 = vector.shape_cast %54 : vector<1x8x1x1x8xbf16> to vector<8x8xbf16>
    %c0_55 = arith.constant 0 : index
    %c0_56 = arith.constant 0 : index
    %c0_57 = arith.constant 0 : index
    %c2_58 = arith.constant 2 : index
    %c0_59 = arith.constant 0 : index
    %56 = vector.load %arg3[%c0_55, %c0_56, %c0_57, %c2_58, %c0_59] : memref<1x8x1x4x8xbf16, #tpu.memory_space<vmem>>, vector<1x8x1x1x8xbf16>
    %57 = vector.shape_cast %56 : vector<1x8x1x1x8xbf16> to vector<8x8xbf16>
    %cst_60 = arith.constant dense<0.000000e+00> : vector<8x8xf32>
    %58 = tpu.matmul %53, %55, %cst_60 {dimension_numbers = #tpu.dot_dimension_numbers<[1], [1], [0], [0], [0, 0, 1, 0], [], []>} : vector<8x8xbf16>, vector<8x8xbf16>, vector<8x8xf32> -> vector<8x8xf32>
    %59 = vector.broadcast %1 : vector<1x8xf32> to vector<8x8xf32>
    %60 = arith.addf %58, %59 : vector<8x8xf32>
    %cst_61 = arith.constant dense<0xFF800000> : vector<8xf32>
    %61 = vector.multi_reduction <maximumf>, %60, %cst_61 [1] : vector<8x8xf32> to vector<8xf32>
    %62 = vector.shape_cast %61 : vector<8xf32> to vector<8x1xf32>
    %63 = vector.broadcast %62 : vector<8x1xf32> to vector<8x8xf32>
    %64 = arith.subf %60, %63 : vector<8x8xf32>
    %65 = math.exp %64 : vector<8x8xf32>
    %cst_62 = arith.constant dense<0.000000e+00> : vector<8xf32>
    %66 = vector.multi_reduction <add>, %65, %cst_62 [1] : vector<8x8xf32> to vector<8xf32>
    %67 = vector.shape_cast %66 : vector<8xf32> to vector<8x1xf32>
    %68 = tpu.reciprocal %67 {approx = true} : vector<8x1xf32> -> vector<8x1xf32>
    %69 = vector.broadcast %68 : vector<8x1xf32> to vector<8x8xf32>
    %70 = arith.mulf %65, %69 : vector<8x8xf32>
    %71 = arith.truncf %70 : vector<8x8xf32> to vector<8x8xbf16>
    %cst_63 = arith.constant dense<0.000000e+00> : vector<8x8xf32>
    %72 = tpu.matmul %71, %57, %cst_63 {dimension_numbers = #tpu.dot_dimension_numbers<[1], [0], [0], [1], [0, 0, 1, 1], [], []>} : vector<8x8xbf16>, vector<8x8xbf16>, vector<8x8xf32> -> vector<8x8xf32>
    %73 = arith.truncf %72 : vector<8x8xf32> to vector<8x8xbf16>
    %c0_64 = arith.constant 0 : index
    %c0_65 = arith.constant 0 : index
    %c2_66 = arith.constant 2 : index
    %c0_67 = arith.constant 0 : index
    %74 = vector.load %arg5[%c0_64, %c0_65, %c2_66, %c0_67] : memref<1x8x4x8xbf16, #tpu.memory_space<vmem>>, vector<1x8x1x8xbf16>
    %75 = vector.shape_cast %74 : vector<1x8x1x8xbf16> to vector<8x8xbf16>
    %76 = vector.shape_cast %73 : vector<8x8xbf16> to vector<1x8x1x8xbf16>
    tpu.vector_store %arg5[%c0_64, %c0_65, %c2_66, %c0_67], %76 {strides = array<i32>} : memref<1x8x4x8xbf16, #tpu.memory_space<vmem>>, vector<1x8x1x8xbf16>,
    %c0_68 = arith.constant 0 : index
    %c0_69 = arith.constant 0 : index
    %c0_70 = arith.constant 0 : index
    %c3 = arith.constant 3 : index
    %c0_71 = arith.constant 0 : index
    %77 = vector.load %arg1[%c0_68, %c0_69, %c0_70, %c3, %c0_71] : memref<1x8x1x4x8xbf16, #tpu.memory_space<vmem>>, vector<1x8x1x1x8xbf16>
    %78 = vector.shape_cast %77 : vector<1x8x1x1x8xbf16> to vector<8x8xbf16>
    %c0_72 = arith.constant 0 : index
    %c0_73 = arith.constant 0 : index
    %c0_74 = arith.constant 0 : index
    %c3_75 = arith.constant 3 : index
    %c0_76 = arith.constant 0 : index
    %79 = vector.load %arg2[%c0_72, %c0_73, %c0_74, %c3_75, %c0_76] : memref<1x8x1x4x8xbf16, #tpu.memory_space<vmem>>, vector<1x8x1x1x8xbf16>
    %80 = vector.shape_cast %79 : vector<1x8x1x1x8xbf16> to vector<8x8xbf16>
    %c0_77 = arith.constant 0 : index
    %c0_78 = arith.constant 0 : index
    %c0_79 = arith.constant 0 : index
    %c3_80 = arith.constant 3 : index
    %c0_81 = arith.constant 0 : index
    %81 = vector.load %arg3[%c0_77, %c0_78, %c0_79, %c3_80, %c0_81] : memref<1x8x1x4x8xbf16, #tpu.memory_space<vmem>>, vector<1x8x1x1x8xbf16>
    %82 = vector.shape_cast %81 : vector<1x8x1x1x8xbf16> to vector<8x8xbf16>
    %cst_82 = arith.constant dense<0.000000e+00> : vector<8x8xf32>
    %83 = tpu.matmul %78, %80, %cst_82 {dimension_numbers = #tpu.dot_dimension_numbers<[1], [1], [0], [0], [0, 0, 1, 0], [], []>} : vector<8x8xbf16>, vector<8x8xbf16>, vector<8x8xf32> -> vector<8x8xf32>
    %84 = vector.broadcast %1 : vector<1x8xf32> to vector<8x8xf32>
    %85 = arith.addf %83, %84 : vector<8x8xf32>
    %cst_83 = arith.constant dense<0xFF800000> : vector<8xf32>
    %86 = vector.multi_reduction <maximumf>, %85, %cst_83 [1] : vector<8x8xf32> to vector<8xf32>
    %87 = vector.shape_cast %86 : vector<8xf32> to vector<8x1xf32>
    %88 = vector.broadcast %87 : vector<8x1xf32> to vector<8x8xf32>
    %89 = arith.subf %85, %88 : vector<8x8xf32>
    %90 = math.exp %89 : vector<8x8xf32>
    %cst_84 = arith.constant dense<0.000000e+00> : vector<8xf32>
    %91 = vector.multi_reduction <add>, %90, %cst_84 [1] : vector<8x8xf32> to vector<8xf32>
    %92 = vector.shape_cast %91 : vector<8xf32> to vector<8x1xf32>
    %93 = tpu.reciprocal %92 {approx = true} : vector<8x1xf32> -> vector<8x1xf32>
    %94 = vector.broadcast %93 : vector<8x1xf32> to vector<8x8xf32>
    %95 = arith.mulf %90, %94 : vector<8x8xf32>
    %96 = arith.truncf %95 : vector<8x8xf32> to vector<8x8xbf16>
    %cst_85 = arith.constant dense<0.000000e+00> : vector<8x8xf32>
    %97 = tpu.matmul %96, %82, %cst_85 {dimension_numbers = #tpu.dot_dimension_numbers<[1], [0], [0], [1], [0, 0, 1, 1], [], []>} : vector<8x8xbf16>, vector<8x8xbf16>, vector<8x8xf32> -> vector<8x8xf32>
    %98 = arith.truncf %97 : vector<8x8xf32> to vector<8x8xbf16>
    %c0_86 = arith.constant 0 : index
    %c0_87 = arith.constant 0 : index
    %c3_88 = arith.constant 3 : index
    %c0_89 = arith.constant 0 : index
    %99 = vector.load %arg5[%c0_86, %c0_87, %c3_88, %c0_89] : memref<1x8x4x8xbf16, #tpu.memory_space<vmem>>, vector<1x8x1x8xbf16>
    %100 = vector.shape_cast %99 : vector<1x8x1x8xbf16> to vector<8x8xbf16>
    %101 = vector.shape_cast %98 : vector<8x8xbf16> to vector<1x8x1x8xbf16>
    tpu.vector_store %arg5[%c0_86, %c0_87, %c3_88, %c0_89], %101 {strides = array<i32>} : memref<1x8x4x8xbf16, #tpu.memory_space<vmem>>, vector<1x8x1x8xbf16>,
    return
  }
  func.func @transform_0(%arg0: i32) -> (i32, i32, i32, i32, i32) {
    %c0_i32 = arith.constant 0 : i32
    %c0_i32_0 = arith.constant 0 : i32
    %c0_i32_1 = arith.constant 0 : i32
    %c0_i32_2 = arith.constant 0 : i32
    %c0_i32_3 = arith.constant 0 : i32
    return %arg0, %c0_i32, %c0_i32_0, %c0_i32_1, %c0_i32_2 : i32, i32, i32, i32, i32
  }
  func.func @transform_1(%arg0: i32) -> (i32, i32, i32, i32, i32) {
    %c0_i32 = arith.constant 0 : i32
    %c1_i32 = arith.constant 1 : i32
    %c0_i32_0 = arith.constant 0 : i32
    %c0_i32_1 = arith.constant 0 : i32
    %c0_i32_2 = arith.constant 0 : i32
    return %arg0, %c0_i32, %c1_i32, %c0_i32_0, %c0_i32_1 : i32, i32, i32, i32, i32
  }
  func.func @transform_2(%arg0: i32) -> (i32, i32, i32, i32, i32) {
    %c0_i32 = arith.constant 0 : i32
    %c2_i32 = arith.constant 2 : i32
    %c0_i32_0 = arith.constant 0 : i32
    %c0_i32_1 = arith.constant 0 : i32
    %c0_i32_2 = arith.constant 0 : i32
    return %arg0, %c0_i32, %c2_i32, %c0_i32_0, %c0_i32_1 : i32, i32, i32, i32, i32
  }
  func.func @transform_3(%arg0: i32) -> (i32, i32, i32) {
    %c0_i32 = arith.constant 0 : i32
    %c0_i32_0 = arith.constant 0 : i32
    %c0_i32_1 = arith.constant 0 : i32
    return %arg0, %c0_i32, %c0_i32_0 : i32, i32, i32
  }
  func.func @transform_4(%arg0: i32) -> (i32, i32, i32, i32) {
    %c0_i32 = arith.constant 0 : i32
    %c0_i32_0 = arith.constant 0 : i32
    %c0_i32_1 = arith.constant 0 : i32
    %c0_i32_2 = arith.constant 0 : i32
    return %arg0, %c0_i32, %c0_i32_0, %c0_i32_1 : i32, i32, i32, i32
  }
}

module attributes {stable_mosaic.version = 11 : i64} {
  func.func @_linear_kernel(%arg0: i32, %arg1: i32, %arg2: i32, %arg3: memref<16x32xbf16, #tpu.memory_space<vmem>>, %arg4: memref<32x96xbf16, #tpu.memory_space<vmem>>, %arg5: memref<1x96xf32, #tpu.memory_space<vmem>>, %arg6: memref<16x96xbf16, #tpu.memory_space<vmem>>, %arg7: memref<16x96xf32, #tpu.memory_space<vmem>>) attributes {dimension_semantics = [#tpu.dimension_semantics<parallel>, #tpu.dimension_semantics<parallel>, #tpu.dimension_semantics<arbitrary>], iteration_bounds = array<i64: 1, 1, 1>, scalar_prefetch = 0 : i64, scratch_operands = 1 : i64, tpu.core_type = #tpu.core_type<tc>, window_params = [{transform_indices = @transform_0, window_bounds = array<i64: 16, 32>}, {transform_indices = @transform_1, window_bounds = array<i64: 32, 96>}, {transform_indices = @transform_2, window_bounds = array<i64: 1, 96>}, {transform_indices = @transform_3, window_bounds = array<i64: 16, 96>}]} {
    %c0_i32 = arith.constant 0 : i32
    %0 = arith.cmpi eq, %arg2, %c0_i32 : i32
    %1 = arith.extui %0 : i1 to i32
    %c0_i32_0 = arith.constant 0 : i32
    %2 = arith.cmpi ne, %1, %c0_i32_0 : i32
    scf.if %2 {
      %cst_10 = arith.constant 0.000000e+00 : f32
      %12 = vector.broadcast %cst_10 : f32 to vector<16x96xf32>
      %c0_11 = arith.constant 0 : index
      %c0_12 = arith.constant 0 : index
      %13 = vector.load %arg7[%c0_11, %c0_12] : memref<16x96xf32, #tpu.memory_space<vmem>>, vector<16x96xf32>
      tpu.vector_store %arg7[%c0_11, %c0_12], %12 {strides = array<i32>} : memref<16x96xf32, #tpu.memory_space<vmem>>, vector<16x96xf32>,
    } else {
    }
    %c0 = arith.constant 0 : index
    %c0_1 = arith.constant 0 : index
    %3 = vector.load %arg7[%c0, %c0_1] : memref<16x96xf32, #tpu.memory_space<vmem>>, vector<16x96xf32>
    %c0_2 = arith.constant 0 : index
    %c0_3 = arith.constant 0 : index
    %4 = vector.load %arg3[%c0_2, %c0_3] : memref<16x32xbf16, #tpu.memory_space<vmem>>, vector<16x32xbf16>
    %c0_4 = arith.constant 0 : index
    %c0_5 = arith.constant 0 : index
    %5 = vector.load %arg4[%c0_4, %c0_5] : memref<32x96xbf16, #tpu.memory_space<vmem>>, vector<32x96xbf16>
    %cst = arith.constant dense<0.000000e+00> : vector<16x96xf32>
    %6 = tpu.matmul %4, %5, %cst {dimension_numbers = #tpu.dot_dimension_numbers<[1], [0], [0], [1], [0, 0, 1, 1], [], []>} : vector<16x32xbf16>, vector<32x96xbf16>, vector<16x96xf32> -> vector<16x96xf32>
    %7 = arith.addf %3, %6 : vector<16x96xf32>
    %c0_6 = arith.constant 0 : index
    %c0_7 = arith.constant 0 : index
    %8 = vector.load %arg7[%c0_6, %c0_7] : memref<16x96xf32, #tpu.memory_space<vmem>>, vector<16x96xf32>
    tpu.vector_store %arg7[%c0_6, %c0_7], %7 {strides = array<i32>} : memref<16x96xf32, #tpu.memory_space<vmem>>, vector<16x96xf32>,
    %c0_i32_8 = arith.constant 0 : i32
    %9 = arith.cmpi eq, %arg2, %c0_i32_8 : i32
    %10 = arith.extui %9 : i1 to i32
    %c0_i32_9 = arith.constant 0 : i32
    %11 = arith.cmpi ne, %10, %c0_i32_9 : i32
    scf.if %11 {
      %c0_10 = arith.constant 0 : index
      %c0_11 = arith.constant 0 : index
      %12 = vector.load %arg7[%c0_10, %c0_11] : memref<16x96xf32, #tpu.memory_space<vmem>>, vector<16x96xf32>
      %c0_12 = arith.constant 0 : index
      %c0_13 = arith.constant 0 : index
      %13 = vector.load %arg5[%c0_12, %c0_13] : memref<1x96xf32, #tpu.memory_space<vmem>>, vector<1x96xf32>
      %14 = vector.broadcast %13 : vector<1x96xf32> to vector<16x96xf32>
      %15 = arith.addf %12, %14 : vector<16x96xf32>
      %16 = arith.truncf %15 : vector<16x96xf32> to vector<16x96xbf16>
      %c0_14 = arith.constant 0 : index
      %c0_15 = arith.constant 0 : index
      %17 = vector.load %arg6[%c0_14, %c0_15] : memref<16x96xbf16, #tpu.memory_space<vmem>>, vector<16x96xbf16>
      tpu.vector_store %arg6[%c0_14, %c0_15], %16 {strides = array<i32>} : memref<16x96xbf16, #tpu.memory_space<vmem>>, vector<16x96xbf16>,
    } else {
    }
    return
  }
  func.func @transform_0(%arg0: i32, %arg1: i32, %arg2: i32) -> (i32, i32) {
    %c0_i32 = arith.constant 0 : i32
    return %arg0, %arg2 : i32, i32
  }
  func.func @transform_1(%arg0: i32, %arg1: i32, %arg2: i32) -> (i32, i32) {
    %c0_i32 = arith.constant 0 : i32
    return %arg2, %arg1 : i32, i32
  }
  func.func @transform_2(%arg0: i32, %arg1: i32, %arg2: i32) -> (i32, i32) {
    %c0_i32 = arith.constant 0 : i32
    %c0_i32_0 = arith.constant 0 : i32
    return %c0_i32, %arg1 : i32, i32
  }
  func.func @transform_3(%arg0: i32, %arg1: i32, %arg2: i32) -> (i32, i32) {
    %c0_i32 = arith.constant 0 : i32
    return %arg0, %arg1 : i32, i32
  }
}

module attributes {stable_mosaic.version = 11 : i64} {
  func.func @_ln_kernel(%arg0: i32, %arg1: memref<16x32xf32, #tpu.memory_space<vmem>>, %arg2: memref<1x32xf32, #tpu.memory_space<vmem>>, %arg3: memref<1x32xf32, #tpu.memory_space<vmem>>, %arg4: memref<16x32xbf16, #tpu.memory_space<vmem>>) attributes {dimension_semantics = [#tpu.dimension_semantics<parallel>], iteration_bounds = array<i64: 1>, scalar_prefetch = 0 : i64, scratch_operands = 0 : i64, tpu.core_type = #tpu.core_type<tc>, window_params = [{transform_indices = @transform_0, window_bounds = array<i64: 16, 32>}, {pipeline_mode = #tpu.pipeline_mode<synchronous>, transform_indices = @transform_1, window_bounds = array<i64: 1, 32>}, {pipeline_mode = #tpu.pipeline_mode<synchronous>, transform_indices = @transform_2, window_bounds = array<i64: 1, 32>}, {transform_indices = @transform_3, window_bounds = array<i64: 16, 32>}]} {
    %c0 = arith.constant 0 : index
    %c0_0 = arith.constant 0 : index
    %0 = vector.load %arg1[%c0, %c0_0] : memref<16x32xf32, #tpu.memory_space<vmem>>, vector<16x32xf32>
    %cst = arith.constant dense<0.000000e+00> : vector<16xf32>
    %1 = vector.multi_reduction <add>, %0, %cst [1] : vector<16x32xf32> to vector<16xf32>
    %2 = vector.shape_cast %1 : vector<16xf32> to vector<16x1xf32>
    %cst_1 = arith.constant 3.200000e+01 : f32
    %3 = vector.broadcast %cst_1 : f32 to vector<16x1xf32>
    %4 = arith.divf %2, %3 : vector<16x1xf32>
    %5 = vector.broadcast %4 : vector<16x1xf32> to vector<16x32xf32>
    %6 = arith.subf %0, %5 : vector<16x32xf32>
    %7 = arith.mulf %6, %6 : vector<16x32xf32>
    %cst_2 = arith.constant dense<0.000000e+00> : vector<16xf32>
    %8 = vector.multi_reduction <add>, %7, %cst_2 [1] : vector<16x32xf32> to vector<16xf32>
    %9 = vector.shape_cast %8 : vector<16xf32> to vector<16x1xf32>
    %cst_3 = arith.constant 3.200000e+01 : f32
    %10 = vector.broadcast %cst_3 : f32 to vector<16x1xf32>
    %11 = arith.divf %9, %10 : vector<16x1xf32>
    %cst_4 = arith.constant 9.99999996E-13 : f32
    %12 = vector.broadcast %cst_4 : f32 to vector<16x1xf32>
    %13 = arith.addf %11, %12 : vector<16x1xf32>
    %14 = math.rsqrt %13 : vector<16x1xf32>
    %15 = vector.broadcast %14 : vector<16x1xf32> to vector<16x32xf32>
    %16 = arith.mulf %6, %15 : vector<16x32xf32>
    %c0_5 = arith.constant 0 : index
    %c0_6 = arith.constant 0 : index
    %17 = vector.load %arg2[%c0_5, %c0_6] : memref<1x32xf32, #tpu.memory_space<vmem>>, vector<1x32xf32>
    %18 = vector.broadcast %17 : vector<1x32xf32> to vector<16x32xf32>
    %19 = arith.mulf %16, %18 : vector<16x32xf32>
    %c0_7 = arith.constant 0 : index
    %c0_8 = arith.constant 0 : index
    %20 = vector.load %arg3[%c0_7, %c0_8] : memref<1x32xf32, #tpu.memory_space<vmem>>, vector<1x32xf32>
    %21 = vector.broadcast %20 : vector<1x32xf32> to vector<16x32xf32>
    %22 = arith.addf %19, %21 : vector<16x32xf32>
    %23 = arith.truncf %22 : vector<16x32xf32> to vector<16x32xbf16>
    %c0_9 = arith.constant 0 : index
    %c0_10 = arith.constant 0 : index
    %24 = vector.load %arg4[%c0_9, %c0_10] : memref<16x32xbf16, #tpu.memory_space<vmem>>, vector<16x32xbf16>
    tpu.vector_store %arg4[%c0_9, %c0_10], %23 {strides = array<i32>} : memref<16x32xbf16, #tpu.memory_space<vmem>>, vector<16x32xbf16>,
    return
  }
  func.func @transform_0(%arg0: i32) -> (i32, i32) {
    %c0_i32 = arith.constant 0 : i32
    %c0_i32_0 = arith.constant 0 : i32
    return %arg0, %c0_i32 : i32, i32
  }
  func.func @transform_1(%arg0: i32) -> (i32, i32) {
    %c0_i32 = arith.constant 0 : i32
    %c0_i32_0 = arith.constant 0 : i32
    %c0_i32_1 = arith.constant 0 : i32
    return %c0_i32, %c0_i32_0 : i32, i32
  }
  func.func @transform_2(%arg0: i32) -> (i32, i32) {
    %c0_i32 = arith.constant 0 : i32
    %c0_i32_0 = arith.constant 0 : i32
    %c0_i32_1 = arith.constant 0 : i32
    return %c0_i32, %c0_i32_0 : i32, i32
  }
  func.func @transform_3(%arg0: i32) -> (i32, i32) {
    %c0_i32 = arith.constant 0 : i32
    %c0_i32_0 = arith.constant 0 : i32
    return %arg0, %c0_i32 : i32, i32
  }
}

module attributes {stable_mosaic.version = 11 : i64} {
  func.func @_linear_kernel(%arg0: i32, %arg1: i32, %arg2: i32, %arg3: memref<16x32xbf16, #tpu.memory_space<vmem>>, %arg4: memref<32x32xbf16, #tpu.memory_space<vmem>>, %arg5: memref<1x32xf32, #tpu.memory_space<vmem>>, %arg6: memref<16x32xbf16, #tpu.memory_space<vmem>>, %arg7: memref<16x32xf32, #tpu.memory_space<vmem>>) attributes {dimension_semantics = [#tpu.dimension_semantics<parallel>, #tpu.dimension_semantics<parallel>, #tpu.dimension_semantics<arbitrary>], iteration_bounds = array<i64: 1, 1, 1>, scalar_prefetch = 0 : i64, scratch_operands = 1 : i64, tpu.core_type = #tpu.core_type<tc>, window_params = [{transform_indices = @transform_0, window_bounds = array<i64: 16, 32>}, {transform_indices = @transform_1, window_bounds = array<i64: 32, 32>}, {transform_indices = @transform_2, window_bounds = array<i64: 1, 32>}, {transform_indices = @transform_3, window_bounds = array<i64: 16, 32>}]} {
    %c0_i32 = arith.constant 0 : i32
    %0 = arith.cmpi eq, %arg2, %c0_i32 : i32
    %1 = arith.extui %0 : i1 to i32
    %c0_i32_0 = arith.constant 0 : i32
    %2 = arith.cmpi ne, %1, %c0_i32_0 : i32
    scf.if %2 {
      %cst_10 = arith.constant 0.000000e+00 : f32
      %12 = vector.broadcast %cst_10 : f32 to vector<16x32xf32>
      %c0_11 = arith.constant 0 : index
      %c0_12 = arith.constant 0 : index
      %13 = vector.load %arg7[%c0_11, %c0_12] : memref<16x32xf32, #tpu.memory_space<vmem>>, vector<16x32xf32>
      tpu.vector_store %arg7[%c0_11, %c0_12], %12 {strides = array<i32>} : memref<16x32xf32, #tpu.memory_space<vmem>>, vector<16x32xf32>,
    } else {
    }
    %c0 = arith.constant 0 : index
    %c0_1 = arith.constant 0 : index
    %3 = vector.load %arg7[%c0, %c0_1] : memref<16x32xf32, #tpu.memory_space<vmem>>, vector<16x32xf32>
    %c0_2 = arith.constant 0 : index
    %c0_3 = arith.constant 0 : index
    %4 = vector.load %arg3[%c0_2, %c0_3] : memref<16x32xbf16, #tpu.memory_space<vmem>>, vector<16x32xbf16>
    %c0_4 = arith.constant 0 : index
    %c0_5 = arith.constant 0 : index
    %5 = vector.load %arg4[%c0_4, %c0_5] : memref<32x32xbf16, #tpu.memory_space<vmem>>, vector<32x32xbf16>
    %cst = arith.constant dense<0.000000e+00> : vector<16x32xf32>
    %6 = tpu.matmul %4, %5, %cst {dimension_numbers = #tpu.dot_dimension_numbers<[1], [0], [0], [1], [0, 0, 1, 1], [], []>} : vector<16x32xbf16>, vector<32x32xbf16>, vector<16x32xf32> -> vector<16x32xf32>
    %7 = arith.addf %3, %6 : vector<16x32xf32>
    %c0_6 = arith.constant 0 : index
    %c0_7 = arith.constant 0 : index
    %8 = vector.load %arg7[%c0_6, %c0_7] : memref<16x32xf32, #tpu.memory_space<vmem>>, vector<16x32xf32>
    tpu.vector_store %arg7[%c0_6, %c0_7], %7 {strides = array<i32>} : memref<16x32xf32, #tpu.memory_space<vmem>>, vector<16x32xf32>,
    %c0_i32_8 = arith.constant 0 : i32
    %9 = arith.cmpi eq, %arg2, %c0_i32_8 : i32
    %10 = arith.extui %9 : i1 to i32
    %c0_i32_9 = arith.constant 0 : i32
    %11 = arith.cmpi ne, %10, %c0_i32_9 : i32
    scf.if %11 {
      %c0_10 = arith.constant 0 : index
      %c0_11 = arith.constant 0 : index
      %12 = vector.load %arg7[%c0_10, %c0_11] : memref<16x32xf32, #tpu.memory_space<vmem>>, vector<16x32xf32>
      %c0_12 = arith.constant 0 : index
      %c0_13 = arith.constant 0 : index
      %13 = vector.load %arg5[%c0_12, %c0_13] : memref<1x32xf32, #tpu.memory_space<vmem>>, vector<1x32xf32>
      %14 = vector.broadcast %13 : vector<1x32xf32> to vector<16x32xf32>
      %15 = arith.addf %12, %14 : vector<16x32xf32>
      %16 = arith.truncf %15 : vector<16x32xf32> to vector<16x32xbf16>
      %c0_14 = arith.constant 0 : index
      %c0_15 = arith.constant 0 : index
      %17 = vector.load %arg6[%c0_14, %c0_15] : memref<16x32xbf16, #tpu.memory_space<vmem>>, vector<16x32xbf16>
      tpu.vector_store %arg6[%c0_14, %c0_15], %16 {strides = array<i32>} : memref<16x32xbf16, #tpu.memory_space<vmem>>, vector<16x32xbf16>,
    } else {
    }
    return
  }
  func.func @transform_0(%arg0: i32, %arg1: i32, %arg2: i32) -> (i32, i32) {
    %c0_i32 = arith.constant 0 : i32
    return %arg0, %arg2 : i32, i32
  }
  func.func @transform_1(%arg0: i32, %arg1: i32, %arg2: i32) -> (i32, i32) {
    %c0_i32 = arith.constant 0 : i32
    return %arg2, %arg1 : i32, i32
  }
  func.func @transform_2(%arg0: i32, %arg1: i32, %arg2: i32) -> (i32, i32) {
    %c0_i32 = arith.constant 0 : i32
    %c0_i32_0 = arith.constant 0 : i32
    return %c0_i32, %arg1 : i32, i32
  }
  func.func @transform_3(%arg0: i32, %arg1: i32, %arg2: i32) -> (i32, i32) {
    %c0_i32 = arith.constant 0 : i32
    return %arg0, %arg1 : i32, i32
  }
}

module attributes {stable_mosaic.version = 11 : i64} {
  func.func @_linear_kernel(%arg0: i32, %arg1: i32, %arg2: i32, %arg3: memref<16x32xbf16, #tpu.memory_space<vmem>>, %arg4: memref<32x64xbf16, #tpu.memory_space<vmem>>, %arg5: memref<1x64xf32, #tpu.memory_space<vmem>>, %arg6: memref<16x64xbf16, #tpu.memory_space<vmem>>, %arg7: memref<16x64xf32, #tpu.memory_space<vmem>>) attributes {dimension_semantics = [#tpu.dimension_semantics<parallel>, #tpu.dimension_semantics<parallel>, #tpu.dimension_semantics<arbitrary>], iteration_bounds = array<i64: 1, 1, 1>, scalar_prefetch = 0 : i64, scratch_operands = 1 : i64, tpu.core_type = #tpu.core_type<tc>, window_params = [{transform_indices = @transform_0, window_bounds = array<i64: 16, 32>}, {transform_indices = @transform_1, window_bounds = array<i64: 32, 64>}, {transform_indices = @transform_2, window_bounds = array<i64: 1, 64>}, {transform_indices = @transform_3, window_bounds = array<i64: 16, 64>}]} {
    %c0_i32 = arith.constant 0 : i32
    %0 = arith.cmpi eq, %arg2, %c0_i32 : i32
    %1 = arith.extui %0 : i1 to i32
    %c0_i32_0 = arith.constant 0 : i32
    %2 = arith.cmpi ne, %1, %c0_i32_0 : i32
    scf.if %2 {
      %cst_10 = arith.constant 0.000000e+00 : f32
      %12 = vector.broadcast %cst_10 : f32 to vector<16x64xf32>
      %c0_11 = arith.constant 0 : index
      %c0_12 = arith.constant 0 : index
      %13 = vector.load %arg7[%c0_11, %c0_12] : memref<16x64xf32, #tpu.memory_space<vmem>>, vector<16x64xf32>
      tpu.vector_store %arg7[%c0_11, %c0_12], %12 {strides = array<i32>} : memref<16x64xf32, #tpu.memory_space<vmem>>, vector<16x64xf32>,
    } else {
    }
    %c0 = arith.constant 0 : index
    %c0_1 = arith.constant 0 : index
    %3 = vector.load %arg7[%c0, %c0_1] : memref<16x64xf32, #tpu.memory_space<vmem>>, vector<16x64xf32>
    %c0_2 = arith.constant 0 : index
    %c0_3 = arith.constant 0 : index
    %4 = vector.load %arg3[%c0_2, %c0_3] : memref<16x32xbf16, #tpu.memory_space<vmem>>, vector<16x32xbf16>
    %c0_4 = arith.constant 0 : index
    %c0_5 = arith.constant 0 : index
    %5 = vector.load %arg4[%c0_4, %c0_5] : memref<32x64xbf16, #tpu.memory_space<vmem>>, vector<32x64xbf16>
    %cst = arith.constant dense<0.000000e+00> : vector<16x64xf32>
    %6 = tpu.matmul %4, %5, %cst {dimension_numbers = #tpu.dot_dimension_numbers<[1], [0], [0], [1], [0, 0, 1, 1], [], []>} : vector<16x32xbf16>, vector<32x64xbf16>, vector<16x64xf32> -> vector<16x64xf32>
    %7 = arith.addf %3, %6 : vector<16x64xf32>
    %c0_6 = arith.constant 0 : index
    %c0_7 = arith.constant 0 : index
    %8 = vector.load %arg7[%c0_6, %c0_7] : memref<16x64xf32, #tpu.memory_space<vmem>>, vector<16x64xf32>
    tpu.vector_store %arg7[%c0_6, %c0_7], %7 {strides = array<i32>} : memref<16x64xf32, #tpu.memory_space<vmem>>, vector<16x64xf32>,
    %c0_i32_8 = arith.constant 0 : i32
    %9 = arith.cmpi eq, %arg2, %c0_i32_8 : i32
    %10 = arith.extui %9 : i1 to i32
    %c0_i32_9 = arith.constant 0 : i32
    %11 = arith.cmpi ne, %10, %c0_i32_9 : i32
    scf.if %11 {
      %c0_10 = arith.constant 0 : index
      %c0_11 = arith.constant 0 : index
      %12 = vector.load %arg7[%c0_10, %c0_11] : memref<16x64xf32, #tpu.memory_space<vmem>>, vector<16x64xf32>
      %c0_12 = arith.constant 0 : index
      %c0_13 = arith.constant 0 : index
      %13 = vector.load %arg5[%c0_12, %c0_13] : memref<1x64xf32, #tpu.memory_space<vmem>>, vector<1x64xf32>
      %14 = vector.broadcast %13 : vector<1x64xf32> to vector<16x64xf32>
      %15 = arith.addf %12, %14 : vector<16x64xf32>
      %16 = arith.mulf %15, %15 : vector<16x64xf32>
      %17 = arith.mulf %15, %16 : vector<16x64xf32>
      %cst_14 = arith.constant 4.471500e-02 : f32
      %18 = vector.broadcast %cst_14 : f32 to vector<16x64xf32>
      %19 = arith.mulf %18, %17 : vector<16x64xf32>
      %20 = arith.addf %15, %19 : vector<16x64xf32>
      %cst_15 = arith.constant 0.797884583 : f32
      %21 = vector.broadcast %cst_15 : f32 to vector<16x64xf32>
      %22 = arith.mulf %21, %20 : vector<16x64xf32>
      %23 = math.tanh %22 : vector<16x64xf32>
      %cst_16 = arith.constant 1.000000e+00 : f32
      %24 = vector.broadcast %cst_16 : f32 to vector<16x64xf32>
      %25 = arith.addf %24, %23 : vector<16x64xf32>
      %cst_17 = arith.constant 5.000000e-01 : f32
      %26 = vector.broadcast %cst_17 : f32 to vector<16x64xf32>
      %27 = arith.mulf %26, %25 : vector<16x64xf32>
      %28 = arith.mulf %15, %27 : vector<16x64xf32>
      %29 = arith.truncf %28 : vector<16x64xf32> to vector<16x64xbf16>
      %c0_18 = arith.constant 0 : index
      %c0_19 = arith.constant 0 : index
      %30 = vector.load %arg6[%c0_18, %c0_19] : memref<16x64xbf16, #tpu.memory_space<vmem>>, vector<16x64xbf16>
      tpu.vector_store %arg6[%c0_18, %c0_19], %29 {strides = array<i32>} : memref<16x64xbf16, #tpu.memory_space<vmem>>, vector<16x64xbf16>,
    } else {
    }
    return
  }
  func.func @transform_0(%arg0: i32, %arg1: i32, %arg2: i32) -> (i32, i32) {
    %c0_i32 = arith.constant 0 : i32
    return %arg0, %arg2 : i32, i32
  }
  func.func @transform_1(%arg0: i32, %arg1: i32, %arg2: i32) -> (i32, i32) {
    %c0_i32 = arith.constant 0 : i32
    return %arg2, %arg1 : i32, i32
  }
  func.func @transform_2(%arg0: i32, %arg1: i32, %arg2: i32) -> (i32, i32) {
    %c0_i32 = arith.constant 0 : i32
    %c0_i32_0 = arith.constant 0 : i32
    return %c0_i32, %arg1 : i32, i32
  }
  func.func @transform_3(%arg0: i32, %arg1: i32, %arg2: i32) -> (i32, i32) {
    %c0_i32 = arith.constant 0 : i32
    return %arg0, %arg1 : i32, i32
  }
}

module attributes {stable_mosaic.version = 11 : i64} {
  func.func @_ln_kernel(%arg0: i32, %arg1: memref<16x32xbf16, #tpu.memory_space<vmem>>, %arg2: memref<16x32xbf16, #tpu.memory_space<vmem>>, %arg3: memref<1x32xf32, #tpu.memory_space<vmem>>, %arg4: memref<1x32xf32, #tpu.memory_space<vmem>>, %arg5: memref<16x32xbf16, #tpu.memory_space<vmem>>) attributes {dimension_semantics = [#tpu.dimension_semantics<parallel>], iteration_bounds = array<i64: 1>, scalar_prefetch = 0 : i64, scratch_operands = 0 : i64, tpu.core_type = #tpu.core_type<tc>, window_params = [{transform_indices = @transform_0, window_bounds = array<i64: 16, 32>}, {transform_indices = @transform_1, window_bounds = array<i64: 16, 32>}, {pipeline_mode = #tpu.pipeline_mode<synchronous>, transform_indices = @transform_2, window_bounds = array<i64: 1, 32>}, {pipeline_mode = #tpu.pipeline_mode<synchronous>, transform_indices = @transform_3, window_bounds = array<i64: 1, 32>}, {transform_indices = @transform_4, window_bounds = array<i64: 16, 32>}]} {
    %c0 = arith.constant 0 : index
    %c0_0 = arith.constant 0 : index
    %0 = vector.load %arg1[%c0, %c0_0] : memref<16x32xbf16, #tpu.memory_space<vmem>>, vector<16x32xbf16>
    %1 = arith.extf %0 : vector<16x32xbf16> to vector<16x32xf32>
    %c0_1 = arith.constant 0 : index
    %c0_2 = arith.constant 0 : index
    %2 = vector.load %arg2[%c0_1, %c0_2] : memref<16x32xbf16, #tpu.memory_space<vmem>>, vector<16x32xbf16>
    %3 = arith.extf %2 : vector<16x32xbf16> to vector<16x32xf32>
    %4 = arith.addf %1, %3 : vector<16x32xf32>
    %cst = arith.constant dense<0.000000e+00> : vector<16xf32>
    %5 = vector.multi_reduction <add>, %4, %cst [1] : vector<16x32xf32> to vector<16xf32>
    %6 = vector.shape_cast %5 : vector<16xf32> to vector<16x1xf32>
    %cst_3 = arith.constant 3.200000e+01 : f32
    %7 = vector.broadcast %cst_3 : f32 to vector<16x1xf32>
    %8 = arith.divf %6, %7 : vector<16x1xf32>
    %9 = vector.broadcast %8 : vector<16x1xf32> to vector<16x32xf32>
    %10 = arith.subf %4, %9 : vector<16x32xf32>
    %11 = arith.mulf %10, %10 : vector<16x32xf32>
    %cst_4 = arith.constant dense<0.000000e+00> : vector<16xf32>
    %12 = vector.multi_reduction <add>, %11, %cst_4 [1] : vector<16x32xf32> to vector<16xf32>
    %13 = vector.shape_cast %12 : vector<16xf32> to vector<16x1xf32>
    %cst_5 = arith.constant 3.200000e+01 : f32
    %14 = vector.broadcast %cst_5 : f32 to vector<16x1xf32>
    %15 = arith.divf %13, %14 : vector<16x1xf32>
    %cst_6 = arith.constant 9.99999996E-13 : f32
    %16 = vector.broadcast %cst_6 : f32 to vector<16x1xf32>
    %17 = arith.addf %15, %16 : vector<16x1xf32>
    %18 = math.rsqrt %17 : vector<16x1xf32>
    %19 = vector.broadcast %18 : vector<16x1xf32> to vector<16x32xf32>
    %20 = arith.mulf %10, %19 : vector<16x32xf32>
    %c0_7 = arith.constant 0 : index
    %c0_8 = arith.constant 0 : index
    %21 = vector.load %arg3[%c0_7, %c0_8] : memref<1x32xf32, #tpu.memory_space<vmem>>, vector<1x32xf32>
    %22 = vector.broadcast %21 : vector<1x32xf32> to vector<16x32xf32>
    %23 = arith.mulf %20, %22 : vector<16x32xf32>
    %c0_9 = arith.constant 0 : index
    %c0_10 = arith.constant 0 : index
    %24 = vector.load %arg4[%c0_9, %c0_10] : memref<1x32xf32, #tpu.memory_space<vmem>>, vector<1x32xf32>
    %25 = vector.broadcast %24 : vector<1x32xf32> to vector<16x32xf32>
    %26 = arith.addf %23, %25 : vector<16x32xf32>
    %27 = arith.truncf %26 : vector<16x32xf32> to vector<16x32xbf16>
    %c0_11 = arith.constant 0 : index
    %c0_12 = arith.constant 0 : index
    %28 = vector.load %arg5[%c0_11, %c0_12] : memref<16x32xbf16, #tpu.memory_space<vmem>>, vector<16x32xbf16>
    tpu.vector_store %arg5[%c0_11, %c0_12], %27 {strides = array<i32>} : memref<16x32xbf16, #tpu.memory_space<vmem>>, vector<16x32xbf16>,
    return
  }
  func.func @transform_0(%arg0: i32) -> (i32, i32) {
    %c0_i32 = arith.constant 0 : i32
    %c0_i32_0 = arith.constant 0 : i32
    return %arg0, %c0_i32 : i32, i32
  }
  func.func @transform_1(%arg0: i32) -> (i32, i32) {
    %c0_i32 = arith.constant 0 : i32
    %c0_i32_0 = arith.constant 0 : i32
    return %arg0, %c0_i32 : i32, i32
  }
  func.func @transform_2(%arg0: i32) -> (i32, i32) {
    %c0_i32 = arith.constant 0 : i32
    %c0_i32_0 = arith.constant 0 : i32
    %c0_i32_1 = arith.constant 0 : i32
    return %c0_i32, %c0_i32_0 : i32, i32
  }
  func.func @transform_3(%arg0: i32) -> (i32, i32) {
    %c0_i32 = arith.constant 0 : i32
    %c0_i32_0 = arith.constant 0 : i32
    %c0_i32_1 = arith.constant 0 : i32
    return %c0_i32, %c0_i32_0 : i32, i32
  }
  func.func @transform_4(%arg0: i32) -> (i32, i32) {
    %c0_i32 = arith.constant 0 : i32
    %c0_i32_0 = arith.constant 0 : i32
    return %arg0, %c0_i32 : i32, i32
  }
}

module attributes {stable_mosaic.version = 11 : i64} {
  func.func @_ln_kernel(%arg0: i32, %arg1: memref<16x32xbf16, #tpu.memory_space<vmem>>, %arg2: memref<1x32xf32, #tpu.memory_space<vmem>>, %arg3: memref<1x32xf32, #tpu.memory_space<vmem>>, %arg4: memref<16x32xbf16, #tpu.memory_space<vmem>>) attributes {dimension_semantics = [#tpu.dimension_semantics<parallel>], iteration_bounds = array<i64: 1>, scalar_prefetch = 0 : i64, scratch_operands = 0 : i64, tpu.core_type = #tpu.core_type<tc>, window_params = [{transform_indices = @transform_0, window_bounds = array<i64: 16, 32>}, {pipeline_mode = #tpu.pipeline_mode<synchronous>, transform_indices = @transform_1, window_bounds = array<i64: 1, 32>}, {pipeline_mode = #tpu.pipeline_mode<synchronous>, transform_indices = @transform_2, window_bounds = array<i64: 1, 32>}, {transform_indices = @transform_3, window_bounds = array<i64: 16, 32>}]} {
    %c0 = arith.constant 0 : index
    %c0_0 = arith.constant 0 : index
    %0 = vector.load %arg1[%c0, %c0_0] : memref<16x32xbf16, #tpu.memory_space<vmem>>, vector<16x32xbf16>
    %1 = arith.extf %0 : vector<16x32xbf16> to vector<16x32xf32>
    %cst = arith.constant dense<0.000000e+00> : vector<16xf32>
    %2 = vector.multi_reduction <add>, %1, %cst [1] : vector<16x32xf32> to vector<16xf32>
    %3 = vector.shape_cast %2 : vector<16xf32> to vector<16x1xf32>
    %cst_1 = arith.constant 3.200000e+01 : f32
    %4 = vector.broadcast %cst_1 : f32 to vector<16x1xf32>
    %5 = arith.divf %3, %4 : vector<16x1xf32>
    %6 = vector.broadcast %5 : vector<16x1xf32> to vector<16x32xf32>
    %7 = arith.subf %1, %6 : vector<16x32xf32>
    %8 = arith.mulf %7, %7 : vector<16x32xf32>
    %cst_2 = arith.constant dense<0.000000e+00> : vector<16xf32>
    %9 = vector.multi_reduction <add>, %8, %cst_2 [1] : vector<16x32xf32> to vector<16xf32>
    %10 = vector.shape_cast %9 : vector<16xf32> to vector<16x1xf32>
    %cst_3 = arith.constant 3.200000e+01 : f32
    %11 = vector.broadcast %cst_3 : f32 to vector<16x1xf32>
    %12 = arith.divf %10, %11 : vector<16x1xf32>
    %cst_4 = arith.constant 9.99999996E-13 : f32
    %13 = vector.broadcast %cst_4 : f32 to vector<16x1xf32>
    %14 = arith.addf %12, %13 : vector<16x1xf32>
    %15 = math.rsqrt %14 : vector<16x1xf32>
    %16 = vector.broadcast %15 : vector<16x1xf32> to vector<16x32xf32>
    %17 = arith.mulf %7, %16 : vector<16x32xf32>
    %c0_5 = arith.constant 0 : index
    %c0_6 = arith.constant 0 : index
    %18 = vector.load %arg2[%c0_5, %c0_6] : memref<1x32xf32, #tpu.memory_space<vmem>>, vector<1x32xf32>
    %19 = vector.broadcast %18 : vector<1x32xf32> to vector<16x32xf32>
    %20 = arith.mulf %17, %19 : vector<16x32xf32>
    %c0_7 = arith.constant 0 : index
    %c0_8 = arith.constant 0 : index
    %21 = vector.load %arg3[%c0_7, %c0_8] : memref<1x32xf32, #tpu.memory_space<vmem>>, vector<1x32xf32>
    %22 = vector.broadcast %21 : vector<1x32xf32> to vector<16x32xf32>
    %23 = arith.addf %20, %22 : vector<16x32xf32>
    %24 = arith.truncf %23 : vector<16x32xf32> to vector<16x32xbf16>
    %c0_9 = arith.constant 0 : index
    %c0_10 = arith.constant 0 : index
    %25 = vector.load %arg4[%c0_9, %c0_10] : memref<16x32xbf16, #tpu.memory_space<vmem>>, vector<16x32xbf16>
    tpu.vector_store %arg4[%c0_9, %c0_10], %24 {strides = array<i32>} : memref<16x32xbf16, #tpu.memory_space<vmem>>, vector<16x32xbf16>,
    return
  }
  func.func @transform_0(%arg0: i32) -> (i32, i32) {
    %c0_i32 = arith.constant 0 : i32
    %c0_i32_0 = arith.constant 0 : i32
    return %arg0, %c0_i32 : i32, i32
  }
  func.func @transform_1(%arg0: i32) -> (i32, i32) {
    %c0_i32 = arith.constant 0 : i32
    %c0_i32_0 = arith.constant 0 : i32
    %c0_i32_1 = arith.constant 0 : i32
    return %c0_i32, %c0_i32_0 : i32, i32
  }
  func.func @transform_2(%arg0: i32) -> (i32, i32) {
    %c0_i32 = arith.constant 0 : i32
    %c0_i32_0 = arith.constant 0 : i32
    %c0_i32_1 = arith.constant 0 : i32
    return %c0_i32, %c0_i32_0 : i32, i32
  }
  func.func @transform_3(%arg0: i32) -> (i32, i32) {
    %c0_i32 = arith.constant 0 : i32
    %c0_i32_0 = arith.constant 0 : i32
    return %arg0, %c0_i32 : i32, i32
  }
}

module attributes {stable_mosaic.version = 11 : i64} {
  func.func @_linear_kernel(%arg0: i32, %arg1: i32, %arg2: i32, %arg3: memref<16x64xbf16, #tpu.memory_space<vmem>>, %arg4: memref<64x32xbf16, #tpu.memory_space<vmem>>, %arg5: memref<1x32xf32, #tpu.memory_space<vmem>>, %arg6: memref<16x32xbf16, #tpu.memory_space<vmem>>, %arg7: memref<16x32xf32, #tpu.memory_space<vmem>>) attributes {dimension_semantics = [#tpu.dimension_semantics<parallel>, #tpu.dimension_semantics<parallel>, #tpu.dimension_semantics<arbitrary>], iteration_bounds = array<i64: 1, 1, 1>, scalar_prefetch = 0 : i64, scratch_operands = 1 : i64, tpu.core_type = #tpu.core_type<tc>, window_params = [{transform_indices = @transform_0, window_bounds = array<i64: 16, 64>}, {transform_indices = @transform_1, window_bounds = array<i64: 64, 32>}, {transform_indices = @transform_2, window_bounds = array<i64: 1, 32>}, {transform_indices = @transform_3, window_bounds = array<i64: 16, 32>}]} {
    %c0_i32 = arith.constant 0 : i32
    %0 = arith.cmpi eq, %arg2, %c0_i32 : i32
    %1 = arith.extui %0 : i1 to i32
    %c0_i32_0 = arith.constant 0 : i32
    %2 = arith.cmpi ne, %1, %c0_i32_0 : i32
    scf.if %2 {
      %cst_10 = arith.constant 0.000000e+00 : f32
      %12 = vector.broadcast %cst_10 : f32 to vector<16x32xf32>
      %c0_11 = arith.constant 0 : index
      %c0_12 = arith.constant 0 : index
      %13 = vector.load %arg7[%c0_11, %c0_12] : memref<16x32xf32, #tpu.memory_space<vmem>>, vector<16x32xf32>
      tpu.vector_store %arg7[%c0_11, %c0_12], %12 {strides = array<i32>} : memref<16x32xf32, #tpu.memory_space<vmem>>, vector<16x32xf32>,
    } else {
    }
    %c0 = arith.constant 0 : index
    %c0_1 = arith.constant 0 : index
    %3 = vector.load %arg7[%c0, %c0_1] : memref<16x32xf32, #tpu.memory_space<vmem>>, vector<16x32xf32>
    %c0_2 = arith.constant 0 : index
    %c0_3 = arith.constant 0 : index
    %4 = vector.load %arg3[%c0_2, %c0_3] : memref<16x64xbf16, #tpu.memory_space<vmem>>, vector<16x64xbf16>
    %c0_4 = arith.constant 0 : index
    %c0_5 = arith.constant 0 : index
    %5 = vector.load %arg4[%c0_4, %c0_5] : memref<64x32xbf16, #tpu.memory_space<vmem>>, vector<64x32xbf16>
    %cst = arith.constant dense<0.000000e+00> : vector<16x32xf32>
    %6 = tpu.matmul %4, %5, %cst {dimension_numbers = #tpu.dot_dimension_numbers<[1], [0], [0], [1], [0, 0, 1, 1], [], []>} : vector<16x64xbf16>, vector<64x32xbf16>, vector<16x32xf32> -> vector<16x32xf32>
    %7 = arith.addf %3, %6 : vector<16x32xf32>
    %c0_6 = arith.constant 0 : index
    %c0_7 = arith.constant 0 : index
    %8 = vector.load %arg7[%c0_6, %c0_7] : memref<16x32xf32, #tpu.memory_space<vmem>>, vector<16x32xf32>
    tpu.vector_store %arg7[%c0_6, %c0_7], %7 {strides = array<i32>} : memref<16x32xf32, #tpu.memory_space<vmem>>, vector<16x32xf32>,
    %c0_i32_8 = arith.constant 0 : i32
    %9 = arith.cmpi eq, %arg2, %c0_i32_8 : i32
    %10 = arith.extui %9 : i1 to i32
    %c0_i32_9 = arith.constant 0 : i32
    %11 = arith.cmpi ne, %10, %c0_i32_9 : i32
    scf.if %11 {
      %c0_10 = arith.constant 0 : index
      %c0_11 = arith.constant 0 : index
      %12 = vector.load %arg7[%c0_10, %c0_11] : memref<16x32xf32, #tpu.memory_space<vmem>>, vector<16x32xf32>
      %c0_12 = arith.constant 0 : index
      %c0_13 = arith.constant 0 : index
      %13 = vector.load %arg5[%c0_12, %c0_13] : memref<1x32xf32, #tpu.memory_space<vmem>>, vector<1x32xf32>
      %14 = vector.broadcast %13 : vector<1x32xf32> to vector<16x32xf32>
      %15 = arith.addf %12, %14 : vector<16x32xf32>
      %16 = arith.truncf %15 : vector<16x32xf32> to vector<16x32xbf16>
      %c0_14 = arith.constant 0 : index
      %c0_15 = arith.constant 0 : index
      %17 = vector.load %arg6[%c0_14, %c0_15] : memref<16x32xbf16, #tpu.memory_space<vmem>>, vector<16x32xbf16>
      tpu.vector_store %arg6[%c0_14, %c0_15], %16 {strides = array<i32>} : memref<16x32xbf16, #tpu.memory_space<vmem>>, vector<16x32xbf16>,
    } else {
    }
    return
  }
  func.func @transform_0(%arg0: i32, %arg1: i32, %arg2: i32) -> (i32, i32) {
    %c0_i32 = arith.constant 0 : i32
    return %arg0, %arg2 : i32, i32
  }
  func.func @transform_1(%arg0: i32, %arg1: i32, %arg2: i32) -> (i32, i32) {
    %c0_i32 = arith.constant 0 : i32
    return %arg2, %arg1 : i32, i32
  }
  func.func @transform_2(%arg0: i32, %arg1: i32, %arg2: i32) -> (i32, i32) {
    %c0_i32 = arith.constant 0 : i32
    %c0_i32_0 = arith.constant 0 : i32
    return %c0_i32, %arg1 : i32, i32
  }
  func.func @transform_3(%arg0: i32, %arg1: i32, %arg2: i32) -> (i32, i32) {
    %c0_i32 = arith.constant 0 : i32
    return %arg0, %arg1 : i32, i32
  }
}

module attributes {stable_mosaic.version = 11 : i64} {
  func.func @_linear_kernel(%arg0: i32, %arg1: i32, %arg2: i32, %arg3: memref<16x32xbf16, #tpu.memory_space<vmem>>, %arg4: memref<32x128xbf16, #tpu.memory_space<vmem>>, %arg5: memref<1x128xf32, #tpu.memory_space<vmem>>, %arg6: memref<16x128xf32, #tpu.memory_space<vmem>>, %arg7: memref<16x128xf32, #tpu.memory_space<vmem>>) attributes {dimension_semantics = [#tpu.dimension_semantics<parallel>, #tpu.dimension_semantics<parallel>, #tpu.dimension_semantics<arbitrary>], iteration_bounds = array<i64: 1, 1, 1>, scalar_prefetch = 0 : i64, scratch_operands = 1 : i64, tpu.core_type = #tpu.core_type<tc>, window_params = [{transform_indices = @transform_0, window_bounds = array<i64: 16, 32>}, {transform_indices = @transform_1, window_bounds = array<i64: 32, 128>}, {transform_indices = @transform_2, window_bounds = array<i64: 1, 128>}, {transform_indices = @transform_3, window_bounds = array<i64: 16, 128>}]} {
    %c0_i32 = arith.constant 0 : i32
    %0 = arith.cmpi eq, %arg2, %c0_i32 : i32
    %1 = arith.extui %0 : i1 to i32
    %c0_i32_0 = arith.constant 0 : i32
    %2 = arith.cmpi ne, %1, %c0_i32_0 : i32
    scf.if %2 {
      %cst_10 = arith.constant 0.000000e+00 : f32
      %12 = vector.broadcast %cst_10 : f32 to vector<16x128xf32>
      %c0_11 = arith.constant 0 : index
      %c0_12 = arith.constant 0 : index
      %13 = vector.load %arg7[%c0_11, %c0_12] : memref<16x128xf32, #tpu.memory_space<vmem>>, vector<16x128xf32>
      tpu.vector_store %arg7[%c0_11, %c0_12], %12 {strides = array<i32>} : memref<16x128xf32, #tpu.memory_space<vmem>>, vector<16x128xf32>,
    } else {
    }
    %c0 = arith.constant 0 : index
    %c0_1 = arith.constant 0 : index
    %3 = vector.load %arg7[%c0, %c0_1] : memref<16x128xf32, #tpu.memory_space<vmem>>, vector<16x128xf32>
    %c0_2 = arith.constant 0 : index
    %c0_3 = arith.constant 0 : index
    %4 = vector.load %arg3[%c0_2, %c0_3] : memref<16x32xbf16, #tpu.memory_space<vmem>>, vector<16x32xbf16>
    %c0_4 = arith.constant 0 : index
    %c0_5 = arith.constant 0 : index
    %5 = vector.load %arg4[%c0_4, %c0_5] : memref<32x128xbf16, #tpu.memory_space<vmem>>, vector<32x128xbf16>
    %cst = arith.constant dense<0.000000e+00> : vector<16x128xf32>
    %6 = tpu.matmul %4, %5, %cst {dimension_numbers = #tpu.dot_dimension_numbers<[1], [0], [0], [1], [0, 0, 1, 1], [], []>} : vector<16x32xbf16>, vector<32x128xbf16>, vector<16x128xf32> -> vector<16x128xf32>
    %7 = arith.addf %3, %6 : vector<16x128xf32>
    %c0_6 = arith.constant 0 : index
    %c0_7 = arith.constant 0 : index
    %8 = vector.load %arg7[%c0_6, %c0_7] : memref<16x128xf32, #tpu.memory_space<vmem>>, vector<16x128xf32>
    tpu.vector_store %arg7[%c0_6, %c0_7], %7 {strides = array<i32>} : memref<16x128xf32, #tpu.memory_space<vmem>>, vector<16x128xf32>,
    %c0_i32_8 = arith.constant 0 : i32
    %9 = arith.cmpi eq, %arg2, %c0_i32_8 : i32
    %10 = arith.extui %9 : i1 to i32
    %c0_i32_9 = arith.constant 0 : i32
    %11 = arith.cmpi ne, %10, %c0_i32_9 : i32
    scf.if %11 {
      %c0_10 = arith.constant 0 : index
      %c0_11 = arith.constant 0 : index
      %12 = vector.load %arg7[%c0_10, %c0_11] : memref<16x128xf32, #tpu.memory_space<vmem>>, vector<16x128xf32>
      %c0_12 = arith.constant 0 : index
      %c0_13 = arith.constant 0 : index
      %13 = vector.load %arg5[%c0_12, %c0_13] : memref<1x128xf32, #tpu.memory_space<vmem>>, vector<1x128xf32>
      %14 = vector.broadcast %13 : vector<1x128xf32> to vector<16x128xf32>
      %15 = arith.addf %12, %14 : vector<16x128xf32>
      %c0_14 = arith.constant 0 : index
      %c0_15 = arith.constant 0 : index
      %16 = vector.load %arg6[%c0_14, %c0_15] : memref<16x128xf32, #tpu.memory_space<vmem>>, vector<16x128xf32>
      tpu.vector_store %arg6[%c0_14, %c0_15], %15 {strides = array<i32>} : memref<16x128xf32, #tpu.memory_space<vmem>>, vector<16x128xf32>,
    } else {
    }
    return
  }
  func.func @transform_0(%arg0: i32, %arg1: i32, %arg2: i32) -> (i32, i32) {
    %c0_i32 = arith.constant 0 : i32
    return %arg0, %arg2 : i32, i32
  }
  func.func @transform_1(%arg0: i32, %arg1: i32, %arg2: i32) -> (i32, i32) {
    %c0_i32 = arith.constant 0 : i32
    return %arg2, %arg1 : i32, i32
  }
  func.func @transform_2(%arg0: i32, %arg1: i32, %arg2: i32) -> (i32, i32) {
    %c0_i32 = arith.constant 0 : i32
    %c0_i32_0 = arith.constant 0 : i32
    return %c0_i32, %arg1 : i32, i32
  }
  func.func @transform_3(%arg0: i32, %arg1: i32, %arg2: i32) -> (i32, i32) {
    %c0_i32 = arith.constant 0 : i32
    return %arg0, %arg1 : i32, i32
  }
}

module attributes {stable_mosaic.version = 11 : i64} {
  func.func @_xent_kernel(%arg0: i32, %arg1: memref<16x128xf32, #tpu.memory_space<vmem>>, %arg2: memref<16x1xi32, #tpu.memory_space<vmem>>, %arg3: memref<1x1xf32, #tpu.memory_space<vmem>>, %arg4: memref<1x1xf32, #tpu.memory_space<vmem>>) attributes {dimension_semantics = [#tpu.dimension_semantics<arbitrary>], iteration_bounds = array<i64: 1>, scalar_prefetch = 0 : i64, scratch_operands = 0 : i64, tpu.core_type = #tpu.core_type<tc>, window_params = [{transform_indices = @transform_0, window_bounds = array<i64: 16, 128>}, {transform_indices = @transform_1, window_bounds = array<i64: 16, 1>}, {pipeline_mode = #tpu.pipeline_mode<synchronous>, transform_indices = @transform_2, window_bounds = array<i64: 1, 1>}, {pipeline_mode = #tpu.pipeline_mode<synchronous>, transform_indices = @transform_3, window_bounds = array<i64: 1, 1>}]} {
    %c0_i32 = arith.constant 0 : i32
    %0 = arith.cmpi eq, %arg0, %c0_i32 : i32
    %1 = arith.extui %0 : i1 to i32
    %c0_i32_0 = arith.constant 0 : i32
    %2 = arith.cmpi ne, %1, %c0_i32_0 : i32
    scf.if %2 {
      %cst_17 = arith.constant 0.000000e+00 : f32
      %37 = vector.broadcast %cst_17 : f32 to vector<1x1xf32>
      %c0_18 = arith.constant 0 : index
      %c0_19 = arith.constant 0 : index
      %38 = vector.load %arg3[%c0_18, %c0_19] : memref<1x1xf32, #tpu.memory_space<vmem>>, vector<1x1xf32>
      tpu.vector_store %arg3[%c0_18, %c0_19], %37 {strides = array<i32>} : memref<1x1xf32, #tpu.memory_space<vmem>>, vector<1x1xf32>,
      %cst_20 = arith.constant 0.000000e+00 : f32
      %39 = vector.broadcast %cst_20 : f32 to vector<1x1xf32>
      %c0_21 = arith.constant 0 : index
      %c0_22 = arith.constant 0 : index
      %40 = vector.load %arg4[%c0_21, %c0_22] : memref<1x1xf32, #tpu.memory_space<vmem>>, vector<1x1xf32>
      tpu.vector_store %arg4[%c0_21, %c0_22], %39 {strides = array<i32>} : memref<1x1xf32, #tpu.memory_space<vmem>>, vector<1x1xf32>,
    } else {
    }
    %c0 = arith.constant 0 : index
    %c0_1 = arith.constant 0 : index
    %3 = vector.load %arg1[%c0, %c0_1] : memref<16x128xf32, #tpu.memory_space<vmem>>, vector<16x128xf32>
    %c0_2 = arith.constant 0 : index
    %c0_3 = arith.constant 0 : index
    %4 = vector.load %arg2[%c0_2, %c0_3] : memref<16x1xi32, #tpu.memory_space<vmem>>, vector<16x1xi32>
    %c0_i32_4 = arith.constant 0 : i32
    %5 = vector.broadcast %c0_i32_4 : i32 to vector<16x1xi32>
    %6 = arith.cmpi sge, %4, %5 : vector<16x1xi32>
    %7 = arith.extui %6 : vector<16x1xi1> to vector<16x1xi32>
    %8 = arith.sitofp %7 : vector<16x1xi32> to vector<16x1xf32>
    %cst = arith.constant dense<0xFF800000> : vector<16xf32>
    %9 = vector.multi_reduction <maximumf>, %3, %cst [1] : vector<16x128xf32> to vector<16xf32>
    %10 = vector.shape_cast %9 : vector<16xf32> to vector<16x1xf32>
    %11 = vector.broadcast %10 : vector<16x1xf32> to vector<16x128xf32>
    %12 = arith.subf %3, %11 : vector<16x128xf32>
    %13 = math.exp %12 : vector<16x128xf32>
    %cst_5 = arith.constant dense<0.000000e+00> : vector<16xf32>
    %14 = vector.multi_reduction <add>, %13, %cst_5 [1] : vector<16x128xf32> to vector<16xf32>
    %15 = vector.shape_cast %14 : vector<16xf32> to vector<16x1xf32>
    %16 = math.log %15 : vector<16x1xf32>
    %17 = tpu.iota {dimensions = array<i32: 1>} : vector<16x128xi32>
    %18 = vector.broadcast %4 : vector<16x1xi32> to vector<16x128xi32>
    %19 = arith.cmpi eq, %17, %18 : vector<16x128xi32>
    %20 = arith.extui %19 : vector<16x128xi1> to vector<16x128xi32>
    %21 = arith.sitofp %20 : vector<16x128xi32> to vector<16x128xf32>
    %22 = arith.mulf %12, %21 : vector<16x128xf32>
    %cst_6 = arith.constant dense<0.000000e+00> : vector<16xf32>
    %23 = vector.multi_reduction <add>, %22, %cst_6 [1] : vector<16x128xf32> to vector<16xf32>
    %24 = vector.shape_cast %23 : vector<16xf32> to vector<16x1xf32>
    %25 = arith.subf %16, %24 : vector<16x1xf32>
    %26 = arith.mulf %25, %8 : vector<16x1xf32>
    %c0_7 = arith.constant 0 : index
    %c0_8 = arith.constant 0 : index
    %27 = vector.load %arg3[%c0_7, %c0_8] : memref<1x1xf32, #tpu.memory_space<vmem>>, vector<1x1xf32>
    %cst_9 = arith.constant dense<0.000000e+00> : vector<1xf32>
    %28 = vector.multi_reduction <add>, %26, %cst_9 [0] : vector<16x1xf32> to vector<1xf32>
    %29 = vector.shape_cast %28 : vector<1xf32> to vector<1x1xf32>
    %30 = arith.addf %27, %29 : vector<1x1xf32>
    %c0_10 = arith.constant 0 : index
    %c0_11 = arith.constant 0 : index
    %31 = vector.load %arg3[%c0_10, %c0_11] : memref<1x1xf32, #tpu.memory_space<vmem>>, vector<1x1xf32>
    tpu.vector_store %arg3[%c0_10, %c0_11], %30 {strides = array<i32>} : memref<1x1xf32, #tpu.memory_space<vmem>>, vector<1x1xf32>,
    %c0_12 = arith.constant 0 : index
    %c0_13 = arith.constant 0 : index
    %32 = vector.load %arg4[%c0_12, %c0_13] : memref<1x1xf32, #tpu.memory_space<vmem>>, vector<1x1xf32>
    %cst_14 = arith.constant dense<0.000000e+00> : vector<1xf32>
    %33 = vector.multi_reduction <add>, %8, %cst_14 [0] : vector<16x1xf32> to vector<1xf32>
    %34 = vector.shape_cast %33 : vector<1xf32> to vector<1x1xf32>
    %35 = arith.addf %32, %34 : vector<1x1xf32>
    %c0_15 = arith.constant 0 : index
    %c0_16 = arith.constant 0 : index
    %36 = vector.load %arg4[%c0_15, %c0_16] : memref<1x1xf32, #tpu.memory_space<vmem>>, vector<1x1xf32>
    tpu.vector_store %arg4[%c0_15, %c0_16], %35 {strides = array<i32>} : memref<1x1xf32, #tpu.memory_space<vmem>>, vector<1x1xf32>,
    return
  }
  func.func @transform_0(%arg0: i32) -> (i32, i32) {
    %c0_i32 = arith.constant 0 : i32
    %c0_i32_0 = arith.constant 0 : i32
    return %arg0, %c0_i32 : i32, i32
  }
  func.func @transform_1(%arg0: i32) -> (i32, i32) {
    %c0_i32 = arith.constant 0 : i32
    %c0_i32_0 = arith.constant 0 : i32
    return %arg0, %c0_i32 : i32, i32
  }
  func.func @transform_2(%arg0: i32) -> (i32, i32) {
    %c0_i32 = arith.constant 0 : i32
    %c0_i32_0 = arith.constant 0 : i32
    %c0_i32_1 = arith.constant 0 : i32
    return %c0_i32, %c0_i32_0 : i32, i32
  }
  func.func @transform_3(%arg0: i32) -> (i32, i32) {
    %c0_i32 = arith.constant 0 : i32
    %c0_i32_0 = arith.constant 0 : i32
    %c0_i32_1 = arith.constant 0 : i32
    return %c0_i32, %c0_i32_0 : i32, i32
  }
}

</mosaic_0001>

<bundles_post_ra>
// kernel: bert_for_token_classification.19
= control target key start
LH: loop header
LB: loop body
LE: loop exit
PB: predicated region body
PF: predicated region fallthrough
CT: control target
= control target key end

     0   :  { %vm19_vm0 = vcmask 785408   ;;  %v151_v0 = vmov 0.0   ;;  %vm152_vm1 = vmmov 0   ;;  %vm47_vm2 = vcmask 261120   ;;  %s195_s1 = inlined_call_operand.vmem [shape: bf16[32,96], index: 1, kind: input, shape index: {}]   ;;  %s196_s0 = inlined_call_operand.vmem [shape: bf16[16,32], index: 0, kind: input, shape index: {}]   ;;  %s197_s2 = inlined_call_operand.vmem [shape: f32[1,96], index: 2, kind: input, shape index: {}]   ;;  %s198_s3 = inlined_call_operand.vmem [shape: bf16[16,96], index: 3, kind: output, shape index: {}]  }
   0x1   :  { %138 = vmatprep.subr.bf16.mxu0 %v151_v0  ;;  %v148_v1 = vld [vmem:[%s195_s1 + $0x8] sm:$0xff]   ;;  %142 = vmatprep.mubr.msk.bf16.mxu0 %vm152_vm1, %v151_v0  ;;  %20 = vst.msk [vmem:[#allocation2] sm:$0xff] %vm19_vm0, %v151_v0  ;;  %21 = vst.msk [vmem:[#allocation2 + $0x8] sm:$0xff] %vm19_vm0, %v151_v0  ;;  %v149_v2 = vld [vmem:[%s195_s1] sm:$0xff]   ;;  %vm119_vm3 = vcmask 781312  }
   0x2   :  { %139 = vmatpush3.bf16.msra.mxu0 %v148_v1  ;;  %v150_v3 = vld [vmem:[%s196_s0] sm:$0xff]  }
   0x3   :  { %140 = vmatprep.subr.bf16.mxu0 %v151_v0  ;;  %v130_v12 = vld [vmem:[%s197_s2] ss:$0 sm:$0xff] }
   0x6   :  { %141 = vmatpush3.bf16.msra.mxu0 %v149_v2 }
   0x8   :  { %v22_v4 = vld [vmem:[#allocation2] sm:$0xff]  ;;  %v23_v8 = vld [vmem:[#allocation2 + $0x8] sm:$0xff] }
   0x9   :  { %143 = vmatmul.mubr.msk.bf16.vlgmr.msra.gmra.mxu0 %vm47_vm2, %v150_v3 }
  0xc9   :  { %v85_v5 = vpop.f32.mrf.mxu0 }
  0xca   :  { %v92_v6 = vadd.f32 %v85_v5, %v22_v4 }
  0xcb   :  { %v144_v7 = vpop.f32.mrf.mxu0 }
  0xcc   :  { %95 = vst.msk [vmem:[#allocation2] sm:$0xff] %vm19_vm0, %v92_v6 }
  0xcd   :  { %v88_v9 = vpop.f32.mrf.mxu0 }
  0xce   :  { %v93_v10 = vadd.f32 %v88_v9, %v23_v8 }
  0xcf   :  { %v145_v11 = vpop.f32.mrf.mxu0 }
  0xd0   :  { %96 = vst.msk [vmem:[#allocation2 + $0x8] sm:$0xff] %vm19_vm0, %v93_v10 }
  0xd3   :  { %v100_v13 = vld [vmem:[#allocation2] sm:$0xff] }
  0xd4   :  { %v109_v14 = vadd.f32 %v130_v12, %v100_v13 }
  0xd6   :  { %v133_v15 = vpack.c.bf16 %v109_v14, %v109_v14 }
  0xd7   :  { %v101_v16 = vld [vmem:[#allocation2 + $0x8] sm:$0xff] }
  0xd8   :  { %120 = vst.msk [vmem:[%s198_s3] sm:$0xf] %vm119_vm3, %v133_v15  ;;  %v110_v17 = vadd.f32 %v130_v12, %v101_v16 }
  0xda   :  { %v134_v18 = vpack.c.bf16 %v110_v17, %v110_v17 }
  0xdc   :  { %121 = vst.msk [vmem:[%s198_s3 + $0x4] sm:$0xf] %vm119_vm3, %v134_v18 }

// kernel: bert_for_token_classification.18
= control target key start
LH: loop header
LB: loop body
LE: loop exit
PB: predicated region body
PF: predicated region fallthrough
CT: control target
= control target key end

     0   :  { %vm16_vm0 = vcmask 261120   ;;  %vm70_vm1 = vcmask 257024   ;;  %s129_s0 = inlined_call_operand.vmem [shape: f32[16,32], index: 0, kind: input, shape index: {}]   ;;  %s130_s1 = inlined_call_operand.vmem [shape: f32[1,32], index: 1, kind: input, shape index: {}]   ;;  %s131_s2 = inlined_call_operand.vmem [shape: f32[1,32], index: 2, kind: input, shape index: {}]   ;;  %s132_s3 = inlined_call_operand.vmem [shape: bf16[16,32], index: 3, kind: output, shape index: {}]  }
   0x1   :  { %v14_v0 = vld [vmem:[%s129_s0] sm:$0xff]  ;;  %v15_v1 = vld [vmem:[%s129_s0 + $0x8] sm:$0xff] }
   0x2   :  { %v17_v2 = vsel %vm16_vm0, %v14_v0, 0.0  ;;  %v20_v3 = vsel %vm16_vm0, %v15_v1, 0.0  ;;  %v77_v21 = vld [vmem:[%s130_s1] ss:$0 sm:$0xff] }
   0x3   :  { %18 = vadd.xlane.f32.xlu0 %v17_v2  ;;  %v78_v23 = vld [vmem:[%s131_s2] ss:$0 sm:$0xff] }
   0x7   :  { %21 = vadd.xlane.f32.xlu0 %v20_v3 }
  0x8c   :  { %v19_v4 = vpop.xlane.xlu0 %18 }
  0x8d   :  { %v24_v5 = vmul.f32 0.03125, %v19_v4 }
  0x8f   :  { %v26_v6 = vsub.f32 %v14_v0, %v24_v5 }
  0x90   :  { %v22_v7 = vpop.xlane.xlu0 %21 }
  0x91   :  { %v25_v8 = vmul.f32 0.03125, %v22_v7  ;;  %v28_v9 = vmul.f32 %v26_v6, %v26_v6 }
  0x93   :  { %v27_v10 = vsub.f32 %v15_v1, %v25_v8  ;;  %v30_v11 = vsel %vm16_vm0, %v28_v9, 0.0 }
  0x94   :  { %31 = vadd.xlane.f32.xlu1 %v30_v11 }
  0x95   :  { %v29_v12 = vmul.f32 %v27_v10, %v27_v10 }
  0x97   :  { %v33_v13 = vsel %vm16_vm0, %v29_v12, 0.0 }
  0x98   :  { %34 = vadd.xlane.f32.xlu1 %v33_v13 }
 0x11d   :  { %v32_v14 = vpop.xlane.xlu1 %31 }
 0x11e   :  { %v36_v15 = vmul.f32 0.03125, %v32_v14 }
 0x120   :  { %v38_v16 = vadd.f32 1e-12, %v36_v15 }
 0x121   :  { %v35_v17 = vpop.xlane.xlu1 %34 }
 0x122   :  { %83 = vrsqrt.f32 %v38_v16  ;;  %v37_v18 = vmul.f32 0.03125, %v35_v17 }
 0x124   :  { %v39_v19 = vadd.f32 1e-12, %v37_v18 }
 0x126   :  { %85 = vrsqrt.f32 %v39_v19 }
 0x12f   :  { %v84_v20 = vpop.eup %83 }
 0x130   :  { %v42_v22 = vmul.f32 %v84_v20, %v26_v6 }
 0x132   :  { %v51_v24 = vmul.f32 %v77_v21, %v42_v22 }
 0x133   :  { %v86_v25 = vpop.eup %85 }
 0x134   :  { %v60_v26 = vadd.f32 %v78_v23, %v51_v24  ;;  %v43_v27 = vmul.f32 %v86_v25, %v27_v10 }
 0x136   :  { %v81_v28 = vpack.c.bf16 %v60_v26, %v60_v26  ;;  %v52_v29 = vmul.f32 %v77_v21, %v43_v27 }
 0x138   :  { %71 = vst.msk [vmem:[%s132_s3] sm:$0xf] %vm70_vm1, %v81_v28  ;;  %v61_v30 = vadd.f32 %v78_v23, %v52_v29 }
 0x13a   :  { %v82_v31 = vpack.c.bf16 %v61_v30, %v61_v30 }
 0x13c   :  { %72 = vst.msk [vmem:[%s132_s3 + $0x4] sm:$0xf] %vm70_vm1, %v82_v31 }

// kernel: bert_for_token_classification.21
= control target key start
LH: loop header
LB: loop body
LE: loop exit
PB: predicated region body
PF: predicated region fallthrough
CT: control target
= control target key end

     0   :  { %vm19_vm0 = vcmask 261120   ;;  %v150_v0 = vmov 0.0   ;;  %vm151_vm1 = vmmov 0   ;;  %vm118_vm2 = vcmask 257024   ;;  %s195_s1 = inlined_call_operand.vmem [shape: bf16[32,32], index: 1, kind: input, shape index: {}]   ;;  %s196_s0 = inlined_call_operand.vmem [shape: bf16[16,32], index: 0, kind: input, shape index: {}]   ;;  %s197_s2 = inlined_call_operand.vmem [shape: f32[1,32], index: 2, kind: input, shape index: {}]   ;;  %s198_s3 = inlined_call_operand.vmem [shape: bf16[16,32], index: 3, kind: output, shape index: {}]  }
   0x1   :  { %137 = vmatprep.subr.bf16.mxu0 %v150_v0  ;;  %v147_v1 = vld [vmem:[%s195_s1 + $0x8] sm:$0xff]   ;;  %141 = vmatprep.mubr.msk.bf16.mxu0 %vm151_vm1, %v150_v0  ;;  %20 = vst.msk [vmem:[#allocation2] sm:$0xff] %vm19_vm0, %v150_v0  ;;  %21 = vst.msk [vmem:[#allocation2 + $0x8] sm:$0xff] %vm19_vm0, %v150_v0  ;;  %v148_v2 = vld [vmem:[%s195_s1] sm:$0xff]  }
   0x2   :  { %138 = vmatpush3.bf16.msra.mxu0 %v147_v1  ;;  %v149_v3 = vld [vmem:[%s196_s0] sm:$0xff]  }
   0x3   :  { %139 = vmatprep.subr.bf16.mxu0 %v150_v0  ;;  %v129_v12 = vld [vmem:[%s197_s2] ss:$0 sm:$0xff] }
   0x6   :  { %140 = vmatpush3.bf16.msra.mxu0 %v148_v2 }
   0x8   :  { %v22_v4 = vld [vmem:[#allocation2] sm:$0xff]  ;;  %v23_v8 = vld [vmem:[#allocation2 + $0x8] sm:$0xff] }
   0x9   :  { %142 = vmatmul.mubr.msk.bf16.vlgmr.msra.gmra.mxu0 %vm19_vm0, %v149_v3 }
  0xc9   :  { %v85_v5 = vpop.f32.mrf.mxu0 }
  0xca   :  { %v92_v6 = vadd.f32 %v85_v5, %v22_v4 }
  0xcb   :  { %v143_v7 = vpop.f32.mrf.mxu0 }
  0xcc   :  { %94 = vst.msk [vmem:[#allocation2] sm:$0xff] %vm19_vm0, %v92_v6 }
  0xcd   :  { %v88_v9 = vpop.f32.mrf.mxu0 }
  0xce   :  { %v93_v10 = vadd.f32 %v88_v9, %v23_v8 }
  0xcf   :  { %v144_v11 = vpop.f32.mrf.mxu0 }
  0xd0   :  { %95 = vst.msk [vmem:[#allocation2 + $0x8] sm:$0xff] %vm19_vm0, %v93_v10 }
  0xd3   :  { %v99_v13 = vld [vmem:[#allocation2] sm:$0xff] }
  0xd4   :  { %v108_v14 = vadd.f32 %v129_v12, %v99_v13 }
  0xd6   :  { %v132_v15 = vpack.c.bf16 %v108_v14, %v108_v14 }
  0xd7   :  { %v100_v16 = vld [vmem:[#allocation2 + $0x8] sm:$0xff] }
  0xd8   :  { %119 = vst.msk [vmem:[%s198_s3] sm:$0xf] %vm118_vm2, %v132_v15  ;;  %v109_v17 = vadd.f32 %v129_v12, %v100_v16 }
  0xda   :  { %v133_v18 = vpack.c.bf16 %v109_v17, %v109_v17 }
  0xdc   :  { %120 = vst.msk [vmem:[%s198_s3 + $0x4] sm:$0xf] %vm118_vm2, %v133_v18 }

// kernel: bert_for_token_classification.23
= control target key start
LH: loop header
LB: loop body
LE: loop exit
PB: predicated region body
PF: predicated region fallthrough
CT: control target
= control target key end

     0   :  { %vm19_vm0 = vcmask 523264   ;;  %v173_v0 = vmov 0.0   ;;  %vm174_vm1 = vmmov 0   ;;  %vm47_vm2 = vcmask 261120   ;;  %s217_s1 = inlined_call_operand.vmem [shape: bf16[32,64], index: 1, kind: input, shape index: {}]   ;;  %s218_s0 = inlined_call_operand.vmem [shape: bf16[16,32], index: 0, kind: input, shape index: {}]   ;;  %s219_s2 = inlined_call_operand.vmem [shape: f32[1,64], index: 2, kind: input, shape index: {}]   ;;  %s220_s3 = inlined_call_operand.vmem [shape: bf16[16,64], index: 3, kind: output, shape index: {}]  }
   0x1   :  { %156 = vmatprep.subr.bf16.mxu0 %v173_v0  ;;  %v166_v1 = vld [vmem:[%s217_s1 + $0x8] sm:$0xff]   ;;  %160 = vmatprep.mubr.msk.bf16.mxu0 %vm174_vm1, %v173_v0  ;;  %20 = vst.msk [vmem:[#allocation2] sm:$0xff] %vm19_vm0, %v173_v0  ;;  %21 = vst.msk [vmem:[#allocation2 + $0x8] sm:$0xff] %vm19_vm0, %v173_v0  ;;  %v167_v2 = vld [vmem:[%s217_s1] sm:$0xff]   ;;  %vm137_vm3 = vcmask 519168  }
   0x2   :  { %157 = vmatpush3.bf16.msra.mxu0 %v166_v1  ;;  %v168_v3 = vld [vmem:[%s218_s0] sm:$0xff]  }
   0x3   :  { %158 = vmatprep.subr.bf16.mxu0 %v173_v0  ;;  %v148_v12 = vld [vmem:[%s219_s2] ss:$0 sm:$0xff] }
   0x6   :  { %159 = vmatpush3.bf16.msra.mxu0 %v167_v2 }
   0x8   :  { %v22_v4 = vld [vmem:[#allocation2] sm:$0xff]  ;;  %v23_v8 = vld [vmem:[#allocation2 + $0x8] sm:$0xff] }
   0x9   :  { %161 = vmatmul.mubr.msk.bf16.vlgmr.msra.gmra.mxu0 %vm47_vm2, %v168_v3 }
  0xc9   :  { %v85_v5 = vpop.f32.mrf.mxu0 }
  0xca   :  { %v92_v6 = vadd.f32 %v85_v5, %v22_v4 }
  0xcb   :  { %v162_v7 = vpop.f32.mrf.mxu0 }
  0xcc   :  { %95 = vst.msk [vmem:[#allocation2] sm:$0xff] %vm19_vm0, %v92_v6 }
  0xcd   :  { %v88_v9 = vpop.f32.mrf.mxu0 }
  0xce   :  { %v93_v10 = vadd.f32 %v88_v9, %v23_v8 }
  0xcf   :  { %v163_v11 = vpop.f32.mrf.mxu0 }
  0xd0   :  { %96 = vst.msk [vmem:[#allocation2 + $0x8] sm:$0xff] %vm19_vm0, %v93_v10 }
  0xd3   :  { %v100_v13 = vld [vmem:[#allocation2] sm:$0xff] }
  0xd4   :  { %v109_v14 = vadd.f32 %v148_v12, %v100_v13 }
  0xd6   :  { %v111_v15 = vmul.f32 %v109_v14, %v109_v14 }
  0xd7   :  { %v101_v16 = vld [vmem:[#allocation2 + $0x8] sm:$0xff] }
  0xd8   :  { %v113_v17 = vmul.f32 %v111_v15, %v109_v14  ;;  %v110_v18 = vadd.f32 %v148_v12, %v101_v16 }
  0xda   :  { %v115_v19 = vmul.f32 0.044715, %v113_v17  ;;  %v112_v20 = vmul.f32 %v110_v18, %v110_v18 }
  0xdc   :  { %v117_v21 = vadd.f32 %v115_v19, %v109_v14  ;;  %v114_v22 = vmul.f32 %v112_v20, %v110_v18 }
  0xde   :  { %v119_v23 = vmul.f32 0.7978846, %v117_v21  ;;  %v116_v24 = vmul.f32 0.044715, %v114_v22 }
  0xe0   :  { %169 = vtanh.f32 %v119_v23  ;;  %v118_v25 = vadd.f32 %v116_v24, %v110_v18 }
  0xe2   :  { %v120_v26 = vmul.f32 0.7978846, %v118_v25 }
  0xe4   :  { %171 = vtanh.f32 %v120_v26 }
  0xed   :  { %v170_v27 = vpop.eup %169 }
  0xee   :  { %v123_v28 = vadd.f32 1.0, %v170_v27 }
  0xf0   :  { %v125_v29 = vmul.f32 0.5, %v123_v28 }
  0xf1   :  { %v172_v30 = vpop.eup %171 }
  0xf2   :  { %v127_v31 = vmul.f32 %v125_v29, %v109_v14  ;;  %v124_v32 = vadd.f32 1.0, %v172_v30 }
  0xf4   :  { %v151_v33 = vpack.c.bf16 %v127_v31, %v127_v31  ;;  %v126_v34 = vmul.f32 0.5, %v124_v32 }
  0xf6   :  { %138 = vst.msk [vmem:[%s220_s3] sm:$0xf] %vm137_vm3, %v151_v33  ;;  %v128_v35 = vmul.f32 %v126_v34, %v110_v18 }
  0xf8   :  { %v152_v36 = vpack.c.bf16 %v128_v35, %v128_v35 }
  0xfa   :  { %139 = vst.msk [vmem:[%s220_s3 + $0x4] sm:$0xf] %vm137_vm3, %v152_v36 }

// kernel: bert_for_token_classification.22
= control target key start
LH: loop header
LB: loop body
LE: loop exit
PB: predicated region body
PF: predicated region fallthrough
CT: control target
= control target key end

     0   :  { %vm27_vm0 = vcmask 261120   ;;  %vm81_vm1 = vcmask 257024   ;;  %s153_s0 = inlined_call_operand.vmem [shape: bf16[16,32], index: 0, kind: input, shape index: {}]   ;;  %s154_s1 = inlined_call_operand.vmem [shape: bf16[16,32], index: 1, kind: input, shape index: {}]   ;;  %s155_s2 = inlined_call_operand.vmem [shape: f32[1,32], index: 2, kind: input, shape index: {}]   ;;  %s156_s3 = inlined_call_operand.vmem [shape: f32[1,32], index: 3, kind: input, shape index: {}]   ;;  %s157_s4 = inlined_call_operand.vmem [shape: bf16[16,32], index: 4, kind: output, shape index: {}]  }
   0x1   :  { %v95_v0 = vld [vmem:[%s153_s0] sm:$0xff]  }
   0x2   :  { %v99_v1 = vld [vmem:[%s154_s1] sm:$0xff]   ;;  %v96_v2 = vunpack.c.l.bf16 %v95_v0  ;;  %v97_v4 = vunpack.c.h.bf16 %v95_v0 }
   0x3   :  { %v100_v3 = vunpack.c.l.bf16 %v99_v1  ;;  %v101_v5 = vunpack.c.h.bf16 %v99_v1  ;;  %v88_v27 = vld [vmem:[%s155_s2] ss:$0 sm:$0xff] }
   0x4   :  { %v89_v29 = vld [vmem:[%s156_s3] ss:$0 sm:$0xff] }
   0x5   :  { %v25_v6 = vadd.f32 %v100_v3, %v96_v2  ;;  %v26_v7 = vadd.f32 %v101_v5, %v97_v4 }
   0x7   :  { %v28_v8 = vsel %vm27_vm0, %v25_v6, 0.0  ;;  %v31_v9 = vsel %vm27_vm0, %v26_v7, 0.0 }
   0x8   :  { %29 = vadd.xlane.f32.xlu0 %v28_v8 }
   0xc   :  { %32 = vadd.xlane.f32.xlu0 %v31_v9 }
  0x91   :  { %v30_v10 = vpop.xlane.xlu0 %29 }
  0x92   :  { %v35_v11 = vmul.f32 0.03125, %v30_v10 }
  0x94   :  { %v37_v12 = vsub.f32 %v25_v6, %v35_v11 }
  0x95   :  { %v33_v13 = vpop.xlane.xlu0 %32 }
  0x96   :  { %v36_v14 = vmul.f32 0.03125, %v33_v13  ;;  %v39_v15 = vmul.f32 %v37_v12, %v37_v12 }
  0x98   :  { %v38_v16 = vsub.f32 %v26_v7, %v36_v14  ;;  %v41_v17 = vsel %vm27_vm0, %v39_v15, 0.0 }
  0x99   :  { %42 = vadd.xlane.f32.xlu1 %v41_v17 }
  0x9a   :  { %v40_v18 = vmul.f32 %v38_v16, %v38_v16 }
  0x9c   :  { %v44_v19 = vsel %vm27_vm0, %v40_v18, 0.0 }
  0x9d   :  { %45 = vadd.xlane.f32.xlu1 %v44_v19 }
 0x122   :  { %v43_v20 = vpop.xlane.xlu1 %42 }
 0x123   :  { %v47_v21 = vmul.f32 0.03125, %v43_v20 }
 0x125   :  { %v49_v22 = vadd.f32 1e-12, %v47_v21 }
 0x126   :  { %v46_v23 = vpop.xlane.xlu1 %45 }
 0x127   :  { %102 = vrsqrt.f32 %v49_v22  ;;  %v48_v24 = vmul.f32 0.03125, %v46_v23 }
 0x129   :  { %v50_v25 = vadd.f32 1e-12, %v48_v24 }
 0x12b   :  { %104 = vrsqrt.f32 %v50_v25 }
 0x134   :  { %v103_v26 = vpop.eup %102 }
 0x135   :  { %v53_v28 = vmul.f32 %v103_v26, %v37_v12 }
 0x137   :  { %v62_v30 = vmul.f32 %v88_v27, %v53_v28 }
 0x138   :  { %v105_v31 = vpop.eup %104 }
 0x139   :  { %v71_v32 = vadd.f32 %v89_v29, %v62_v30  ;;  %v54_v33 = vmul.f32 %v105_v31, %v38_v16 }
 0x13b   :  { %v92_v34 = vpack.c.bf16 %v71_v32, %v71_v32  ;;  %v63_v35 = vmul.f32 %v88_v27, %v54_v33 }
 0x13d   :  { %82 = vst.msk [vmem:[%s157_s4] sm:$0xf] %vm81_vm1, %v92_v34  ;;  %v72_v36 = vadd.f32 %v89_v29, %v63_v35 }
 0x13f   :  { %v93_v37 = vpack.c.bf16 %v72_v36, %v72_v36 }
 0x141   :  { %83 = vst.msk [vmem:[%s157_s4 + $0x4] sm:$0xf] %vm81_vm1, %v93_v37 }

// kernel: bert_for_token_classification.20
= control target key start
LH: loop header
LB: loop body
LE: loop exit
PB: predicated region body
PF: predicated region fallthrough
CT: control target
= control target key end

     0   :  { %s3001_s15 = smov 0   ;;  %s3003_s16 = smov 0   ;;  %s3684_s0 = inlined_call_operand.vmem [shape: bf16[2,8,3,4,8], index: 0, kind: input, shape index: {}, may-alias: {0,1,2}]   ;;  %s3685_s1 = inlined_call_operand.vmem [shape: bf16[2,8,3,4,8], index: 1, kind: input, shape index: {}, may-alias: {0,1,2}]   ;;  %s3686_s2 = inlined_call_operand.vmem [shape: bf16[2,8,3,4,8], index: 2, kind: input, shape index: {}, may-alias: {0,1,2}]   ;;  %s3687_s3 = inlined_call_operand.vmem [shape: f32[2,1,8], index: 3, kind: input, shape index: {}]   ;;  %s3688_s4 = inlined_call_operand.vmem [shape: bf16[2,8,4,8], index: 4, kind: output, shape index: {}]  }
   0x1   :  { %s3005_s17 = smov 0  }
   0x2 LB: > { %s2683_s18 = sadd.s32 4294967295, %s2970_s17   ;;  %s3018_s19 = sadd.s32 1, %s2970_s17   ;;  %s2970_s17 = sphi %s3005_s17, %s3700_s17   ;;  %s2966_s16 = sphi %s3003_s16, %s3699_s16   ;;  %s2962_s15 = sphi %s3001_s15, %s3698_s15  }
   0x3   : > { %s18_s20 = ssub.s32 %s2970_s17, %s3018_s19  ;;  %s21_s21 = sadd.s32 1, %s2966_s16 }
   0x4   : > { %p19_p0 = scmp.eq.s32.totalorder %s18_s20, 0  ;;  %p28_p1 = scmp.ne.s32.totalorder %s2966_s16, %s2962_s15 }
   0x5   : > { %p29_p2 = scmp.eq.s32.totalorder %s2970_s17, 0  ;;  %p2686_p4 = scmp.ge.s32.totalorder %s2970_s17, 2 }
   0x6   : > { %s3027_s22 = scalar_select %p19_p0, %s2966_s16, %s21_s21  }
   0x7   : > { %p3029_p3 = por %p29_p2, %p28_p1  ;;  %158 = sbr.rel (%p2686_p4) target bundleno = 42 (0x2a), region = 16 }
   0xc   : > { %161 = sbr.rel (!%p3029_p3) target bundleno = 22 (0x16), region = 20  ;;  %s163_s24 = sand.u32 (%p3029_p3), 1, %s2966_s16  }
   0xd   : > { %s2903_s25 = smul.u32 (%p3029_p3), 48, %s2970_s17  ;;  %s2687_s26 = sshll.u32 (%p3029_p3), %s163_s24, 4 }
   0xe   : > { %s165_s30 = scalar_lea.vmem (%p3029_p3), [#allocation2], %s2687_s26 }
   0xf   : > { %s168_s29 = scalar_lea.vmem (%p3029_p3), %s3684_s0, %s2903_s25 }
  0x10   : > { %v185_v0 = vld [vmem:[%s168_s29] sm:$0x3] (%p3029_p3)  ;;  %v187_v1 = vld [vmem:[%s168_s29 + $0x6] sm:$0x3] (%p3029_p3)  ;;  %v189_v2 = vld [vmem:[%s168_s29 + $0xc] sm:$0x3] (%p3029_p3) }
  0x11   : > { %186 = vst [vmem:[%s165_s30] sm:$0x3] %v185_v0  ;;  %188 = vst [vmem:[%s165_s30 + $0x2] sm:$0x3] %v187_v1  ;;  %v191_v3 = vld [vmem:[%s168_s29 + $0x12] sm:$0x3] }
  0x12   : > { %190 = vst [vmem:[%s165_s30 + $0x4] sm:$0x3] %v189_v2  ;;  %v193_v4 = vld [vmem:[%s168_s29 + $0x18] sm:$0x3]  ;;  %v195_v5 = vld [vmem:[%s168_s29 + $0x1e] sm:$0x3] }
  0x13   : > { %192 = vst [vmem:[%s165_s30 + $0x6] sm:$0x3] %v191_v3  ;;  %194 = vst [vmem:[%s165_s30 + $0x8] sm:$0x3] %v193_v4  ;;  %v197_v6 = vld [vmem:[%s168_s29 + $0x24] sm:$0x3] }
  0x14   : > { %196 = vst [vmem:[%s165_s30 + $0xa] sm:$0x3] %v195_v5  ;;  %v199_v7 = vld [vmem:[%s168_s29 + $0x2a] sm:$0x3]  ;;  %198 = vst [vmem:[%s165_s30 + $0xc] sm:$0x3] %v197_v6 }
  0x15   : > { %200 = vst [vmem:[%s165_s30 + $0xe] sm:$0x3] %v199_v7 }
  0x16 PF: > { %240 = sbr.rel (!%p3029_p3) target bundleno = 32 (0x20), region = 61  ;;  %s242_s5 = sand.u32 (%p3029_p3), 1, %s2966_s16  }
  0x17   : > { %s2690_s6 = smul.u32 (%p3029_p3), 48, %s2970_s17  ;;  %s2689_s7 = sshll.u32 (%p3029_p3), %s242_s5, 4 }
  0x18   : > { %s244_s11 = scalar_lea.vmem (%p3029_p3), [#allocation3], %s2689_s7 }
  0x19   : > { %s2602_s10 = scalar_lea.vmem (%p3029_p3), %s3685_s1, %s2690_s6 }
  0x1a   : > { %v2691_v8 = vld [vmem:[%s2602_s10 + $0x2] sm:$0x3] (%p3029_p3)  ;;  %v2692_v9 = vld [vmem:[%s2602_s10 + $0x8] sm:$0x3] (%p3029_p3)  ;;  %v2693_v10 = vld [vmem:[%s2602_s10 + $0xe] sm:$0x3] (%p3029_p3) }
  0x1b   : > { %266 = vst [vmem:[%s244_s11] sm:$0x3] %v2691_v8  ;;  %268 = vst [vmem:[%s244_s11 + $0x2] sm:$0x3] %v2692_v9  ;;  %v2694_v11 = vld [vmem:[%s2602_s10 + $0x14] sm:$0x3] }
  0x1c   : > { %270 = vst [vmem:[%s244_s11 + $0x4] sm:$0x3] %v2693_v10  ;;  %v2695_v12 = vld [vmem:[%s2602_s10 + $0x1a] sm:$0x3]  ;;  %v2696_v13 = vld [vmem:[%s2602_s10 + $0x20] sm:$0x3] }
  0x1d   : > { %272 = vst [vmem:[%s244_s11 + $0x6] sm:$0x3] %v2694_v11  ;;  %274 = vst [vmem:[%s244_s11 + $0x8] sm:$0x3] %v2695_v12  ;;  %v2697_v14 = vld [vmem:[%s2602_s10 + $0x26] sm:$0x3] }
  0x1e   : > { %276 = vst [vmem:[%s244_s11 + $0xa] sm:$0x3] %v2696_v13  ;;  %v2698_v15 = vld [vmem:[%s2602_s10 + $0x2c] sm:$0x3]  ;;  %278 = vst [vmem:[%s244_s11 + $0xc] sm:$0x3] %v2697_v14 }
  0x1f   : > { %280 = vst [vmem:[%s244_s11 + $0xe] sm:$0x3] %v2698_v15 }
  0x20 PF: > { %320 = sbr.rel (!%p3029_p3) target bundleno = 42 (0x2a), region = 102  ;;  %s322_s12 = sand.u32 (%p3029_p3), 1, %s2966_s16  }
  0x21   : > { %s2700_s13 = smul.u32 (%p3029_p3), 48, %s2970_s17  ;;  %s2699_s14 = sshll.u32 (%p3029_p3), %s322_s12, 4 }
  0x22   : > { %s324_s25 = scalar_lea.vmem (%p3029_p3), [#allocation4], %s2699_s14 }
  0x23   : > { %s2608_s24 = scalar_lea.vmem (%p3029_p3), %s3686_s2, %s2700_s13 }
  0x24   : > { %v2701_v16 = vld [vmem:[%s2608_s24 + $0x4] sm:$0x3] (%p3029_p3)  ;;  %v2702_v17 = vld [vmem:[%s2608_s24 + $0xa] sm:$0x3] (%p3029_p3)  ;;  %v2703_v18 = vld [vmem:[%s2608_s24 + $0x10] sm:$0x3] (%p3029_p3) }
  0x25   : > { %346 = vst [vmem:[%s324_s25] sm:$0x3] %v2701_v16  ;;  %348 = vst [vmem:[%s324_s25 + $0x2] sm:$0x3] %v2702_v17  ;;  %v2704_v19 = vld [vmem:[%s2608_s24 + $0x16] sm:$0x3] }
  0x26   : > { %350 = vst [vmem:[%s324_s25 + $0x4] sm:$0x3] %v2703_v18  ;;  %v2705_v20 = vld [vmem:[%s2608_s24 + $0x1c] sm:$0x3]  ;;  %v2706_v21 = vld [vmem:[%s2608_s24 + $0x22] sm:$0x3] }
  0x27   : > { %352 = vst [vmem:[%s324_s25 + $0x6] sm:$0x3] %v2704_v19  ;;  %354 = vst [vmem:[%s324_s25 + $0x8] sm:$0x3] %v2705_v20  ;;  %v2707_v22 = vld [vmem:[%s2608_s24 + $0x28] sm:$0x3] }
  0x28   : > { %356 = vst [vmem:[%s324_s25 + $0xa] sm:$0x3] %v2706_v21  ;;  %v2708_v23 = vld [vmem:[%s2608_s24 + $0x2e] sm:$0x3]  ;;  %358 = vst [vmem:[%s324_s25 + $0xc] sm:$0x3] %v2707_v22 }
  0x29   : > { %360 = vst [vmem:[%s324_s25 + $0xe] sm:$0x3] %v2708_v23 }
  0x2a PF: > { %p2709_p5 = scmp.ge.s32.totalorder %s2970_s17, 1  ;;  %p405_p6 = scmp.lt.s32.totalorder %s2970_s17, 3 }
  0x2c   : > { %p406_p7 = pnand %p2709_p5, %p405_p6 }
  0x2d   : > { %s412_s23 = sand.u32 (!%p406_p7), 1, %s2962_s15   ;;  %p462_p8 = scmp.lt.s32.totalorder (!%p406_p7), %s2683_s18, 1 }
  0x2e   : > { %409 = sbr.rel (%p406_p7) target bundleno = 1334 (0x536), region = 147  ;;  %s3059_s26 = sshll.u32 (!%p406_p7), %s412_s23, 4 }
  0x2f   : > { %s3063_s27 = scalar_lea.vmem (!%p406_p7), [#allocation3], %s3059_s26  ;;  %s3117_s15 = scalar_lea.vmem (!%p406_p7), [#allocation2], %s3059_s26 }
  0x30   : > { %s3206_s17 = scalar_lea.vmem (!%p406_p7), [#allocation4], %s3059_s26 }
  0x33   : > { %v2972_v24 = vmov 0.0   ;;  %v3066_v25 = vld.sshfl [vmem:[%s3063_s27] sm:$0x1 pattern:$0x76325410]  ;;  %vm2973_vm0 = vmmov 0  }
  0x34   : > { %2855 = vmatprep.subr.bf16.mxu0 %v2972_v24  ;;  %2861 = vmatprep.subr.bf16.mxu1 %v2972_v24  ;;  %v3073_v26 = vld.sshfl [vmem:[%s3063_s27 + $0x2] sm:$0x1 pattern:$0x76325410]  ;;  %v660_v28 = vunpack.c.l.b16 %v3066_v25  ;;  %vm575_vm1 = vcmask 1041409   ;;  %vm578_vm2 = vcmask 1042434  }
  0x35   : > { %2857 = vmatprep.mubr.msk.bf16.mxu0 %vm2973_vm0, %v2972_v24  ;;  %2863 = vmatprep.mubr.msk.bf16.mxu1 %vm2973_vm0, %v2972_v24  ;;  %v3076_v27 = vld.sshfl [vmem:[%s3063_s27 + $0x4] sm:$0x1 pattern:$0x76325410]  ;;  %v661_v29 = vunpack.c.l.b16 %v3073_v26  ;;  %vm581_vm3 = vcmask 1043459   ;;  %vm584_vm4 = vcmask 1044484  }
  0x36   : > { %v3081_v30 = vld.sshfl [vmem:[%s3063_s27 + $0x6] sm:$0x1 pattern:$0x76325410]  ;;  %v662_v31 = vunpack.c.l.b16 %v3076_v27  ;;  %vm587_vm5 = vcmask 1045509   ;;  %vm590_vm6 = vcmask 1046534  }
  0x37   : > { %v3085_v32 = vld.sshfl [vmem:[%s3063_s27 + $0x8] sm:$0x1 pattern:$0x76325410]  ;;  %v663_v33 = vunpack.c.l.b16 %v3081_v30  ;;  %v668_v34 = vrot.slane %v661_v29, 7  ;;  %vm593_vm7 = vcmask 1047559  }
  0x38   : > { %v3091_v35 = vld.sshfl [vmem:[%s3063_s27 + $0xa] sm:$0x1 pattern:$0x76325410]  ;;  %v664_v36 = vunpack.c.l.b16 %v3085_v32  ;;  %v670_v37 = vrot.slane %v662_v31, 6  ;;  %vm683_vm8 = vcmask 64512  }
  0x39   : > { %v3097_v38 = vld.sshfl [vmem:[%s3063_s27 + $0xc] sm:$0x1 pattern:$0x76325410]  ;;  %v665_v39 = vunpack.c.l.b16 %v3091_v35  ;;  %v669_v40 = vsel %vm575_vm1, %v668_v34, %v660_v28  ;;  %v672_v41 = vrot.slane %v663_v33, 5  ;;  %s3702_s18 = smov (!%p462_p8, %s2683_s18), 1 }
  0x3a   : > { %v3106_v42 = vld.sshfl [vmem:[%s3063_s27 + $0xe] sm:$0x1 pattern:$0x76325410]  ;;  %v666_v43 = vunpack.c.l.b16 %v3097_v38  ;;  %v671_v44 = vsel %vm578_vm2, %v670_v37, %v669_v40  ;;  %v674_v45 = vrot.slane %v664_v36, 4  ;;  %s464_s30 = scalar_lea.vmem %s3687_s3, %s3702_s18  ;;  %vm832_vm9 = vcmask 1043456  }
  0x3b   : > { %v667_v46 = vunpack.c.l.b16 %v3106_v42  ;;  %v673_v47 = vsel %vm581_vm3, %v672_v41, %v671_v44  ;;  %v676_v48 = vrot.slane %v665_v39, 3  ;;  %v3120_v49 = vld.sshfl [vmem:[%s3117_s15] sm:$0x1 pattern:$0x76325410]  ;;  %s2838_s5 = sshll.u32 %s3702_s18, 4 }
  0x3c   : > { %v675_v50 = vsel %vm584_vm4, %v674_v45, %v673_v47  ;;  %v678_v51 = vrot.slane %v666_v43, 2  ;;  %v3126_v52 = vld.sshfl [vmem:[%s3117_s15 + $0x2] sm:$0x1 pattern:$0x76325410]  ;;  %v566_v56 = vunpack.c.l.b16 %v3120_v49  ;;  %v1202_v35 = vrot.slane %v666_v43, 3  ;;  %s3401_s8 = scalar_lea.vmem %s3688_s4, %s2838_s5 }
  0x3d   : > { %v677_v53 = vsel %vm587_vm5, %v676_v48, %v675_v50  ;;  %v680_v54 = vrot.slane %v667_v46, 1  ;;  %v3132_v55 = vld.sshfl [vmem:[%s3117_s15 + $0x4] sm:$0x1 pattern:$0x76325410]  ;;  %v567_v57 = vunpack.c.l.b16 %v3126_v52  ;;  %v1204_v38 = vrot.slane %v667_v46, 2 }
  0x3e   : > { %v679_v58 = vsel %vm590_vm6, %v678_v51, %v677_v53  ;;  %v3138_v59 = vld.sshfl [vmem:[%s3117_s15 + $0x6] sm:$0x1 pattern:$0x76325410]  ;;  %v568_v60 = vunpack.c.l.b16 %v3132_v55  ;;  %v3197_v34 = vld [vmem:[%s464_s30] ss:$0 sm:$0xff] }
  0x3f   : > { %v681_v61 = vsel %vm593_vm7, %v680_v54, %v679_v58  ;;  %v3143_v62 = vld.sshfl [vmem:[%s3117_s15 + $0x8] sm:$0x1 pattern:$0x76325410]  ;;  %v569_v63 = vunpack.c.l.b16 %v3138_v59  ;;  %v574_v0 = vrot.slane %v567_v57, 7  ;;  %vm982_vm10 = vcmask 57344  }
  0x40   : > { %v682_v1 = vpack.c.b16 %v681_v61, %v681_v61  ;;  %v3149_v2 = vld.sshfl [vmem:[%s3117_s15 + $0xa] sm:$0x1 pattern:$0x76325410]  ;;  %v570_v3 = vunpack.c.l.b16 %v3143_v62  ;;  %v577_v4 = vrot.slane %v568_v60, 6  ;;  %vm2025_vm15 = vcmask 58369  }
  0x41   : > { %v3155_v5 = vld.sshfl [vmem:[%s3117_s15 + $0xc] sm:$0x1 pattern:$0x76325410]  ;;  %v571_v6 = vunpack.c.l.b16 %v3149_v2  ;;  %v576_v7 = vsel %vm575_vm1, %v574_v0, %v566_v56  ;;  %v580_v8 = vrot.slane %v569_v63, 5  ;;  %v1109_v43 = vrot.slane %v569_v63, 6 }
  0x42   : > { %v688_v9 = vsel %vm683_vm8, %v682_v1, 0  ;;  %v3165_v10 = vld.sshfl [vmem:[%s3117_s15 + $0xe] sm:$0x1 pattern:$0x76325410]  ;;  %v572_v11 = vunpack.c.l.b16 %v3155_v5  ;;  %v579_v12 = vsel %vm578_vm2, %v577_v4, %v576_v7  ;;  %v583_v13 = vrot.slane %v570_v3, 4 }
  0x43   : > { %2856 = vmatpush3.bf16.xpose.msra.mxu0 %v688_v9  ;;  %v573_v14 = vunpack.c.l.b16 %v3165_v10  ;;  %v582_v15 = vsel %vm581_vm3, %v580_v8, %v579_v12  ;;  %v586_v16 = vrot.slane %v571_v6, 3  ;;  %v3209_v58 = vld.sshfl [vmem:[%s3206_s17] sm:$0x1 pattern:$0x76325410]  ;;  %v1111_v42 = vrot.slane %v570_v3, 5 }
  0x44   : > { %v585_v17 = vsel %vm584_vm4, %v583_v13, %v582_v15  ;;  %v589_v18 = vrot.slane %v572_v11, 2  ;;  %2873 = vmatprep.subr.bf16.mxu0 %v2972_v24  ;;  %v3212_v61 = vld.sshfl [vmem:[%s3206_s17 + $0x2] sm:$0x1 pattern:$0x76325410]  ;;  %v806_v1 = vunpack.c.l.b16 %v3209_v58  ;;  %v1115_v2 = vrot.slane %v572_v11, 3 }
  0x45   : > { %v588_v19 = vsel %vm587_vm5, %v586_v16, %v585_v17  ;;  %v592_v20 = vrot.slane %v573_v14, 1  ;;  %v3215_v0 = vld.sshfl [vmem:[%s3206_s17 + $0x4] sm:$0x1 pattern:$0x76325410]  ;;  %v807_v4 = vunpack.c.l.b16 %v3212_v61 }
  0x46   : > { %v591_v21 = vsel %vm590_vm6, %v589_v18, %v588_v19  ;;  %v3220_v7 = vld.sshfl [vmem:[%s3206_s17 + $0x6] sm:$0x1 pattern:$0x76325410]  ;;  %v808_v8 = vunpack.c.l.b16 %v3215_v0  ;;  %vm983_vm11 = vsmask.f32 256 }
  0x47   : > { %v594_v22 = vsel %vm593_vm7, %v592_v20, %v591_v21  ;;  %v3224_v9 = vld.sshfl [vmem:[%s3206_s17 + $0x8] sm:$0x1 pattern:$0x76325410]  ;;  %v809_v12 = vunpack.c.l.b16 %v3220_v7  ;;  %v814_v13 = vrot.slane %v807_v4, 7  ;;  %vm3407_vm12 = vmand %vm982_vm10, %vm983_vm11 }
  0x48   : > { %v595_v23 = vpack.c.b16 %v594_v22, %v594_v22  ;;  %v3230_v15 = vld.sshfl [vmem:[%s3206_s17 + $0xa] sm:$0x1 pattern:$0x76325410]  ;;  %v810_v16 = vunpack.c.l.b16 %v3224_v9  ;;  %v816_v17 = vrot.slane %v808_v8, 6 }
  0x49   : > { %v3236_v18 = vld.sshfl [vmem:[%s3206_s17 + $0xc] sm:$0x1 pattern:$0x76325410]  ;;  %v811_v19 = vunpack.c.l.b16 %v3230_v15  ;;  %v815_v20 = vsel %vm575_vm1, %v814_v13, %v806_v1  ;;  %v818_v21 = vrot.slane %v809_v12, 5 }
  0x4a   : > { %2858 = vmatmul.mubr.msk.bf16.vlgmr.msra.gmra.mxu0 %vm683_vm8, %v595_v23  ;;  %v3245_v22 = vld.sshfl [vmem:[%s3206_s17 + $0xe] sm:$0x1 pattern:$0x76325410]  ;;  %v812_v23 = vunpack.c.l.b16 %v3236_v18  ;;  %vm1504_vm13 = vsmask.f32 7938 }
  0x4b   : > { %2875 = vmatprep.mubr.msk.bf16.mxu0 %vm2973_vm0, %v2972_v24  ;;  %v2788_v30 = vld.sshfl [vmem:[%s3063_s27 + $0x8] sm:$0x2 pattern:$0x76325410]  ;;  %vm3533_vm14 = vmand %vm982_vm10, %vm1504_vm13 }
  0x4c   : > { %v3315_v52 = vld.sshfl [vmem:[%s3063_s27 + $0xc] sm:$0x2 pattern:$0x76325410]  ;;  %v1347_v0 = vrot.slane %v812_v23, 3 }
  0x4d   : > { %v3327_v59 = vld.sshfl [vmem:[%s3117_s15 + $0x6] sm:$0x2 pattern:$0x76325410] }
  0x4e   : > { %v1621_v62 = vunpack.c.l.b16 %v3327_v59  ;;  %v2794_v18 = vld.sshfl [vmem:[%s3206_s17 + $0x2] sm:$0x2 pattern:$0x76325410] }
 0x10a   : > { %v724_v37 = vpop.f32.mrf.mxu0 }
 0x10b   : > { %v725_v40 = vadd.f32 %v3197_v34, %v724_v37  ;;  %v817_v37 = vsel %vm578_vm2, %v816_v17, %v815_v20 }
 0x10c   : > { %v2859_v41 = vpop.f32.mrf.mxu0 }
 0x10d   : > { %v730_v44 = vsel %vm683_vm8, %v725_v40, -inf  ;;  %v813_v41 = vunpack.c.l.b16 %v3245_v22  ;;  %v1851_v22 = vunpack.c.l.b16 %v2794_v18 }
 0x10e   : > { %731 = vmax.xlane.f32.xlu0 %v730_v44  ;;  %v727_v45 = vpop.f32.mrf.mxu0  ;;  %v819_v44 = vsel %vm581_vm3, %v818_v21, %v817_v37  ;;  %v1192_v21 = vrot.slane %v660_v28, 1  ;;  %v2784_v37 = vld.sshfl [vmem:[%s3063_s27] sm:$0x2 pattern:$0x76325410]  ;;  %v1198_v28 = vrot.slane %v664_v36, 5 }
 0x10f   : > { %v822_v45 = vrot.slane %v811_v19, 3 }
 0x110   : > { %v2860_v47 = vpop.f32.mrf.mxu0 }
 0x197   : > { %v732_v48 = vpop.xlane.xlu0 %731 }
 0x198   : > { %v733_v50 = vsub.f32 %v725_v40, %v732_v48  ;;  %v820_v40 = vrot.slane %v810_v16, 4  ;;  %v824_v48 = vrot.slane %v812_v23, 2  ;;  %v2796_v23 = vld.sshfl [vmem:[%s3206_s17 + $0x6] sm:$0x2 pattern:$0x76325410] }
 0x19a   : > { %v734_v51 = vmul.f32 1.442695, %v733_v50  ;;  %v821_v47 = vsel %vm584_vm4, %v820_v40, %v819_v44  ;;  %v1194_v40 = vrot.slane %v662_v31, 7 }
 0x19b   : > { %v823_v50 = vsel %vm587_vm5, %v822_v45, %v821_v47  ;;  %v2785_v44 = vld.sshfl [vmem:[%s3063_s27 + $0x2] sm:$0x2 pattern:$0x76325410]  ;;  %v1193_v45 = vsel %vm575_vm1, %v661_v29, %v1192_v21  ;;  %v1196_v47 = vrot.slane %v663_v33, 6  ;;  %v1105_v29 = vrot.slane %v566_v56, 1 }
 0x19c   : > { %2932 = vpow2.f32 %v734_v51  ;;  %v826_v51 = vrot.slane %v813_v41, 1  ;;  %v1195_v25 = vsel %vm578_vm2, %v1194_v40, %v1193_v45  ;;  %v2786_v31 = vld.sshfl [vmem:[%s3063_s27 + $0x4] sm:$0x2 pattern:$0x76325410]  ;;  %v1200_v33 = vrot.slane %v665_v39, 4 }
 0x19d   : > { %v1197_v27 = vsel %vm581_vm3, %v1196_v47, %v1195_v25  ;;  %v1707_v36 = vunpack.c.l.b16 %v2786_v31  ;;  %v1106_v39 = vsel %vm575_vm1, %v567_v57, %v1105_v29  ;;  %v3304_v56 = vld.sshfl [vmem:[%s3063_s27 + $0xa] sm:$0x2 pattern:$0x76325410]  ;;  %v1709_v40 = vunpack.c.l.b16 %v2788_v30 }
 0x19e   : > { %v1199_v32 = vsel %vm584_vm4, %v1198_v28, %v1197_v27  ;;  %v3320_v25 = vld.sshfl [vmem:[%s3063_s27 + $0xe] sm:$0x2 pattern:$0x76325410]  ;;  %v1710_v28 = vunpack.c.l.b16 %v3304_v56 }
 0x19f   : > { %v1719_v46 = vrot.slane %v1709_v40, 6 }
 0x1a9   : > { %v3201_v53 = vpop.eup %2932 }
 0x1aa   : > { %v736_v54 = vsel %vm683_vm8, %v3201_v53, 0.0 }
 0x1ab   : > { %737 = vadd.xlane.f32.xlu0 %v736_v54  ;;  %v825_v54 = vsel %vm590_vm6, %v824_v48, %v823_v50  ;;  %v1705_v48 = vunpack.c.l.b16 %v2784_v37  ;;  %v1706_v50 = vunpack.c.l.b16 %v2785_v44  ;;  %v1107_v37 = vrot.slane %v568_v60, 7 }
 0x1ac   : > { %v827_v13 = vsel %vm593_vm7, %v826_v51, %v825_v54  ;;  %v3280_v51 = vld.sshfl [vmem:[%s3063_s27 + $0x6] sm:$0x2 pattern:$0x76325410]  ;;  %v1201_v44 = vsel %vm587_vm5, %v1200_v33, %v1199_v32  ;;  %v1721_v32 = vrot.slane %v1710_v28, 5 }
 0x1ad   : > { %v828_v17 = vpack.c.b16 %v827_v13, %v827_v13  ;;  %v1713_v26 = vrot.slane %v1705_v48, 2  ;;  %v1714_v54 = vrot.slane %v1706_v50, 1  ;;  %v1708_v13 = vunpack.c.l.b16 %v3280_v51 }
 0x1ae   : > { %v1108_v47 = vsel %vm578_vm2, %v1107_v37, %v1106_v39  ;;  %v2235_v27 = vrot.slane %v1705_v48, 3  ;;  %v2236_v31 = vrot.slane %v1706_v50, 2  ;;  %v2238_v48 = vrot.slane %v1707_v36, 1 }
 0x1af   : > { %v834_v20 = vsel %vm832_vm9, %v828_v17, 0  ;;  %v3291_v17 = vld.sshfl [vmem:[%s3117_s15] sm:$0x2 pattern:$0x76325410]  ;;  %v1715_v49 = vsel %vm575_vm1, %v1714_v54, %v1713_v26  ;;  %v1717_v55 = vrot.slane %v1708_v13, 7  ;;  %v1203_v26 = vsel %vm590_vm6, %v1202_v35, %v1201_v44 }
 0x1b0   : > { %2862 = vmatpush3.bf16.msra.mxu1 %v834_v20  ;;  %v2777_v20 = vld.sshfl [vmem:[%s3117_s15 + $0x2] sm:$0x2 pattern:$0x76325410]  ;;  %v1618_v60 = vunpack.c.l.b16 %v3291_v17  ;;  %v1716_v57 = vsel %vm578_vm2, %v1707_v36, %v1715_v49  ;;  %v1110_v33 = vsel %vm581_vm3, %v1109_v43, %v1108_v47  ;;  %v1711_v17 = vunpack.c.l.b16 %v3315_v52 }
 0x1b1   : > { %2867 = vmatprep.subr.bf16.mxu1 %v2972_v24  ;;  %v1619_v45 = vunpack.c.l.b16 %v2777_v20  ;;  %v1718_v63 = vsel %vm581_vm3, %v1717_v55, %v1716_v57  ;;  %v2778_v54 = vld.sshfl [vmem:[%s3117_s15 + $0x4] sm:$0x2 pattern:$0x76325410]  ;;  %v1205_v50 = vsel %vm593_vm7, %v1204_v38, %v1203_v26  ;;  %v2237_v3 = vsel %vm575_vm1, %v2236_v31, %v2235_v27 }
 0x1b2   : > { %v1626_v29 = vrot.slane %v1618_v60, 2  ;;  %v2780_v20 = vld.sshfl [vmem:[%s3117_s15 + $0x8] sm:$0x2 pattern:$0x76325410]  ;;  %v1712_v37 = vunpack.c.l.b16 %v3320_v25  ;;  %v1720_v49 = vsel %vm584_vm4, %v1719_v46, %v1718_v63  ;;  %v1620_v35 = vunpack.c.l.b16 %v2778_v54 }
 0x1b3   : > { %v1627_v30 = vrot.slane %v1619_v45, 1  ;;  %v1112_v39 = vsel %vm584_vm4, %v1111_v42, %v1110_v33  ;;  %v1206_v56 = vpack.c.b16 %v1205_v50, %v1205_v50  ;;  %v1723_v44 = vrot.slane %v1711_v17, 4  ;;  %v2781_v55 = vld.sshfl [vmem:[%s3117_s15 + $0xa] sm:$0x2 pattern:$0x76325410] }
 0x1b4   : > { %v1622_v38 = vunpack.c.l.b16 %v2780_v20  ;;  %v2239_v43 = vsel %vm578_vm2, %v2238_v48, %v2237_v3  ;;  %v1630_v52 = vrot.slane %v1621_v62, 7  ;;  %v1725_v47 = vrot.slane %v1712_v37, 3  ;;  %v2782_v26 = vld.sshfl [vmem:[%s3117_s15 + $0xc] sm:$0x2 pattern:$0x76325410] }
 0x1b5   : > { %v1628_v36 = vsel %vm575_vm1, %v1627_v30, %v1626_v29  ;;  %v2241_v27 = vrot.slane %v1709_v40, 7  ;;  %v1623_v42 = vunpack.c.l.b16 %v2781_v55  ;;  %v2240_v46 = vsel %vm581_vm3, %v1708_v13, %v2239_v43  ;;  %v2783_v50 = vld.sshfl [vmem:[%s3117_s15 + $0xe] sm:$0x2 pattern:$0x76325410] }
 0x1b6   : > { %v1629_v25 = vsel %vm578_vm2, %v1620_v35, %v1628_v36  ;;  %v2148_v59 = vrot.slane %v1618_v60, 3  ;;  %v2149_v5 = vrot.slane %v1619_v45, 2  ;;  %v1211_v63 = vsel %vm683_vm8, %v1206_v56, 0 }
 0x1b7   : > { %v1632_v29 = vrot.slane %v1622_v38, 6  ;;  %v1117_v40 = vrot.slane %v573_v14, 2  ;;  %v1631_v33 = vsel %vm581_vm3, %v1630_v52, %v1629_v25  ;;  %v2243_v48 = vrot.slane %v1710_v28, 6 }
 0x1b8   : > { %v1624_v13 = vunpack.c.l.b16 %v2782_v26  ;;  %v2242_v60 = vsel %vm584_vm4, %v2241_v27, %v2240_v46  ;;  %v2151_v45 = vrot.slane %v1620_v35, 1  ;;  %v2150_v20 = vsel %vm575_vm1, %v2149_v5, %v2148_v59 }
 0x1b9   : > { %v1633_v3 = vsel %vm584_vm4, %v1632_v29, %v1631_v33  ;;  %v2245_v10 = vrot.slane %v1711_v17, 5  ;;  %v1625_v28 = vunpack.c.l.b16 %v2783_v50  ;;  %v2247_v56 = vrot.slane %v1712_v37, 4 }
 0x1ba   : > { %v1636_v35 = vrot.slane %v1624_v13, 4  ;;  %v2154_v55 = vrot.slane %v1622_v38, 7  ;;  %v2158_v38 = vrot.slane %v1624_v13, 5 }
 0x1bb   : > { %v1638_v43 = vrot.slane %v1625_v28, 3  ;;  %v2160_v26 = vrot.slane %v1625_v28, 4 }
 0x234   : > { %v738_v21 = vpop.xlane.xlu0 %737 }
 0x235   : > { %2934 = vrcp.f32 %v738_v21  ;;  %v1113_v21 = vrot.slane %v571_v6, 4  ;;  %v1722_v6 = vsel %vm587_vm5, %v1721_v32, %v1720_v49  ;;  %v1634_v32 = vrot.slane %v1623_v42, 5 }
 0x236   : > { %v1724_v54 = vsel %vm590_vm6, %v1723_v44, %v1722_v6 }
 0x237   : > { %v1114_v57 = vsel %vm587_vm5, %v1113_v21, %v1112_v39  ;;  %v2244_v21 = vsel %vm587_vm5, %v2243_v48, %v2242_v60  ;;  %v2152_v39 = vsel %vm578_vm2, %v2151_v45, %v2150_v20  ;;  %v1635_v36 = vsel %vm587_vm5, %v1634_v32, %v1633_v3 }
 0x238   : > { %v1116_v30 = vsel %vm590_vm6, %v1115_v2, %v1114_v57  ;;  %v2246_v17 = vsel %vm590_vm6, %v2245_v10, %v2244_v21  ;;  %v2153_v2 = vsel %vm581_vm3, %v1621_v62, %v2152_v39  ;;  %v1637_v52 = vsel %vm590_vm6, %v1636_v35, %v1635_v36 }
 0x239   : > { %v1118_v14 = vsel %vm593_vm7, %v1117_v40, %v1116_v30  ;;  %v2248_v57 = vsel %vm593_vm7, %v2247_v56, %v2246_v17  ;;  %v2155_v25 = vsel %vm584_vm4, %v2154_v55, %v2153_v2  ;;  %v1639_v37 = vsel %vm593_vm7, %v1638_v43, %v1637_v52  ;;  %v985_v55 = vld [vmem:[%s3401_s8] sm:$0x1] }
 0x23a   : > { %v1119_v44 = vpack.c.b16 %v1118_v14, %v1118_v14  ;;  %v2249_v62 = vpack.c.b16 %v2248_v57, %v2248_v57  ;;  %v2975_v40 = vmov 857870592  }
 0x23b   : > { %v919_v33 = vunpack.c.l.s4 %v2975_v40 }
 0x23d   : > { %v920_v13 = vunpack.c.0.s8 %v919_v33 }
 0x242   : > { %v2935_v31 = vpop.eup %2934 }
 0x243   : > { %v740_v11 = vmul.f32 %v2935_v31, %v3201_v53  ;;  %v1726_v53 = vsel %vm593_vm7, %v1725_v47, %v1724_v54  ;;  %v2156_v47 = vrot.slane %v1623_v42, 6  ;;  %v1640_v31 = vpack.c.b16 %v1639_v37, %v1639_v37 }
 0x244   : > { %v1727_v49 = vpack.c.b16 %v1726_v53, %v1726_v53  ;;  %v2254_v42 = vsel %vm683_vm8, %v2249_v62, 0  ;;  %v881_v54 = vlaneseq }
 0x245   : > { %v741_v51 = vpack.c.bf16 %v740_v11, %v740_v11  ;;  %v2157_v27 = vsel %vm587_vm5, %v2156_v47, %v2155_v25  ;;  %v2974_v11 = vmov 1966171168  }
 0x246   : > { %v1732_v6 = vsel %vm683_vm8, %v1727_v49, 0  ;;  %v2159_v46 = vsel %vm590_vm6, %v2158_v38, %v2157_v27  ;;  %v882_v30 = vshrl.u32 %v881_v54, 7  ;;  %v988_v38 = vld [vmem:[%s3401_s8 + $0x2] sm:$0x1]  ;;  %v991_v27 = vld [vmem:[%s3401_s8 + $0x4] sm:$0x1] }
 0x247   : > { %2864 = vmatmul.mubr.msk.bf16.vlgmr.msra.gmra.mxu1 %vm683_vm8, %v741_v51  ;;  %v2161_v59 = vsel %vm593_vm7, %v2160_v26, %v2159_v46 }
 0x248   : > { %2868 = vmatpush3.bf16.xpose.msra.mxu1 %v1211_v63  ;;  %2869 = vmatprep.mubr.msk.bf16.mxu1 %vm2973_vm0, %v2972_v24  ;;  %v2162_v5 = vpack.c.b16 %v2161_v59, %v2161_v59  ;;  %v879_v63 = vunpack.c.l.s4 %v2974_v11  ;;  %v3403_v3 = vsub.s32 %v920_v13, %v882_v30  ;;  %v1000_v11 = vld [vmem:[%s3401_s8 + $0xa] sm:$0x1] }
 0x249   : > { %2879 = vmatprep.subr.bf16.mxu1 %v2972_v24 }
 0x24a   : > { %v880_v29 = vunpack.c.0.s8 %v879_v63  ;;  %v1003_v63 = vld [vmem:[%s3401_s8 + $0xc] sm:$0x1] }
 0x24c   : > { %v3393_v48 = vsub.s32 %v880_v29, %v882_v30 }
 0x24f   : > { %2870 = vmatmul.mubr.msk.bf16.vlgmr.msra.gmra.mxu1 %vm683_vm8, %v1119_v44 }
 0x250   : > { %2880 = vmatpush3.bf16.xpose.msra.mxu1 %v1732_v6  ;;  %2881 = vmatprep.mubr.msk.bf16.mxu1 %vm2973_vm0, %v2972_v24 }
 0x251   : > { %2891 = vmatprep.subr.bf16.mxu1 %v2972_v24 }
 0x257   : > { %2882 = vmatmul.mubr.msk.bf16.vlgmr.msra.gmra.mxu1 %vm683_vm8, %v1640_v31  ;;  %v997_v31 = vld [vmem:[%s3401_s8 + $0x8] sm:$0x1] }
 0x258   : > { %2892 = vmatpush3.bf16.xpose.msra.mxu1 %v2254_v42  ;;  %2893 = vmatprep.mubr.msk.bf16.mxu1 %vm2973_vm0, %v2972_v24 }
 0x25f   : > { %2894 = vmatmul.mubr.msk.bf16.vlgmr.msra.gmra.mxu1 %vm683_vm8, %v2162_v5  ;;  %v994_v5 = vld [vmem:[%s3401_s8 + $0x6] sm:$0x1] }
 0x307   : > { %v870_v51 = vpop.f32.mrf.mxu1 }
 0x308   : > { %v876_v50 = vpack.c.bf16 %v870_v51, %v870_v51 }
 0x309   : > { %v2865_v60 = vpop.f32.mrf.mxu1 }
 0x30a   : > { %v884_v45 = vrot.slane %v876_v50, %v3393_v48  ;;  %v1006_v60 = vld [vmem:[%s3401_s8 + $0xe] sm:$0x1] }
 0x30b   : > { %v873_v53 = vpop.f32.mrf.mxu1 }
 0x30c   : > { %v885_v32 = vcombine.high %v884_v45, %v884_v45  ;;  %v892_v20 = vrot.slane %v884_v45, %v3393_v48 }
 0x30d   : > { %v2866_v10 = vpop.f32.mrf.mxu1 }
 0x30e   : > { %v899_v14 = vrot.slane %v885_v32, %v3393_v48  ;;  %v900_v28 = vcombine.high %v892_v20, %v892_v20  ;;  %v903_v21 = vunpack.i.h.s16 %v892_v20  ;;  %v2742_v49 = vpack.i.b16 %v892_v20, %v892_v20 }
 0x30f   : > { %v1247_v35 = vpop.f32.mrf.mxu1 }
 0x310   : > { %v901_v39 = vcombine.high %v899_v14, %v899_v14  ;;  %v905_v36 = vunpack.i.h.s16 %v899_v14  ;;  %v907_v56 = vunpack.i.h.s16 %v900_v28  ;;  %v911_v44 = vpack.i.b16 %v903_v21, %v903_v21 }
 0x311   : > { %v2743_v43 = vpack.i.b16 %v899_v14, %v899_v14  ;;  %v2744_v2 = vpack.i.b16 %v900_v28, %v900_v28  ;;  %v924_v6 = vrot.slane %v2742_v49, %v3403_v3  ;;  %v1248_v52 = vadd.f32 %v3197_v34, %v1247_v35  ;;  %v2871_v57 = vpop.f32.mrf.mxu1 }
 0x312   : > { %v909_v47 = vunpack.i.h.s16 %v901_v39  ;;  %v913_v25 = vpack.i.b16 %v905_v36, %v905_v36  ;;  %v915_v37 = vpack.i.b16 %v907_v56, %v907_v56  ;;  %v2745_v62 = vpack.i.b16 %v901_v39, %v901_v39 }
 0x313   : > { %v931_v26 = vrot.slane %v911_v44, %v3403_v3  ;;  %v938_v42 = vrot.slane %v2743_v43, %v3403_v3  ;;  %v952_v46 = vrot.slane %v2744_v2, %v3403_v3  ;;  %v986_v59 = vsel %vm3407_vm12, %v924_v6, %v985_v55  ;;  %v1250_v54 = vpop.f32.mrf.mxu1 }
 0x314   : > { %v917_v29 = vpack.i.b16 %v909_v47, %v909_v47  ;;  %v945_v30 = vrot.slane %v913_v25, %v3403_v3  ;;  %v959_v40 = vrot.slane %v915_v37, %v3403_v3  ;;  %v966_v33 = vrot.slane %v2745_v62, %v3403_v3  ;;  %987 = vst [vmem:[%s3401_s8] sm:$0x1] %v986_v59 }
 0x315   : > { %v989_v51 = vsel %vm3407_vm12, %v931_v26, %v988_v38  ;;  %v992_v50 = vsel %vm3407_vm12, %v938_v42, %v991_v27  ;;  %v998_v13 = vsel %vm3407_vm12, %v952_v46, %v997_v31  ;;  %v1253_v45 = vsel %vm683_vm8, %v1248_v52, -inf  ;;  %v2872_v53 = vpop.f32.mrf.mxu1 }
 0x316   : > { %v973_v32 = vrot.slane %v917_v29, %v3403_v3  ;;  %990 = vst [vmem:[%s3401_s8 + $0x2] sm:$0x1] %v989_v51  ;;  %993 = vst [vmem:[%s3401_s8 + $0x4] sm:$0x1] %v992_v50  ;;  %v995_v20 = vsel %vm3407_vm12, %v945_v30, %v994_v5  ;;  %v1001_v10 = vsel %vm3407_vm12, %v959_v40, %v1000_v11  ;;  %1254 = vmax.xlane.f32.xlu1 %v1253_v45 }
 0x317   : > { %999 = vst [vmem:[%s3401_s8 + $0x8] sm:$0x1] %v998_v13  ;;  %v1004_v14 = vsel %vm3407_vm12, %v966_v33, %v1003_v63  ;;  %996 = vst [vmem:[%s3401_s8 + $0x6] sm:$0x1] %v995_v20  ;;  %v1768_v28 = vpop.f32.mrf.mxu1  ;;  %v1337_v11 = vrot.slane %v806_v1, 1  ;;  %v1339_v63 = vrot.slane %v808_v8, 7  ;;  %v1853_v13 = vunpack.c.l.b16 %v2796_v23 }
 0x318   : > { %1002 = vst [vmem:[%s3401_s8 + $0xa] sm:$0x1] %v1001_v10  ;;  %1005 = vst [vmem:[%s3401_s8 + $0xc] sm:$0x1] %v1004_v14  ;;  %v1007_v21 = vsel %vm3407_vm12, %v973_v32, %v1006_v60  ;;  %v1769_v49 = vadd.f32 %v3197_v34, %v1768_v28  ;;  %v1341_v29 = vrot.slane %v809_v12, 6  ;;  %v1343_v30 = vrot.slane %v810_v16, 5 }
 0x319   : > { %1008 = vst [vmem:[%s3401_s8 + $0xe] sm:$0x1] %v1007_v21  ;;  %v2883_v35 = vpop.f32.mrf.mxu1  ;;  %v1338_v54 = vsel %vm575_vm1, %v807_v4, %v1337_v11  ;;  %v1345_v40 = vrot.slane %v811_v19, 4  ;;  %v1349_v1 = vrot.slane %v813_v41, 2  ;;  %v1859_v51 = vrot.slane %v1851_v22, 1 }
 0x31a   : > { %v1774_v39 = vsel %vm683_vm8, %v1769_v49, -inf  ;;  %v1340_v58 = vsel %vm578_vm2, %v1339_v63, %v1338_v54  ;;  %v2793_v16 = vld.sshfl [vmem:[%s3206_s17] sm:$0x2 pattern:$0x76325410]  ;;  %v1862_v20 = vrot.slane %v1853_v13, 7 }
 0x31b   : > { %1775 = vmax.xlane.f32.xlu1 %v1774_v39  ;;  %v1771_v36 = vpop.f32.mrf.mxu1  ;;  %v1342_v61 = vsel %vm581_vm3, %v1341_v29, %v1340_v58  ;;  %v1850_v19 = vunpack.c.l.b16 %v2793_v16  ;;  %v2795_v41 = vld.sshfl [vmem:[%s3206_s17 + $0x4] sm:$0x2 pattern:$0x76325410] }
 0x31c   : > { %v1344_v4 = vsel %vm584_vm4, %v1343_v30, %v1342_v61  ;;  %v2797_v50 = vld.sshfl [vmem:[%s3206_s17 + $0x8] sm:$0x2 pattern:$0x76325410]  ;;  %v1852_v60 = vunpack.c.l.b16 %v2795_v41 }
 0x31d   : > { %v2884_v56 = vpop.f32.mrf.mxu1  ;;  %v1346_v7 = vsel %vm587_vm5, %v1345_v40, %v1344_v4  ;;  %v1858_v33 = vrot.slane %v1850_v19, 2  ;;  %v2798_v53 = vld.sshfl [vmem:[%s3206_s17 + $0xa] sm:$0x2 pattern:$0x76325410]  ;;  %v1854_v32 = vunpack.c.l.b16 %v2797_v50  ;;  %v2380_v21 = vrot.slane %v1850_v19, 3 }
 0x31e   : > { %v1348_v8 = vsel %vm590_vm6, %v1347_v0, %v1346_v7  ;;  %v2799_v14 = vld.sshfl [vmem:[%s3206_s17 + $0xc] sm:$0x2 pattern:$0x76325410]  ;;  %v1855_v28 = vunpack.c.l.b16 %v2798_v53 }
 0x31f   : > { %v2290_v44 = vpop.f32.mrf.mxu1  ;;  %v1350_v9 = vsel %vm593_vm7, %v1349_v1, %v1348_v8  ;;  %v1860_v45 = vsel %vm575_vm1, %v1859_v51, %v1858_v33  ;;  %v1864_v35 = vrot.slane %v1854_v32, 6  ;;  %v2800_v36 = vld.sshfl [vmem:[%s3206_s17 + $0xe] sm:$0x2 pattern:$0x76325410]  ;;  %v1856_v56 = vunpack.c.l.b16 %v2799_v14 }
 0x320   : > { %v2291_v55 = vadd.f32 %v3197_v34, %v2290_v44  ;;  %v1351_v12 = vpack.c.b16 %v1350_v9, %v1350_v9  ;;  %v1861_v10 = vsel %vm578_vm2, %v1852_v60, %v1860_v45  ;;  %v2383_v44 = vrot.slane %v1852_v60, 1 }
 0x321   : > { %v2895_v43 = vpop.f32.mrf.mxu1  ;;  %v1863_v39 = vsel %vm581_vm3, %v1862_v20, %v1861_v10  ;;  %v2031_v10 = vld [vmem:[%s3401_s8 + $0x2] sm:$0x2] }
 0x322   : > { %v2296_v2 = vsel %vm683_vm8, %v2291_v55, -inf  ;;  %v1356_v15 = vsel %vm832_vm9, %v1351_v12, 0  ;;  %v1866_v43 = vrot.slane %v1855_v28, 5 }
 0x323   : > { %2297 = vmax.xlane.f32.xlu0 %v2296_v2  ;;  %v2293_v6 = vpop.f32.mrf.mxu1  ;;  %2874 = vmatpush3.bf16.msra.mxu0 %v1356_v15 }
 0x324   : > { %2885 = vmatprep.subr.bf16.mxu0 %v2972_v24  ;;  %v1865_v6 = vsel %vm584_vm4, %v1864_v35, %v1863_v39 }
 0x325   : > { %v2896_v57 = vpop.f32.mrf.mxu1 }
 0x326   : > { %v1857_v57 = vunpack.c.l.b16 %v2800_v36 }
 0x328   : > { %v2392_v30 = vrot.slane %v1857_v57, 4 }
 0x39f   : > { %v1255_v17 = vpop.xlane.xlu1 %1254 }
 0x3a0   : > { %v1256_v47 = vsub.f32 %v1248_v52, %v1255_v17  ;;  %v1868_v17 = vrot.slane %v1856_v56, 4 }
 0x3a2   : > { %v1257_v25 = vmul.f32 1.442695, %v1256_v47 }
 0x3a4   : > { %2936 = vpow2.f32 %v1257_v25  ;;  %v1776_v37 = vpop.xlane.xlu1 %1775  ;;  %v1867_v25 = vsel %vm587_vm5, %v1866_v43, %v1865_v6 }
 0x3a5   : > { %v1777_v62 = vsub.f32 %v1769_v49, %v1776_v37  ;;  %v2381_v49 = vrot.slane %v1851_v22, 2 }
 0x3a7   : > { %v1778_v38 = vmul.f32 1.442695, %v1777_v62  ;;  %v2382_v2 = vsel %vm575_vm1, %v2381_v49, %v2380_v21  ;;  %v2386_v62 = vrot.slane %v1854_v32, 7  ;;  %vm2547_vm1 = vsmask.f32 7942 }
 0x3a8   : > { %v2384_v47 = vsel %vm578_vm2, %v2383_v44, %v2382_v2 }
 0x3a9   : > { %2938 = vpow2.f32 %v1778_v38  ;;  %v1870_v38 = vrot.slane %v1857_v57, 3 }
 0x3ac   : > { %v2298_v27 = vpop.xlane.xlu0 %2297 }
 0x3ad   : > { %v2299_v31 = vsub.f32 %v2291_v55, %v2298_v27  ;;  %v2385_v27 = vsel %vm581_vm3, %v1853_v13, %v2384_v47  ;;  %vm3630_vm3 = vmand %vm2025_vm15, %vm2547_vm1 }
 0x3af   : > { %v2300_v26 = vmul.f32 1.442695, %v2299_v31  ;;  %v1869_v31 = vsel %vm590_vm6, %v1868_v17, %v1867_v25 }
 0x3b1   : > { %v3457_v42 = vpop.eup %2936  ;;  %2940 = vpow2.f32 %v2300_v26  ;;  %v2388_v26 = vrot.slane %v1855_v28, 6 }
 0x3b2   : > { %v1259_v34 = vsel %vm683_vm8, %v3457_v42, 0.0 }
 0x3b3   : > { %1260 = vadd.xlane.f32.xlu1 %v1259_v34  ;;  %v2387_v34 = vsel %vm584_vm4, %v2386_v62, %v2385_v27  ;;  %v1512_v27 = vld [vmem:[%s3401_s8 + $0x4] sm:$0x1] }
 0x3b4   : > { %v2389_v11 = vsel %vm587_vm5, %v2388_v26, %v2387_v34 }
 0x3b6   : > { %v3461_v46 = vpop.eup %2938 }
 0x3b7   : > { %v1780_v52 = vsel %vm683_vm8, %v3461_v46, 0.0 }
 0x3b8   : > { %1781 = vadd.xlane.f32.xlu0 %v1780_v52  ;;  %v1871_v52 = vsel %vm593_vm7, %v1870_v38, %v1869_v31  ;;  %v1509_v38 = vld [vmem:[%s3401_s8 + $0x2] sm:$0x1]  ;;  %v1518_v31 = vld [vmem:[%s3401_s8 + $0x8] sm:$0x1] }
 0x3b9   : > { %v1872_v54 = vpack.c.b16 %v1871_v52, %v1871_v52  ;;  %v1515_v52 = vld [vmem:[%s3401_s8 + $0x6] sm:$0x1] }
 0x3bb   : > { %v1877_v61 = vsel %vm832_vm9, %v1872_v54, 0 }
 0x3be   : > { %v3465_v59 = vpop.eup %2940 }
 0x3bf   : > { %v2302_v5 = vsel %vm683_vm8, %v3465_v59, 0.0 }
 0x3c0   : > { %2303 = vadd.xlane.f32.xlu1 %v2302_v5  ;;  %v2390_v5 = vrot.slane %v1856_v56, 5 }
 0x3c2   : > { %v2391_v58 = vsel %vm590_vm6, %v2390_v5, %v2389_v11  ;;  %v1521_v11 = vld [vmem:[%s3401_s8 + $0xa] sm:$0x1] }
 0x3c3   : > { %v2393_v1 = vsel %vm593_vm7, %v2392_v30, %v2391_v58 }
 0x3c4   : > { %v2394_v8 = vpack.c.b16 %v2393_v1, %v2393_v1 }
 0x3c6   : > { %v2399_v9 = vsel %vm832_vm9, %v2394_v8, 0 }
 0x43c   : > { %v1261_v55 = vpop.xlane.xlu1 %1260 }
 0x43d   : > { %2942 = vrcp.f32 %v1261_v55  ;;  %v1506_v55 = vld [vmem:[%s3401_s8] sm:$0x1] }
 0x441   : > { %v1782_v37 = vpop.xlane.xlu0 %1781 }
 0x442   : > { %2944 = vrcp.f32 %v1782_v37 }
 0x449   : > { %v2304_v63 = vpop.xlane.xlu1 %2303 }
 0x44a   : > { %v2943_v29 = vpop.eup %2942  ;;  %2946 = vrcp.f32 %v2304_v63  ;;  %v1524_v63 = vld [vmem:[%s3401_s8 + $0xc] sm:$0x1] }
 0x44b   : > { %v1263_v40 = vmul.f32 %v2943_v29, %v3457_v42 }
 0x44d   : > { %v1264_v0 = vpack.c.bf16 %v1263_v40, %v1263_v40 }
 0x44f   : > { %v2945_v4 = vpop.eup %2944  ;;  %2876 = vmatmul.mubr.msk.bf16.vlgmr.msra.gmra.mxu0 %vm683_vm8, %v1264_v0 }
 0x450   : > { %2886 = vmatpush3.bf16.msra.mxu0 %v1877_v61  ;;  %2887 = vmatprep.mubr.msk.bf16.mxu0 %vm2973_vm0, %v2972_v24  ;;  %v1784_v7 = vmul.f32 %v2945_v4, %v3461_v46  ;;  %v1527_v61 = vld [vmem:[%s3401_s8 + $0xe] sm:$0x1] }
 0x451   : > { %2897 = vmatprep.subr.bf16.mxu0 %v2972_v24 }
 0x452   : > { %v1785_v42 = vpack.c.bf16 %v1784_v7, %v1784_v7 }
 0x457   : > { %v2947_v12 = vpop.eup %2946  ;;  %2888 = vmatmul.mubr.msk.bf16.vlgmr.msra.gmra.mxu0 %vm683_vm8, %v1785_v42 }
 0x458   : > { %2898 = vmatpush3.bf16.msra.mxu0 %v2399_v9  ;;  %2899 = vmatprep.mubr.msk.bf16.mxu0 %vm2973_vm0, %v2972_v24  ;;  %v2306_v15 = vmul.f32 %v2947_v12, %v3465_v59  ;;  %vm2026_vm0 = vsmask.f32 1280 }
 0x459   : > { %vm3582_vm2 = vmand %vm2025_vm15, %vm2026_vm0 }
 0x45a   : > { %v2307_v16 = vpack.c.bf16 %v2306_v15, %v2306_v15 }
 0x45f   : > { %2900 = vmatmul.mubr.msk.bf16.vlgmr.msra.gmra.mxu0 %vm683_vm8, %v2307_v16 }
 0x50f   : > { %v1392_v18 = vpop.f32.mrf.mxu0 }
 0x510   : > { %v1398_v46 = vpack.c.bf16 %v1392_v18, %v1392_v18 }
 0x511   : > { %v2877_v19 = vpop.f32.mrf.mxu0 }
 0x512   : > { %v1406_v22 = vrot.slane %v1398_v46, %v3393_v48 }
 0x513   : > { %v1395_v23 = vpop.f32.mrf.mxu0 }
 0x514   : > { %v1407_v41 = vcombine.high %v1406_v22, %v1406_v22  ;;  %v1414_v33 = vrot.slane %v1406_v22, %v3393_v48 }
 0x515   : > { %v2878_v51 = vpop.f32.mrf.mxu0 }
 0x516   : > { %v1421_v50 = vrot.slane %v1407_v41, %v3393_v48  ;;  %v1422_v13 = vcombine.high %v1414_v33, %v1414_v33  ;;  %v1425_v24 = vunpack.i.h.s16 %v1414_v33  ;;  %v2772_v60 = vpack.i.b16 %v1414_v33, %v1414_v33  ;;  %v2028_v51 = vld [vmem:[%s3401_s8] sm:$0x2] }
 0x517   : > { %v1913_v59 = vpop.f32.mrf.mxu0 }
 0x518   : > { %v1423_v45 = vcombine.high %v1421_v50, %v1421_v50  ;;  %v1427_v53 = vunpack.i.h.s16 %v1421_v50  ;;  %v1429_v32 = vunpack.i.h.s16 %v1422_v13  ;;  %v1433_v20 = vpack.i.b16 %v1425_v24, %v1425_v24 }
 0x519   : > { %v2773_v14 = vpack.i.b16 %v1421_v50, %v1421_v50  ;;  %v2774_v28 = vpack.i.b16 %v1422_v13, %v1422_v13  ;;  %v1446_v21 = vrot.slane %v2772_v60, %v3403_v3  ;;  %v1919_v49 = vpack.c.bf16 %v1913_v59, %v1913_v59  ;;  %v2889_v35 = vpop.f32.mrf.mxu0 }
 0x51a   : > { %v1431_v39 = vunpack.i.h.s16 %v1423_v45  ;;  %v1435_v36 = vpack.i.b16 %v1427_v53, %v1427_v53  ;;  %v1437_v56 = vpack.i.b16 %v1429_v32, %v1429_v32  ;;  %v2775_v44 = vpack.i.b16 %v1423_v45, %v1423_v45 }
 0x51b   : > { %v1453_v43 = vrot.slane %v1433_v20, %v3403_v3  ;;  %v1460_v2 = vrot.slane %v2773_v14, %v3403_v3  ;;  %v1474_v6 = vrot.slane %v2774_v28, %v3403_v3  ;;  %v1507_v57 = vsel %vm3533_vm14, %v1446_v21, %v1506_v55  ;;  %v1916_v17 = vpop.f32.mrf.mxu0  ;;  %v2034_v14 = vld [vmem:[%s3401_s8 + $0x4] sm:$0x2]  ;;  %v2040_v28 = vld [vmem:[%s3401_s8 + $0x8] sm:$0x2]  ;;  %v2046_v55 = vld [vmem:[%s3401_s8 + $0xc] sm:$0x2] }
 0x51c   : > { %v1439_v47 = vpack.i.b16 %v1431_v39, %v1431_v39  ;;  %v1467_v25 = vrot.slane %v1435_v36, %v3403_v3  ;;  %v1481_v37 = vrot.slane %v1437_v56, %v3403_v3  ;;  %v1488_v62 = vrot.slane %v2775_v44, %v3403_v3  ;;  %1508 = vst [vmem:[%s3401_s8] sm:$0x1] %v1507_v57  ;;  %v2037_v56 = vld [vmem:[%s3401_s8 + $0x6] sm:$0x2]  ;;  %v2043_v44 = vld [vmem:[%s3401_s8 + $0xa] sm:$0x2] }
 0x51d   : > { %v1510_v26 = vsel %vm3533_vm14, %v1453_v43, %v1509_v38  ;;  %v1513_v34 = vsel %vm3533_vm14, %v1460_v2, %v1512_v27  ;;  %v1519_v5 = vsel %vm3533_vm14, %v1474_v6, %v1518_v31  ;;  %v1927_v54 = vrot.slane %v1919_v49, %v3393_v48  ;;  %v2890_v29 = vpop.f32.mrf.mxu0 }
 0x51e   : > { %v1495_v30 = vrot.slane %v1439_v47, %v3403_v3  ;;  %1511 = vst [vmem:[%s3401_s8 + $0x2] sm:$0x1] %v1510_v26  ;;  %1514 = vst [vmem:[%s3401_s8 + $0x4] sm:$0x1] %v1513_v34  ;;  %v1516_v40 = vsel %vm3533_vm14, %v1467_v25, %v1515_v52  ;;  %v1522_v58 = vsel %vm3533_vm14, %v1481_v37, %v1521_v11  ;;  %v2049_v37 = vld [vmem:[%s3401_s8 + $0xe] sm:$0x2] }
 0x51f   : > { %1520 = vst [vmem:[%s3401_s8 + $0x8] sm:$0x1] %v1519_v5  ;;  %v1525_v0 = vsel %vm3533_vm14, %v1488_v62, %v1524_v63  ;;  %1517 = vst [vmem:[%s3401_s8 + $0x6] sm:$0x1] %v1516_v40  ;;  %v1928_v1 = vcombine.high %v1927_v54, %v1927_v54  ;;  %v1935_v4 = vrot.slane %v1927_v54, %v3393_v48  ;;  %v2435_v7 = vpop.f32.mrf.mxu0 }
 0x520   : > { %1523 = vst [vmem:[%s3401_s8 + $0xa] sm:$0x1] %v1522_v58  ;;  %1526 = vst [vmem:[%s3401_s8 + $0xc] sm:$0x1] %v1525_v0  ;;  %v1528_v8 = vsel %vm3533_vm14, %v1495_v30, %v1527_v61  ;;  %v2441_v42 = vpack.c.bf16 %v2435_v7, %v2435_v7 }
 0x521   : > { %1529 = vst [vmem:[%s3401_s8 + $0xe] sm:$0x1] %v1528_v8  ;;  %v1942_v9 = vrot.slane %v1928_v1, %v3393_v48  ;;  %v1943_v12 = vcombine.high %v1935_v4, %v1935_v4  ;;  %v1946_v15 = vunpack.i.h.s16 %v1935_v4  ;;  %v2802_v16 = vpack.i.b16 %v1935_v4, %v1935_v4  ;;  %v2901_v18 = vpop.f32.mrf.mxu0 }
 0x522   : > { %v2449_v46 = vrot.slane %v2441_v42, %v3393_v48 }
 0x523   : > { %v1944_v19 = vcombine.high %v1942_v9, %v1942_v9  ;;  %v1948_v22 = vunpack.i.h.s16 %v1942_v9  ;;  %v1950_v23 = vunpack.i.h.s16 %v1943_v12  ;;  %v1954_v41 = vpack.i.b16 %v1946_v15, %v1946_v15  ;;  %v2438_v50 = vpop.f32.mrf.mxu0 }
 0x524   : > { %v2803_v13 = vpack.i.b16 %v1942_v9, %v1942_v9  ;;  %v2804_v24 = vpack.i.b16 %v1943_v12, %v1943_v12  ;;  %v1967_v60 = vrot.slane %v2802_v16, %v3403_v3  ;;  %v2450_v59 = vcombine.high %v2449_v46, %v2449_v46 }
 0x525   : > { %v1952_v45 = vunpack.i.h.s16 %v1944_v19  ;;  %v1956_v53 = vpack.i.b16 %v1948_v22, %v1948_v22  ;;  %v1958_v32 = vpack.i.b16 %v1950_v23, %v1950_v23  ;;  %v2805_v20 = vpack.i.b16 %v1944_v19, %v1944_v19  ;;  %v2902_v21 = vpop.f32.mrf.mxu0 }
 0x526   : > { %v1974_v49 = vrot.slane %v1954_v41, %v3403_v3  ;;  %v1981_v35 = vrot.slane %v2803_v13, %v3403_v3  ;;  %v1995_v39 = vrot.slane %v2804_v24, %v3403_v3  ;;  %v2029_v36 = vsel %vm3582_vm2, %v1967_v60, %v2028_v51 }
 0x527   : > { %v1960_v43 = vpack.i.b16 %v1952_v45, %v1952_v45  ;;  %v1988_v2 = vrot.slane %v1956_v53, %v3403_v3  ;;  %v2002_v6 = vrot.slane %v1958_v32, %v3403_v3  ;;  %v2009_v57 = vrot.slane %v2805_v20, %v3403_v3  ;;  %2030 = vst [vmem:[%s3401_s8] sm:$0x2] %v2029_v36 }
 0x528   : > { %v2032_v17 = vsel %vm3582_vm2, %v1974_v49, %v2031_v10  ;;  %v2035_v47 = vsel %vm3582_vm2, %v1981_v35, %v2034_v14  ;;  %v2041_v25 = vsel %vm3582_vm2, %v1995_v39, %v2040_v28  ;;  %v2457_v62 = vrot.slane %v2449_v46, %v3393_v48 }
 0x529   : > { %v2016_v38 = vrot.slane %v1960_v43, %v3403_v3  ;;  %2033 = vst [vmem:[%s3401_s8 + $0x2] sm:$0x2] %v2032_v17  ;;  %2036 = vst [vmem:[%s3401_s8 + $0x4] sm:$0x2] %v2035_v47  ;;  %v2038_v27 = vsel %vm3582_vm2, %v1988_v2, %v2037_v56  ;;  %v2044_v31 = vsel %vm3582_vm2, %v2002_v6, %v2043_v44 }
 0x52a   : > { %2042 = vst [vmem:[%s3401_s8 + $0x8] sm:$0x2] %v2041_v25  ;;  %v2047_v26 = vsel %vm3582_vm2, %v2009_v57, %v2046_v55  ;;  %2039 = vst [vmem:[%s3401_s8 + $0x6] sm:$0x2] %v2038_v27  ;;  %v2464_v34 = vrot.slane %v2450_v59, %v3393_v48  ;;  %v2465_v52 = vcombine.high %v2457_v62, %v2457_v62  ;;  %v2468_v5 = vunpack.i.h.s16 %v2457_v62 }
 0x52b   : > { %2045 = vst [vmem:[%s3401_s8 + $0xa] sm:$0x2] %v2044_v31  ;;  %2048 = vst [vmem:[%s3401_s8 + $0xc] sm:$0x2] %v2047_v26  ;;  %v2832_v11 = vpack.i.b16 %v2457_v62, %v2457_v62  ;;  %v2050_v63 = vsel %vm3582_vm2, %v2016_v38, %v2049_v37 }
 0x52c   : > { %2051 = vst [vmem:[%s3401_s8 + $0xe] sm:$0x2] %v2050_v63  ;;  %v2466_v54 = vcombine.high %v2464_v34, %v2464_v34  ;;  %v2470_v29 = vunpack.i.h.s16 %v2464_v34  ;;  %v2472_v30 = vunpack.i.h.s16 %v2465_v52  ;;  %v2476_v40 = vpack.i.b16 %v2468_v5, %v2468_v5 }
 0x52d   : > { %v2833_v0 = vpack.i.b16 %v2464_v34, %v2464_v34  ;;  %v2834_v48 = vpack.i.b16 %v2465_v52, %v2465_v52  ;;  %v2489_v61 = vrot.slane %v2832_v11, %v3403_v3 }
 0x52e   : > { %v2474_v1 = vunpack.i.h.s16 %v2466_v54  ;;  %v2478_v4 = vpack.i.b16 %v2470_v29, %v2470_v29  ;;  %v2480_v7 = vpack.i.b16 %v2472_v30, %v2472_v30  ;;  %v2835_v8 = vpack.i.b16 %v2466_v54, %v2466_v54  ;;  %v2549_v42 = vld [vmem:[%s3401_s8] sm:$0x2] }
 0x52f   : > { %v2496_v9 = vrot.slane %v2476_v40, %v3403_v3  ;;  %v2503_v12 = vrot.slane %v2833_v0, %v3403_v3  ;;  %v2517_v15 = vrot.slane %v2834_v48, %v3403_v3  ;;  %v2550_v16 = vsel %vm3630_vm3, %v2489_v61, %v2549_v42 }
 0x530   : > { %v2482_v18 = vpack.i.b16 %v2474_v1, %v2474_v1  ;;  %v2510_v46 = vrot.slane %v2478_v4, %v3403_v3  ;;  %v2524_v19 = vrot.slane %v2480_v7, %v3403_v3  ;;  %v2531_v22 = vrot.slane %v2835_v8, %v3403_v3  ;;  %2551 = vst [vmem:[%s3401_s8] sm:$0x2] %v2550_v16  ;;  %v2552_v23 = vld [vmem:[%s3401_s8 + $0x2] sm:$0x2]  ;;  %v2555_v41 = vld [vmem:[%s3401_s8 + $0x4] sm:$0x2] }
 0x531   : > { %v2561_v33 = vld [vmem:[%s3401_s8 + $0x8] sm:$0x2]  ;;  %v2553_v51 = vsel %vm3630_vm3, %v2496_v9, %v2552_v23  ;;  %v2556_v50 = vsel %vm3630_vm3, %v2503_v12, %v2555_v41  ;;  %v2558_v13 = vld [vmem:[%s3401_s8 + $0x6] sm:$0x2] }
 0x532   : > { %v2562_v24 = vsel %vm3630_vm3, %v2517_v15, %v2561_v33  ;;  %v2564_v60 = vld [vmem:[%s3401_s8 + $0xa] sm:$0x2]  ;;  %v2567_v59 = vld [vmem:[%s3401_s8 + $0xc] sm:$0x2]  ;;  %v2538_v45 = vrot.slane %v2482_v18, %v3403_v3  ;;  %2554 = vst [vmem:[%s3401_s8 + $0x2] sm:$0x2] %v2553_v51  ;;  %v2559_v53 = vsel %vm3630_vm3, %v2510_v46, %v2558_v13 }
 0x533   : > { %2557 = vst [vmem:[%s3401_s8 + $0x4] sm:$0x2] %v2556_v50  ;;  %2563 = vst [vmem:[%s3401_s8 + $0x8] sm:$0x2] %v2562_v24  ;;  %v2565_v32 = vsel %vm3630_vm3, %v2524_v19, %v2564_v60  ;;  %v2568_v20 = vsel %vm3630_vm3, %v2531_v22, %v2567_v59  ;;  %v2570_v10 = vld [vmem:[%s3401_s8 + $0xe] sm:$0x2] }
 0x534   : > { %2560 = vst [vmem:[%s3401_s8 + $0x6] sm:$0x2] %v2559_v53  ;;  %2566 = vst [vmem:[%s3401_s8 + $0xa] sm:$0x2] %v2565_v32  ;;  %v2571_v14 = vsel %vm3630_vm3, %v2538_v45, %v2570_v10 }
 0x535   : > { %2569 = vst [vmem:[%s3401_s8 + $0xc] sm:$0x2] %v2568_v20  ;;  %2572 = vst [vmem:[%s3401_s8 + $0xe] sm:$0x2] %v2571_v14 }
 0x536 PF: > { %p11_p9 = scmp.ge.s32.totalorder %s3018_s19, 4   ;;  %s3698_s15 = smov %s2966_s16 }
 0x537   : > { %s3699_s16 = smov %s3027_s22  ;;  %s3700_s17 = smov %s3018_s19 }
 0x538   :  { %13 = sbr.rel (!%p11_p9) target bundleno = 2 (0x2), region = 213 }

// kernel: bert_for_token_classification.33
= control target key start
LH: loop header
LB: loop body
LE: loop exit
PB: predicated region body
PF: predicated region fallthrough
CT: control target
= control target key end

     0   :  { %vm18_vm0 = vcmask 261120   ;;  %vm72_vm1 = vcmask 257024   ;;  %s132_s0 = inlined_call_operand.vmem [shape: bf16[16,32], index: 0, kind: input, shape index: {}]   ;;  %s133_s1 = inlined_call_operand.vmem [shape: f32[1,32], index: 1, kind: input, shape index: {}]   ;;  %s134_s2 = inlined_call_operand.vmem [shape: f32[1,32], index: 2, kind: input, shape index: {}]   ;;  %s135_s3 = inlined_call_operand.vmem [shape: bf16[16,32], index: 3, kind: output, shape index: {}]  }
   0x1   :  { %v86_v0 = vld [vmem:[%s132_s0] sm:$0xff]  }
   0x2   :  { %v87_v1 = vunpack.c.l.bf16 %v86_v0  ;;  %v88_v2 = vunpack.c.h.bf16 %v86_v0  ;;  %v79_v22 = vld [vmem:[%s133_s1] ss:$0 sm:$0xff] }
   0x3   :  { %v80_v24 = vld [vmem:[%s134_s2] ss:$0 sm:$0xff] }
   0x4   :  { %v19_v3 = vsel %vm18_vm0, %v87_v1, 0.0  ;;  %v22_v4 = vsel %vm18_vm0, %v88_v2, 0.0 }
   0x5   :  { %20 = vadd.xlane.f32.xlu0 %v19_v3 }
   0x9   :  { %23 = vadd.xlane.f32.xlu0 %v22_v4 }
  0x8e   :  { %v21_v5 = vpop.xlane.xlu0 %20 }
  0x8f   :  { %v26_v6 = vmul.f32 0.03125, %v21_v5 }
  0x91   :  { %v28_v7 = vsub.f32 %v87_v1, %v26_v6 }
  0x92   :  { %v24_v8 = vpop.xlane.xlu0 %23 }
  0x93   :  { %v27_v9 = vmul.f32 0.03125, %v24_v8  ;;  %v30_v10 = vmul.f32 %v28_v7, %v28_v7 }
  0x95   :  { %v29_v11 = vsub.f32 %v88_v2, %v27_v9  ;;  %v32_v12 = vsel %vm18_vm0, %v30_v10, 0.0 }
  0x96   :  { %33 = vadd.xlane.f32.xlu1 %v32_v12 }
  0x97   :  { %v31_v13 = vmul.f32 %v29_v11, %v29_v11 }
  0x99   :  { %v35_v14 = vsel %vm18_vm0, %v31_v13, 0.0 }
  0x9a   :  { %36 = vadd.xlane.f32.xlu1 %v35_v14 }
 0x11f   :  { %v34_v15 = vpop.xlane.xlu1 %33 }
 0x120   :  { %v38_v16 = vmul.f32 0.03125, %v34_v15 }
 0x122   :  { %v40_v17 = vadd.f32 1e-12, %v38_v16 }
 0x123   :  { %v37_v18 = vpop.xlane.xlu1 %36 }
 0x124   :  { %89 = vrsqrt.f32 %v40_v17  ;;  %v39_v19 = vmul.f32 0.03125, %v37_v18 }
 0x126   :  { %v41_v20 = vadd.f32 1e-12, %v39_v19 }
 0x128   :  { %91 = vrsqrt.f32 %v41_v20 }
 0x131   :  { %v90_v21 = vpop.eup %89 }
 0x132   :  { %v44_v23 = vmul.f32 %v90_v21, %v28_v7 }
 0x134   :  { %v53_v25 = vmul.f32 %v79_v22, %v44_v23 }
 0x135   :  { %v92_v26 = vpop.eup %91 }
 0x136   :  { %v62_v27 = vadd.f32 %v80_v24, %v53_v25  ;;  %v45_v28 = vmul.f32 %v92_v26, %v29_v11 }
 0x138   :  { %v83_v29 = vpack.c.bf16 %v62_v27, %v62_v27  ;;  %v54_v30 = vmul.f32 %v79_v22, %v45_v28 }
 0x13a   :  { %73 = vst.msk [vmem:[%s135_s3] sm:$0xf] %vm72_vm1, %v83_v29  ;;  %v63_v31 = vadd.f32 %v80_v24, %v54_v30 }
 0x13c   :  { %v84_v32 = vpack.c.bf16 %v63_v31, %v63_v31 }
 0x13e   :  { %74 = vst.msk [vmem:[%s135_s3 + $0x4] sm:$0xf] %vm72_vm1, %v84_v32 }

// kernel: bert_for_token_classification.24
= control target key start
LH: loop header
LB: loop body
LE: loop exit
PB: predicated region body
PF: predicated region fallthrough
CT: control target
= control target key end

     0   :  { %vm19_vm0 = vcmask 261120   ;;  %v177_v0 = vmov 0.0   ;;  %vm178_vm1 = vmmov 0   ;;  %vm63_vm2 = vcmask 523264   ;;  %s227_s1 = inlined_call_operand.vmem [shape: bf16[64,32], index: 1, kind: input, shape index: {}]   ;;  %s228_s0 = inlined_call_operand.vmem [shape: bf16[16,64], index: 0, kind: input, shape index: {}]   ;;  %s229_s2 = inlined_call_operand.vmem [shape: f32[1,32], index: 2, kind: input, shape index: {}]   ;;  %s230_s3 = inlined_call_operand.vmem [shape: bf16[16,32], index: 3, kind: output, shape index: {}]  }
   0x1   :  { %158 = vmatprep.subr.bf16.mxu0 %v177_v0  ;;  %v172_v1 = vld [vmem:[%s227_s1 + $0x18] sm:$0xff]   ;;  %166 = vmatprep.mubr.msk.bf16.mxu0 %vm178_vm1, %v177_v0  ;;  %20 = vst.msk [vmem:[#allocation2] sm:$0xff] %vm19_vm0, %v177_v0  ;;  %21 = vst.msk [vmem:[#allocation2 + $0x8] sm:$0xff] %vm19_vm0, %v177_v0  ;;  %v173_v2 = vld [vmem:[%s227_s1 + $0x10] sm:$0xff]   ;;  %vm135_vm3 = vcmask 257024  }
   0x2   :  { %159 = vmatpush3.bf16.msra.mxu0 %v172_v1  ;;  %v174_v3 = vld [vmem:[%s227_s1 + $0x8] sm:$0xff]   ;;  %v175_v4 = vld [vmem:[%s227_s1] sm:$0xff]  }
   0x3   :  { %160 = vmatprep.subr.bf16.mxu0 %v177_v0  ;;  %v176_v5 = vld [vmem:[%s228_s0] sm:$0xff]  }
   0x4   :  { %v148_v14 = vld [vmem:[%s229_s2] ss:$0 sm:$0xff] }
   0x6   :  { %161 = vmatpush3.bf16.msra.mxu0 %v173_v2 }
   0x7   :  { %162 = vmatprep.subr.bf16.mxu0 %v177_v0 }
   0x8   :  { %v22_v6 = vld [vmem:[#allocation2] sm:$0xff]  ;;  %v23_v10 = vld [vmem:[#allocation2 + $0x8] sm:$0xff] }
   0xa   :  { %163 = vmatpush3.bf16.msra.mxu0 %v174_v3 }
   0xb   :  { %164 = vmatprep.subr.bf16.mxu0 %v177_v0 }
   0xe   :  { %165 = vmatpush3.bf16.msra.mxu0 %v175_v4 }
  0x11   :  { %167 = vmatmul.mubr.msk.bf16.vlgmr.msra.gmra.mxu0 %vm63_vm2, %v176_v5 }
  0xd1   :  { %v101_v7 = vpop.f32.mrf.mxu0 }
  0xd2   :  { %v108_v8 = vadd.f32 %v101_v7, %v22_v6 }
  0xd3   :  { %v168_v9 = vpop.f32.mrf.mxu0 }
  0xd4   :  { %111 = vst.msk [vmem:[#allocation2] sm:$0xff] %vm19_vm0, %v108_v8 }
  0xd5   :  { %v104_v11 = vpop.f32.mrf.mxu0 }
  0xd6   :  { %v109_v12 = vadd.f32 %v104_v11, %v23_v10 }
  0xd7   :  { %v169_v13 = vpop.f32.mrf.mxu0 }
  0xd8   :  { %112 = vst.msk [vmem:[#allocation2 + $0x8] sm:$0xff] %vm19_vm0, %v109_v12 }
  0xdb   :  { %v116_v15 = vld [vmem:[#allocation2] sm:$0xff] }
  0xdc   :  { %v125_v16 = vadd.f32 %v148_v14, %v116_v15 }
  0xde   :  { %v151_v17 = vpack.c.bf16 %v125_v16, %v125_v16 }
  0xdf   :  { %v117_v18 = vld [vmem:[#allocation2 + $0x8] sm:$0xff] }
  0xe0   :  { %136 = vst.msk [vmem:[%s230_s3] sm:$0xf] %vm135_vm3, %v151_v17  ;;  %v126_v19 = vadd.f32 %v148_v14, %v117_v18 }
  0xe2   :  { %v152_v20 = vpack.c.bf16 %v126_v19, %v126_v19 }
  0xe4   :  { %137 = vst.msk [vmem:[%s230_s3 + $0x4] sm:$0xf] %vm135_vm3, %v152_v20 }

// kernel: bert_for_token_classification.34
= control target key start
LH: loop header
LB: loop body
LE: loop exit
PB: predicated region body
PF: predicated region fallthrough
CT: control target
= control target key end

     0   :  { %v136_v0 = vmov 0.0   ;;  %vm137_vm0 = vmmov 0   ;;  %vm46_vm1 = vcmask 261120   ;;  %s176_s1 = inlined_call_operand.vmem [shape: bf16[32,128], index: 1, kind: input, shape index: {}]   ;;  %s177_s0 = inlined_call_operand.vmem [shape: bf16[16,32], index: 0, kind: input, shape index: {}]   ;;  %s178_s2 = inlined_call_operand.vmem [shape: f32[1,128], index: 2, kind: input, shape index: {}]   ;;  %s179_s3 = inlined_call_operand.vmem [shape: f32[16,128], index: 3, kind: output, shape index: {}]  }
   0x1   :  { %123 = vmatprep.subr.bf16.mxu0 %v136_v0  ;;  %v133_v1 = vld [vmem:[%s176_s1 + $0x8] sm:$0xff]   ;;  %127 = vmatprep.mubr.msk.bf16.mxu0 %vm137_vm0, %v136_v0  ;;  %v134_v2 = vld [vmem:[%s176_s1] sm:$0xff]  }
   0x2   :  { %124 = vmatpush3.bf16.msra.mxu0 %v133_v1  ;;  %v135_v3 = vld [vmem:[%s177_s0] sm:$0xff]  }
   0x3   :  { %125 = vmatprep.subr.bf16.mxu0 %v136_v0  ;;  %v119_v4 = vld [vmem:[%s178_s2] ss:$0 sm:$0xff] }
   0x6   :  { %126 = vmatpush3.bf16.msra.mxu0 %v134_v2 }
   0x9   :  { %128 = vmatmul.mubr.msk.bf16.vlgmr.msra.gmra.mxu0 %vm46_vm1, %v135_v3 }
  0xc9   :  { %v84_v5 = vpop.f32.mrf.mxu0 }
  0xca   :  { %v107_v6 = vadd.f32 %v119_v4, %v84_v5 }
  0xcb   :  { %v129_v7 = vpop.f32.mrf.mxu0 }
  0xcc   :  { %109 = vst [vmem:[%s179_s3] sm:$0xff] %v107_v6 }
  0xcd   :  { %v87_v8 = vpop.f32.mrf.mxu0 }
  0xce   :  { %v108_v9 = vadd.f32 %v119_v4, %v87_v8 }
  0xcf   :  { %v130_v10 = vpop.f32.mrf.mxu0 }
  0xd0   :  { %110 = vst [vmem:[%s179_s3 + $0x8] sm:$0xff] %v108_v9 }

// kernel: bert_for_token_classification.35
= control target key start
LH: loop header
LB: loop body
LE: loop exit
PB: predicated region body
PF: predicated region fallthrough
CT: control target
= control target key end

     0   :  { %9 = vsyncpa [#allocation3], 0  ;;  %v190_v2 = vmov 0   ;;  %s240_s0 = inlined_call_operand.vmem [shape: f32[16,128], index: 0, kind: input, shape index: {}]   ;;  %s241_s1 = inlined_call_operand.vmem [shape: s32[16,1], index: 1, kind: input, shape index: {}]   ;;  %s242_s2 = inlined_call_operand.hbm [shape: f32[1,1], index: 2, kind: output, shape index: {0}]   ;;  %s243_s3 = inlined_call_operand.hbm [shape: f32[1,1], index: 3, kind: output, shape index: {1}]  }
   0x1   :  { %v22_v0 = vld [vmem:[%s240_s0] sm:$0xff]  ;;  %136 = vset.pattern.permute.xlu1 %v190_v2 }
   0x2   :  { %v24_v1 = vld [vmem:[%s241_s1] sm:$0xff]  ;;  %32 = vmax.xlane.f32.xlu0 %v22_v0 }
   0x3   :  { %10 = vsyncpa [#allocation5], 0  ;;  %v23_v3 = vld [vmem:[%s240_s0 + $0x8] sm:$0xff]  ;;  %53 = vperm.xlu1 %136, %v24_v1   ;;  %137 = vset.pattern.permute.xlu0 %v190_v2  ;;  %v50_v10 = vlaneseq  ;;  %v191_v16 = vmov 0.0   ;;  %vm26_vm2 = vcmp.ge.s32.totalorder %v24_v1, 0  ;;  %vm75_vm4 = vcmask 7168  }
   0x4   :  { %v25_v4 = vld [vmem:[%s241_s1 + $0x8] sm:$0xff]  ;;  %v128_v22 = vsel %vm26_vm2, 1.0, %v191_v16  ;;  %vm19_vm5 = vcmask 0   ;;  %s192_s0 = smov [#allocation4]  }
   0x5   :  { %v51_v13 = vand.u32 127, %v50_v10  ;;  %vm27_vm3 = vcmp.ge.s32.totalorder %v25_v4, 0  ;;  %v89_v23 = vsel %vm75_vm4, %v128_v22, 0.0  ;;  %20 = vst.msk [vmem:[#allocation2] sm:$0x1] %vm19_vm5, %v191_v16  ;;  %s116_s1 = sshll.u32 %s192_s0, 4  ;;  %s117_s1 = int_to_ptr.vmem [resolvable:$true] %s116_s1 }
   0x6   :  { %34 = vmax.xlane.f32.xlu0 %v23_v3  ;;  %v129_v24 = vsel %vm27_vm3, 1.0, %v191_v16  ;;  %21 = vst.msk [vmem:[#allocation4] sm:$0x1] %vm19_vm5, %v191_v16  ;;  %s146_s20 = scalar_lea.vmem %s117_s1, 16  ;;  %s150_s21 = scalar_lea.vmem %s117_s1, 32 }
   0x7   :  { %56 = vperm.xlu1 %136, %v25_v4   ;;  %v90_v25 = vsel %vm75_vm4, %v129_v24, 0.0  ;;  %p147_p0 = scmp.ne.s32.totalorder %s117_s1, %s146_s20  ;;  %p151_p1 = scmp.lt.s32.totalorder %s117_s1, %s117_s1 }
   0x8   :  { %v91_v26 = vadd.f32 %v90_v25, %v89_v23  ;;  %p152_p2 = scmp.lt.s32.totalorder %s150_s21, %s146_s20 }
   0xa   :  { %v92_v27 = vrot.slane %v91_v26, 4  ;;  %p153_p3 = por %p152_p2, %p151_p1 }
   0xc   :  { %v93_v28 = vadd.f32 %v92_v27, %v91_v26  ;;  %p154_p4 = pnand %p153_p3, %p147_p0 }
   0xd   :  { %v88_v33 = vld [vmem:[#allocation4] sm:$0x1] }
   0xe   :  { %v94_v29 = vrot.slane %v93_v28, 2 }
  0x10   :  { %v95_v30 = vadd.f32 %v94_v29, %v93_v28 }
  0x12   :  { %v96_v31 = vrot.slane %v95_v30, 1 }
  0x14   :  { %v97_v32 = vadd.f32 %v96_v31, %v95_v30 }
  0x16   :  { %v98_v34 = vadd.f32 %v97_v32, %v88_v33 }
  0x18   :  { %99 = vst.msk [vmem:[#allocation4] sm:$0x1] %vm19_vm5, %v98_v34 }
  0x7e   :  { %v54_v12 = vpop.permute.xlu1 %53 }
  0x7f   :  { %vm58_vm0 = vcmp.eq.s32.totalorder %v51_v13, %v54_v12 }
  0x80   :  { %v130_v17 = vsel %vm58_vm0, 1.0, %v191_v16 }
  0x82   :  { %v57_v14 = vpop.permute.xlu1 %56 }
  0x83   :  { %vm59_vm1 = vcmp.eq.s32.totalorder %v51_v13, %v57_v14 }
  0x84   :  { %v131_v20 = vsel %vm59_vm1, 1.0, %v191_v16 }
  0x8b   :  { %v33_v5 = vpop.xlane.xlu0 %32 }
  0x8c   :  { %v36_v6 = vsub.f32 %v22_v0, %v33_v5 }
  0x8e   :  { %v38_v7 = vmul.f32 1.442695, %v36_v6  ;;  %v64_v18 = vmul.f32 %v130_v17, %v36_v6 }
  0x8f   :  { %v35_v8 = vpop.xlane.xlu0 %34 }
  0x90   :  { %138 = vpow2.f32 %v38_v7  ;;  %v37_v9 = vsub.f32 %v23_v3, %v35_v8 }
  0x92   :  { %v40_v11 = vmul.f32 1.442695, %v37_v9  ;;  %v65_v21 = vmul.f32 %v131_v20, %v37_v9 }
  0x94   :  { %140 = vpow2.f32 %v40_v11 }
  0x9d   :  { %v139_v15 = vpop.eup %138 }
  0x9e   :  { %42 = vadd.xlane.f32.xlu0 %v139_v15 }
  0xa1   :  { %v141_v19 = vpop.eup %140 }
  0xa2   :  { %44 = vadd.xlane.f32.xlu1 %v141_v19  ;;  %66 = vadd.xlane.f32.xlu0 %v64_v18 }
  0xa6   :  { %68 = vadd.xlane.f32.xlu0 %v65_v21 }
  0xa7   :  { %157 = shalt.err (!%p154_p4)
}
  0xa8   :  { %119 = dma.vmem_to_hbm [thread:$0]  %s117_s1, 16, %s243_s3, [#allocation5]   ;;  %v74_v55 = vld [vmem:[#allocation2] sm:$0x1] }
  0xa9   :  { %s193_s3 = smov [#allocation2]  }
  0xaa   :  { %s106_s24 = sshll.u32 %s193_s3, 4  ;;  %s107_s24 = int_to_ptr.vmem [resolvable:$true] %s106_s24 }
  0xab   :  { %s166_s25 = scalar_lea.vmem %s107_s24, 16  ;;  %s170_s26 = scalar_lea.vmem %s107_s24, 32 }
  0xac   :  { %p167_p5 = scmp.ne.s32.totalorder %s107_s24, %s166_s25  ;;  %p171_p6 = scmp.lt.s32.totalorder %s107_s24, %s107_s24 }
  0xad   :  { %p172_p7 = scmp.lt.s32.totalorder %s170_s26, %s166_s25 }
  0xaf   :  { %p173_p8 = por %p172_p7, %p171_p6 }
  0xb1   :  { %p174_p9 = pnand %p173_p8, %p167_p5 }
 0x127   :  { %v43_v35 = vpop.xlane.xlu0 %42 }
 0x128   :  { %142 = vlog2.f32 %v43_v35 }
 0x12b   :  { %v45_v36 = vpop.xlane.xlu1 %44  ;;  %v67_v38 = vpop.xlane.xlu0 %66 }
 0x12c   :  { %144 = vlog2.f32 %v45_v36 }
 0x12f   :  { %v69_v43 = vpop.xlane.xlu0 %68 }
 0x135   :  { %v143_v37 = vpop.eup %142 }
 0x136   :  { %v47_v39 = vmul.f32 0.6931472, %v143_v37 }
 0x138   :  { %v70_v40 = vsub.f32 %v47_v39, %v67_v38 }
 0x139   :  { %v145_v41 = vpop.eup %144 }
 0x13a   :  { %v49_v42 = vmul.f32 0.6931472, %v145_v41  ;;  %v72_v44 = vmul.f32 %v128_v22, %v70_v40 }
 0x13c   :  { %v71_v45 = vsub.f32 %v49_v42, %v69_v43  ;;  %v76_v47 = vsel %vm75_vm4, %v72_v44, 0.0 }
 0x13e   :  { %v73_v46 = vmul.f32 %v129_v24, %v71_v45 }
 0x140   :  { %v77_v48 = vsel %vm75_vm4, %v73_v46, 0.0 }
 0x141   :  { %v78_v49 = vadd.f32 %v77_v48, %v76_v47 }
 0x143   :  { %v79_v50 = vrot.slane %v78_v49, 4 }
 0x145   :  { %v80_v51 = vadd.f32 %v79_v50, %v78_v49 }
 0x147   :  { %v81_v52 = vrot.slane %v80_v51, 2 }
 0x149   :  { %v82_v53 = vadd.f32 %v81_v52, %v80_v51 }
 0x14b   :  { %v83_v54 = vrot.slane %v82_v53, 1 }
 0x14d   :  { %v84_v56 = vadd.f32 %v83_v54, %v82_v53 }
 0x14f   :  { %v85_v57 = vadd.f32 %v84_v56, %v74_v55 }
 0x151   :  { %87 = vst.msk [vmem:[#allocation2] sm:$0x1] %vm19_vm5, %v85_v57 }
 0x152   :  { %177 = shalt.err (!%p174_p9)
}
 0x153   :  { %109 = dma.vmem_to_hbm [thread:$0]  %s107_s24, 16, %s242_s2, [#allocation3]  }
 0x154   :  { %186 = dma.done.wait [#allocation3], 16  }
 0x155   :  { %187 = vsyncadd [#allocation3], 4294967280 }
 0x156   :  { %188 = dma.done.wait [#allocation5], 16  }
 0x157   :  { %189 = vsyncadd [#allocation5], 4294967280 }
 0x158   :  { %126 = vsyncpa [#allocation3], 1 }
 0x159   :  { %127 = vsyncpa [#allocation5], 1 }

</bundles_post_ra>
